<compile_context>
chip_gen: v6e
topology: v6e:2x2x1
jax: 0.10.0
libtpu: 0.0.40
codegen_flags: <defaults>
</compile_context>

<pallas_src>
import math
from functools import partial

import jax
import jax.numpy as jnp
from jax.experimental import pallas as pl
from jax.experimental.pallas import tpu as pltpu


# ------------------------------ Pallas kernel -------------------------------
def _deconv_fused_kernel(x_ref, uwk_ref, a_ref, bk_ref, bias_ref, o_ref):
    """Fused (per batch block): bilinear x2 upsample + zero pad + KxK conv.

    x_ref   : (Bblk*H, W*Cin)                bf16  channels-last input rows
    uwk_ref : (W*Cin, WpCp)                  bf16  kron(width interp, I_Cin) (+pad)
    a_ref   : (K*Bblk*Hout, Bblk*H)          bf16  stacked, shifted, batch-block-
                                                   diagonal height interp matrix
    bk_ref  : (K, WpCp, Wout*Cout)           bf16  banded conv matrices (per ky)
    bias_ref: (1, Wout*Cout)                 f32
    o_ref   : (Bblk*Hout, Wout*Cout)         f32 / bf16
    """
    ksize = bk_ref.shape[0]
    bh = o_ref.shape[0]                       # Bblk * Hout (16-row aligned)

    # 1) width upsample + horizontal zero pad: M=Bblk*H, K=W*Cin, lane-dense N.
    t = jnp.dot(x_ref[...], uwk_ref[...], preferred_element_type=jnp.float32)

    # 2) height upsample + vertical zero pad + all K conv row-shifts in ONE
    #    matmul; per-ky slabs land at bh-aligned row offsets (no relayout).
    s = jnp.dot(a_ref[...], t.astype(jnp.bfloat16),
                preferred_element_type=jnp.float32)
    sb = s.astype(jnp.bfloat16)

    # 3) KxK conv = K banded matmuls (K=WpCp contraction, N=Wout*Cout lanes),
    #    f32 accumulation; acc is seeded by the first matmul (no zeros init).
    acc = jnp.dot(sb[0:bh], bk_ref[0], preferred_element_type=jnp.float32)
    for ky in range(1, ksize):
        acc = acc + jnp.dot(sb[ky * bh:(ky + 1) * bh], bk_ref[ky],
                            preferred_element_type=jnp.float32)

    # 4) single bias epilogue add on the VPU, lane-dense store.
    o_ref[...] = (acc + bias_ref[...]).astype(o_ref.dtype)


# ------------------------------ host-side glue -------------------------------
def _interp_matrix(n_in, n_out):
    """(n_out, n_in) matrix M s.t. M @ x is bilinear resize, align_corners=True."""
    if n_in == 1:
        return jnp.ones((n_out, 1), jnp.float32)
    src = jnp.arange(n_out, dtype=jnp.float32) * (n_in - 1) / (n_out - 1)
    lo = jnp.clip(jnp.floor(src).astype(jnp.int32), 0, n_in - 2)
    frac = src - lo.astype(jnp.float32)
    rows = jnp.arange(n_out)
    m = jnp.zeros((n_out, n_in), jnp.float32)
    m = m.at[rows, lo].set(1.0 - frac)
    m = m.at[rows, lo + 1].add(frac)
    return m


def _pick_batch_block(batch, hout, target_rows=256):
    """Smallest divisor of `batch` whose stacked row count reaches target_rows."""
    divs = [d for d in range(1, batch + 1) if batch % d == 0]
    for d in divs:
        if d * hout >= target_rows:
            return d
    return divs[-1]


def deconv_forward(weight, bias, x, *, kernel_size=3, padding=0,
                   out_dtype=jnp.float32, channels_last=False):
    """deconv.forward: bilinear x2 upsample (align_corners=True) + Conv2d."""
    B, Cin, H, W = x.shape
    Cout = weight.shape[0]
    K = kernel_size
    Ho, Wo = 2 * H, 2 * W
    Hpad, Wpad = Ho + 2 * padding, Wo + 2 * padding
    Hout, Wout = Hpad - K + 1, Wpad - K + 1
    WC = W * Cin
    WpC = Wpad * Cin
    WpCp = ((WpC + 127) // 128) * 128          # lane-align the conv contraction
    NC = Wout * Cout

    Bblk = _pick_batch_block(B, Hout)          # stack batches to lift conv M
    BH = Bblk * Hout

    # activations: NCHW -> channels-last rows (B*H, W*Cin), bf16 MXU operands
    x_flat = jnp.transpose(x, (0, 2, 3, 1)).reshape(B * H, WC).astype(jnp.bfloat16)

    # width upsample: kron(Uw, I_Cin) with horizontal zero pad + lane padding
    uw = _interp_matrix(W, Wo)                                       # (Wo, W)
    uwk = jnp.einsum('vw,ij->wivj', uw, jnp.eye(Cin, dtype=jnp.float32))
    uwk = uwk.reshape(WC, Wo * Cin)
    uwk = jnp.pad(uwk, ((0, 0), (padding * Cin, padding * Cin + (WpCp - WpC))))
    uwk = uwk.astype(jnp.bfloat16)                                   # (WC, WpCp)

    # height upsample with vertical zero pad folded in, pre-shifted per ky and
    # made block-diagonal over the stacked batch elements:
    #   A[(ky*Bblk + b)*Hout + o, b'*H + h] = uh_pad[o + ky, h] * (b == b')
    uh_full = jnp.pad(_interp_matrix(H, Ho), ((padding, padding), (0, 0)))
    uh_k = jnp.stack([uh_full[ky:ky + Hout] for ky in range(K)])     # (K,Hout,H)
    a_mat = jnp.einsum('koh,bc->kboch', uh_k, jnp.eye(Bblk, dtype=jnp.float32))
    a_mat = a_mat.reshape(K * BH, Bblk * H).astype(jnp.bfloat16)

    # conv weights as K banded matrices Bk[ky] : (WpCp, Wout*Cout)
    # Bk[ky, ux*Cin+ci, ox*Cout+co] = w[co, ci, ky, ux-ox]  if 0 <= ux-ox < K
    wt = jnp.transpose(weight, (2, 3, 1, 0)).astype(jnp.float32)     # (ky,kx,Ci,Co)
    sel = (jnp.arange(Wpad)[None, :, None]
           == jnp.arange(Wout)[None, None, :] + jnp.arange(K)[:, None, None])
    bk = jnp.einsum('ykic,kuo->yuioc', wt, sel.astype(jnp.float32))
    bk = bk.reshape(K, WpC, NC)
    bk = jnp.pad(bk, ((0, 0), (0, WpCp - WpC), (0, 0))).astype(jnp.bfloat16)

    bias_row = jnp.tile(bias.astype(jnp.float32), Wout).reshape(1, NC)

    macs = (B * H * WC * WpCp                                   # width upsample
            + (B // Bblk) * (K * BH) * (Bblk * H) * WpCp        # height + shifts
            + K * B * Hout * WpCp * NC)                         # banded conv
    bytes_accessed = (x_flat.size * 2 + uwk.size * 2 + a_mat.size * 2
                      + bk.size * 2 + bias_row.size * 4
                      + B * Hout * NC * jnp.dtype(out_dtype).itemsize)

    out_flat = pl.pallas_call(
        _deconv_fused_kernel,
        out_shape=jax.ShapeDtypeStruct((B * Hout, NC), out_dtype),
        grid=(B // Bblk,),
        in_specs=[
            pl.BlockSpec((Bblk * H, WC), lambda g: (g, 0)),
            pl.BlockSpec((WC, WpCp), lambda g: (0, 0)),
            pl.BlockSpec((K * BH, Bblk * H), lambda g: (0, 0)),
            pl.BlockSpec((K, WpCp, NC), lambda g: (0, 0, 0)),
            pl.BlockSpec((1, NC), lambda g: (0, 0)),
        ],
        out_specs=pl.BlockSpec((BH, NC), lambda g: (g, 0)),
        compiler_params=pltpu.CompilerParams(
            dimension_semantics=("parallel",),
            vmem_limit_bytes=48 * 1024 * 1024),
        cost_estimate=pl.CostEstimate(flops=2 * macs, transcendentals=0,
                                      bytes_accessed=bytes_accessed),
    )(x_flat, uwk, a_mat, bk, bias_row)

    out = out_flat.reshape(B, Hout, Wout, Cout)
    if channels_last:
        return out                               # avoids the extra HBM round trip
    return out.transpose(0, 3, 1, 2)             # NCHW to match the PyTorch module


def deconv_reference(weight, bias, x, *, padding=0):
    """Pure-JAX f32 reference (same align_corners=True semantics) for checking."""
    B, Cin, H, W = x.shape
    uh = _interp_matrix(H, 2 * H)
    uw = _interp_matrix(W, 2 * W)
    up = jnp.einsum('oh,bchw->bcow', uh, x)
    up = jnp.einsum('vw,bcow->bcov', uw, up)
    out = jax.lax.conv_general_dilated(
        up, weight, window_strides=(1, 1),
        padding=[(padding, padding), (padding, padding)],
        dimension_numbers=('NCHW', 'OIHW', 'NCHW'))
    return out + bias[None, :, None, None]


# ----------------------------------- main ------------------------------------
if __name__ == "__main__":
    B, Cin, Cout, H, W = 2, 16, 16, 16, 16
    kernel_size, padding = 3, 1       # deconv(ch, ch, kernel_size=3, padding=1)

    key = jax.random.PRNGKey(0)
    kw, kb, kx = jax.random.split(key, 3)
    fan_in = Cin * kernel_size * kernel_size
    weight = jax.random.normal(kw, (Cout, Cin, kernel_size, kernel_size),
                               jnp.float32) / math.sqrt(fan_in)
    bias = 0.01 * jax.random.normal(kb, (Cout,), jnp.float32)
    x = jax.random.normal(kx, (B, Cin, H, W), jnp.float32)

    fwd = jax.jit(partial(deconv_forward, kernel_size=kernel_size, padding=padding))
    out = jax.block_until_ready(fwd(weight, bias, x))

    Hout = 2 * H + 2 * padding - (kernel_size - 1)
    Wout = 2 * W + 2 * padding - (kernel_size - 1)
    assert out.shape == (B, Cout, Hout, Wout), out.shape
    assert bool(jnp.isfinite(out).all())

    # Loose tolerance: MXU operands are bf16 (f32 accumulation), reference is f32.
    ref = deconv_reference(weight, bias, x, padding=padding)
    err = float(jnp.max(jnp.abs(out - ref)))
    assert err < 1e-1, f"max abs error vs reference: {err}"
    print("KERNEL_OK")
</pallas_src>

<mosaic_0001>
module attributes {stable_mosaic.version = 11 : i64} {
  func.func private @main(%arg0: i32) attributes {dimension_semantics = [#tpu.dimension_semantics<core_parallel>], iteration_bounds = array<i64: 2>, tpu.core_type = #tpu.core_type<sc_scalar_subcore>, window_params = []} {
    return
  }
}

module attributes {stable_mosaic.version = 11 : i64} {
  func.func private @main(%arg0: i32) attributes {dimension_semantics = [#tpu.dimension_semantics<core_parallel>], iteration_bounds = array<i64: 2>, tpu.core_type = #tpu.core_type<sc_scalar_subcore>, window_params = []} {
    return
  }
}

module attributes {stable_mosaic.version = 11 : i64} {
  func.func @_deconv_fused_kernel(%arg0: i32, %arg1: memref<32x256xbf16, #tpu.memory_space<vmem>>, %arg2: memref<256x640xbf16, #tpu.memory_space<vmem>>, %arg3: memref<192x32xbf16, #tpu.memory_space<vmem>>, %arg4: memref<3x640x512xbf16, #tpu.memory_space<vmem>>, %arg5: memref<1x512xf32, #tpu.memory_space<vmem>>, %arg6: memref<64x512xf32, #tpu.memory_space<vmem>>) attributes {dimension_semantics = [#tpu.dimension_semantics<parallel>], iteration_bounds = array<i64: 1>, scalar_prefetch = 0 : i64, scratch_operands = 0 : i64, tpu.core_type = #tpu.core_type<tc>, window_params = [{transform_indices = @transform_0, window_bounds = array<i64: 32, 256>}, {pipeline_mode = #tpu.pipeline_mode<synchronous>, transform_indices = @transform_1, window_bounds = array<i64: 256, 640>}, {pipeline_mode = #tpu.pipeline_mode<synchronous>, transform_indices = @transform_2, window_bounds = array<i64: 192, 32>}, {pipeline_mode = #tpu.pipeline_mode<synchronous>, transform_indices = @transform_3, window_bounds = array<i64: 3, 640, 512>}, {pipeline_mode = #tpu.pipeline_mode<synchronous>, transform_indices = @transform_4, window_bounds = array<i64: 1, 512>}, {transform_indices = @transform_5, window_bounds = array<i64: 64, 512>}]} {
    %c0 = arith.constant 0 : index
    %c0_0 = arith.constant 0 : index
    %0 = vector.load %arg1[%c0, %c0_0] : memref<32x256xbf16, #tpu.memory_space<vmem>>, vector<32x256xbf16>
    %c0_1 = arith.constant 0 : index
    %c0_2 = arith.constant 0 : index
    %1 = vector.load %arg2[%c0_1, %c0_2] : memref<256x640xbf16, #tpu.memory_space<vmem>>, vector<256x640xbf16>
    %cst = arith.constant dense<0.000000e+00> : vector<32x640xf32>
    %2 = tpu.matmul %0, %1, %cst {dimension_numbers = #tpu.dot_dimension_numbers<[1], [0], [0], [1], [0, 0, 1, 1], [], []>} : vector<32x256xbf16>, vector<256x640xbf16>, vector<32x640xf32> -> vector<32x640xf32>
    %c0_3 = arith.constant 0 : index
    %c0_4 = arith.constant 0 : index
    %3 = vector.load %arg3[%c0_3, %c0_4] : memref<192x32xbf16, #tpu.memory_space<vmem>>, vector<192x32xbf16>
    %4 = arith.truncf %2 : vector<32x640xf32> to vector<32x640xbf16>
    %cst_5 = arith.constant dense<0.000000e+00> : vector<192x640xf32>
    %5 = tpu.matmul %3, %4, %cst_5 {dimension_numbers = #tpu.dot_dimension_numbers<[1], [0], [0], [1], [0, 0, 1, 1], [], []>} : vector<192x32xbf16>, vector<32x640xbf16>, vector<192x640xf32> -> vector<192x640xf32>
    %6 = arith.truncf %5 : vector<192x640xf32> to vector<192x640xbf16>
    %7 = vector.extract_strided_slice %6 {offsets = [0, 0], sizes = [64, 640], strides = [1, 1]} : vector<192x640xbf16> to vector<64x640xbf16>
    %c0_6 = arith.constant 0 : index
    %c0_7 = arith.constant 0 : index
    %c0_8 = arith.constant 0 : index
    %8 = vector.load %arg4[%c0_6, %c0_7, %c0_8] : memref<3x640x512xbf16, #tpu.memory_space<vmem>>, vector<1x640x512xbf16>
    %9 = vector.shape_cast %8 : vector<1x640x512xbf16> to vector<640x512xbf16>
    %cst_9 = arith.constant dense<0.000000e+00> : vector<64x512xf32>
    %10 = tpu.matmul %7, %9, %cst_9 {dimension_numbers = #tpu.dot_dimension_numbers<[1], [0], [0], [1], [0, 0, 1, 1], [], []>} : vector<64x640xbf16>, vector<640x512xbf16>, vector<64x512xf32> -> vector<64x512xf32>
    %11 = vector.extract_strided_slice %6 {offsets = [64, 0], sizes = [64, 640], strides = [1, 1]} : vector<192x640xbf16> to vector<64x640xbf16>
    %c1 = arith.constant 1 : index
    %c0_10 = arith.constant 0 : index
    %c0_11 = arith.constant 0 : index
    %12 = vector.load %arg4[%c1, %c0_10, %c0_11] : memref<3x640x512xbf16, #tpu.memory_space<vmem>>, vector<1x640x512xbf16>
    %13 = vector.shape_cast %12 : vector<1x640x512xbf16> to vector<640x512xbf16>
    %cst_12 = arith.constant dense<0.000000e+00> : vector<64x512xf32>
    %14 = tpu.matmul %11, %13, %cst_12 {dimension_numbers = #tpu.dot_dimension_numbers<[1], [0], [0], [1], [0, 0, 1, 1], [], []>} : vector<64x640xbf16>, vector<640x512xbf16>, vector<64x512xf32> -> vector<64x512xf32>
    %15 = arith.addf %10, %14 : vector<64x512xf32>
    %16 = vector.extract_strided_slice %6 {offsets = [128, 0], sizes = [64, 640], strides = [1, 1]} : vector<192x640xbf16> to vector<64x640xbf16>
    %c2 = arith.constant 2 : index
    %c0_13 = arith.constant 0 : index
    %c0_14 = arith.constant 0 : index
    %17 = vector.load %arg4[%c2, %c0_13, %c0_14] : memref<3x640x512xbf16, #tpu.memory_space<vmem>>, vector<1x640x512xbf16>
    %18 = vector.shape_cast %17 : vector<1x640x512xbf16> to vector<640x512xbf16>
    %cst_15 = arith.constant dense<0.000000e+00> : vector<64x512xf32>
    %19 = tpu.matmul %16, %18, %cst_15 {dimension_numbers = #tpu.dot_dimension_numbers<[1], [0], [0], [1], [0, 0, 1, 1], [], []>} : vector<64x640xbf16>, vector<640x512xbf16>, vector<64x512xf32> -> vector<64x512xf32>
    %20 = arith.addf %15, %19 : vector<64x512xf32>
    %c0_16 = arith.constant 0 : index
    %c0_17 = arith.constant 0 : index
    %21 = vector.load %arg5[%c0_16, %c0_17] : memref<1x512xf32, #tpu.memory_space<vmem>>, vector<1x512xf32>
    %22 = vector.broadcast %21 : vector<1x512xf32> to vector<64x512xf32>
    %23 = arith.addf %20, %22 : vector<64x512xf32>
    %c0_18 = arith.constant 0 : index
    %c0_19 = arith.constant 0 : index
    %24 = vector.load %arg6[%c0_18, %c0_19] : memref<64x512xf32, #tpu.memory_space<vmem>>, vector<64x512xf32>
    tpu.vector_store %arg6[%c0_18, %c0_19], %23 {strides = array<i32>} : memref<64x512xf32, #tpu.memory_space<vmem>>, vector<64x512xf32>,
    return
  }
  func.func @transform_0(%arg0: i32) -> (i32, i32) {
    %c0_i32 = arith.constant 0 : i32
    %c0_i32_0 = arith.constant 0 : i32
    return %arg0, %c0_i32 : i32, i32
  }
  func.func @transform_1(%arg0: i32) -> (i32, i32) {
    %c0_i32 = arith.constant 0 : i32
    %c0_i32_0 = arith.constant 0 : i32
    %c0_i32_1 = arith.constant 0 : i32
    return %c0_i32, %c0_i32_0 : i32, i32
  }
  func.func @transform_2(%arg0: i32) -> (i32, i32) {
    %c0_i32 = arith.constant 0 : i32
    %c0_i32_0 = arith.constant 0 : i32
    %c0_i32_1 = arith.constant 0 : i32
    return %c0_i32, %c0_i32_0 : i32, i32
  }
  func.func @transform_3(%arg0: i32) -> (i32, i32, i32) {
    %c0_i32 = arith.constant 0 : i32
    %c0_i32_0 = arith.constant 0 : i32
    %c0_i32_1 = arith.constant 0 : i32
    %c0_i32_2 = arith.constant 0 : i32
    return %c0_i32, %c0_i32_0, %c0_i32_1 : i32, i32, i32
  }
  func.func @transform_4(%arg0: i32) -> (i32, i32) {
    %c0_i32 = arith.constant 0 : i32
    %c0_i32_0 = arith.constant 0 : i32
    %c0_i32_1 = arith.constant 0 : i32
    return %c0_i32, %c0_i32_0 : i32, i32
  }
  func.func @transform_5(%arg0: i32) -> (i32, i32) {
    %c0_i32 = arith.constant 0 : i32
    %c0_i32_0 = arith.constant 0 : i32
    return %arg0, %c0_i32 : i32, i32
  }
}

</mosaic_0001>

<bundles_post_ra>
// kernel: tile.8
= control target key start
LH: loop header
LB: loop body
LE: loop exit
PB: predicated region body
PF: predicated region fallthrough
CT: control target
= control target key end

     0   :  { %s40_s0 = inlined_call_operand.vmem [shape: f32[16], index: 0, kind: input, shape index: {}]   ;;  %s41_s1 = inlined_call_operand.vmem [shape: f32[32,16], index: 1, kind: output, shape index: {}]  }
   0x1   :  { %v4_v0 = vld [vmem:[%s40_s0] ss:$0 sm:$0xff] }
   0x2   :  { %5 = vst [vmem:[%s41_s1] sm:$0xff] %v4_v0  ;;  %12 = vst [vmem:[%s41_s1 + $0x8] sm:$0xff] %v4_v0 }
   0x3   :  { %13 = vst [vmem:[%s41_s1 + $0x10] sm:$0xff] %v4_v0  ;;  %14 = vst [vmem:[%s41_s1 + $0x18] sm:$0xff] %v4_v0 }

// kernel: tile.9
= control target key start
LH: loop header
LB: loop body
LE: loop exit
PB: predicated region body
PF: predicated region fallthrough
CT: control target
= control target key end

     0   :  { %s94_s8 = smov 112   ;;  %s95_s11 = smov 80   ;;  %vm3_vm0 = vcmask 130048   ;;  %vm9_vm1 = vcmask 1048448   ;;  %vm15_vm2 = vcmask 917248   ;;  %vm21_vm3 = vcmask 786048   ;;  %s147_s0 = inlined_call_operand.vmem [shape: f32[32,16], index: 0, kind: input, shape index: {}]   ;;  %s148_s1 = inlined_call_operand.vmem [shape: f32[1,512], index: 1, kind: output, shape index: {}]  }
   0x1   :  { %v77_v0 = vld [vmem:[%s147_s0 + $0x7] ss:$8 sm:$0xf]   ;;  %v79_v1 = vld [vmem:[%s147_s0 + $0x5] ss:$8 sm:$0xf]  }
   0x2   :  { %7 = vrot.lane.b32.xlu0 %v77_v0, %s94_s8  ;;  %19 = vrot.lane.b32.xlu1 %v79_v1, %s95_s11  ;;  %v78_v2 = vld [vmem:[%s147_s0 + $0x6] ss:$8 sm:$0xf]   ;;  %v80_v3 = vld [vmem:[%s147_s0 + $0x4] ss:$8 sm:$0xf]  }
   0x3   :  { %s96_s16 = smov 96   ;;  %v2_v4 = vld [vmem:[%s147_s0] ss:$8 sm:$0xf]   ;;  %s97_s19 = smov 64   ;;  %vm27_vm4 = vcmask 654848  }
   0x4   :  { %v81_v5 = vld [vmem:[%s147_s0 + $0x3] ss:$8 sm:$0xf]   ;;  %4 = vst.msk [vmem:[#allocation0] ss:$8 sm:$0xf] %vm3_vm0, %v2_v4  }
   0x5   :  { %v82_v6 = vld [vmem:[%s147_s0 + $0x2] ss:$8 sm:$0xf]   ;;  %s98_s24 = smov 48   ;;  %s99_s25 = smov 32   ;;  %vm33_vm5 = vcmask 523648  }
   0x6   :  { %13 = vrot.lane.b32.xlu0 %v78_v2, %s96_s16  ;;  %25 = vrot.lane.b32.xlu1 %v80_v3, %s97_s19  ;;  %v83_v7 = vld [vmem:[%s147_s0 + $0x1] ss:$8 sm:$0xf]   ;;  %s100_s0 = smov 16   ;;  %vm39_vm6 = vcmask 392448   ;;  %vm45_vm7 = vcmask 261248  }
   0xa   :  { %31 = vrot.lane.b32.xlu0 %v81_v5, %s98_s24  ;;  %37 = vrot.lane.b32.xlu1 %v82_v6, %s99_s25 }
   0xe   :  { %43 = vrot.lane.b32.xlu0 %v83_v7, %s100_s0 }
  0x74   :  { %v8_v8 = vpop.permute.xlu0 %7   ;;  %v20_v9 = vpop.permute.xlu1 %19  }
  0x75   :  { %10 = vst.msk [vmem:[#allocation0] ss:$8 sm:$0xf] %vm9_vm1, %v8_v8  }
  0x78   :  { %v14_v10 = vpop.permute.xlu0 %13   ;;  %v26_v11 = vpop.permute.xlu1 %25  }
  0x79   :  { %16 = vst.msk [vmem:[#allocation0] ss:$8 sm:$0xf] %vm15_vm2, %v14_v10  }
  0x7a   :  { %22 = vst.msk [vmem:[#allocation0] ss:$8 sm:$0xf] %vm21_vm3, %v20_v9  }
  0x7b   :  { %28 = vst.msk [vmem:[#allocation0] ss:$8 sm:$0xf] %vm27_vm4, %v26_v11  }
  0x7c   :  { %v32_v12 = vpop.permute.xlu0 %31   ;;  %v38_v13 = vpop.permute.xlu1 %37  }
  0x7d   :  { %34 = vst.msk [vmem:[#allocation0] ss:$8 sm:$0xf] %vm33_vm5, %v32_v12  }
  0x7e   :  { %40 = vst.msk [vmem:[#allocation0] ss:$8 sm:$0xf] %vm39_vm6, %v38_v13  }
  0x80   :  { %v44_v14 = vpop.permute.xlu0 %43  }
  0x81   :  { %46 = vst.msk [vmem:[#allocation0] ss:$8 sm:$0xf] %vm45_vm7, %v44_v14  }
  0x88   :  { %v51_v15 = vld [vmem:[#allocation0] sm:$0x1]  ;;  %v56_v16 = vld [vmem:[#allocation0 + $0x8] sm:$0x1]  ;;  %v62_v17 = vld [vmem:[#allocation0 + $0x10] sm:$0x1] }
  0x89   :  { %54 = vst [vmem:[%s148_s1] sm:$0x1] %v51_v15  ;;  %84 = vst [vmem:[%s148_s1 + $0x1] sm:$0x1] %v56_v16  ;;  %v69_v18 = vld [vmem:[#allocation0 + $0x18] sm:$0x1] }
  0x8a   :  { %85 = vst [vmem:[%s148_s1 + $0x2] sm:$0x1] %v62_v17  ;;  %86 = vst [vmem:[%s148_s1 + $0x3] sm:$0x1] %v69_v18 }

// kernel: deconv_forward.1
= control target key start
LH: loop header
LB: loop body
LE: loop exit
PB: predicated region body
PF: predicated region fallthrough
CT: control target
= control target key end

     0   :  { %vm806_vm0 = vcmask 261120   ;;  %s10517_s1 = inlined_call_operand.vmem [shape: bf16[256,640], index: 1, kind: input, shape index: {}]   ;;  %s10518_s0 = inlined_call_operand.vmem [shape: bf16[32,256], index: 0, kind: input, shape index: {}]   ;;  %s10519_s2 = inlined_call_operand.vmem [shape: bf16[192,32], index: 2, kind: input, shape index: {}]   ;;  %s10520_s3 = inlined_call_operand.vmem [shape: bf16[3,640,512], index: 3, kind: input, shape index: {}]   ;;  %s10521_s4 = inlined_call_operand.vmem [shape: f32[1,512], index: 4, kind: input, shape index: {}]   ;;  %s10522_s5 = inlined_call_operand.vmem [shape: f32[64,512], index: 5, kind: output, shape index: {}]  }
   0x1   :  { %v6663_v0 = vld [vmem:[%s10517_s1 + $0x11c] ss:$20 sps:$4 sm:$0xff]   ;;  %v6665_v1 = vld [vmem:[%s10517_s1 + $0x124] ss:$20 sps:$4 sm:$0xff]   ;;  %v6668_v3 = vld [vmem:[%s10517_s1 + $0x120] ss:$20 sps:$4 sm:$0xff]  }
   0x2   :  { %557 = vmatprep.subr.bf16.mxu0 %v6663_v0  ;;  %v6667_v2 = vld [vmem:[%s10517_s1 + $0x118] ss:$20 sps:$4 sm:$0xff]   ;;  %610 = vmatprep.subr.bf16.mxu1 %v6665_v1  ;;  %v6669_v4 = vld [vmem:[%s10517_s1 + $0xf4] ss:$20 sps:$4 sm:$0xff]   ;;  %v6671_v5 = vld [vmem:[%s10517_s1 + $0xfc] ss:$20 sps:$4 sm:$0xff]  }
   0x3   :  { %558 = vmatpush1.bf16.msra.mxu0 %v6667_v2  ;;  %611 = vmatpush1.bf16.msra.mxu1 %v6668_v3  ;;  %v6673_v6 = vld [vmem:[%s10517_s1 + $0xf0] ss:$20 sps:$4 sm:$0xff]   ;;  %v6674_v7 = vld [vmem:[%s10517_s1 + $0xf8] ss:$20 sps:$4 sm:$0xff]   ;;  %v6677_v9 = vld [vmem:[%s10517_s1 + $0xd4] ss:$20 sps:$4 sm:$0xff]  }
   0x4   :  { %559 = vmatprep.subr.bf16.mxu0 %v6669_v4  ;;  %612 = vmatprep.subr.bf16.mxu1 %v6671_v5  ;;  %v6675_v8 = vld [vmem:[%s10517_s1 + $0xcc] ss:$20 sps:$4 sm:$0xff]   ;;  %v6679_v10 = vld [vmem:[%s10517_s1 + $0xc8] ss:$20 sps:$4 sm:$0xff]   ;;  %v6680_v11 = vld [vmem:[%s10517_s1 + $0xd0] ss:$20 sps:$4 sm:$0xff]  }
   0x5   :  { %v6681_v12 = vld [vmem:[%s10517_s1 + $0xa4] ss:$20 sps:$4 sm:$0xff]   ;;  %v6683_v13 = vld [vmem:[%s10517_s1 + $0xac] ss:$20 sps:$4 sm:$0xff]   ;;  %v6686_v15 = vld [vmem:[%s10517_s1 + $0xa8] ss:$20 sps:$4 sm:$0xff]  }
   0x6   :  { %v6685_v14 = vld [vmem:[%s10517_s1 + $0xa0] ss:$20 sps:$4 sm:$0xff]   ;;  %v6687_v16 = vld [vmem:[%s10517_s1 + $0x7c] ss:$20 sps:$4 sm:$0xff]   ;;  %v6689_v17 = vld [vmem:[%s10517_s1 + $0x84] ss:$20 sps:$4 sm:$0xff]  }
   0x7   :  { %560 = vmatpush1.bf16.msra.mxu0 %v6673_v6  ;;  %613 = vmatpush1.bf16.msra.mxu1 %v6674_v7  ;;  %v6691_v18 = vld [vmem:[%s10517_s1 + $0x78] ss:$20 sps:$4 sm:$0xff]   ;;  %v6692_v19 = vld [vmem:[%s10517_s1 + $0x80] ss:$20 sps:$4 sm:$0xff]   ;;  %v6695_v21 = vld [vmem:[%s10517_s1 + $0x5c] ss:$20 sps:$4 sm:$0xff]  }
   0x8   :  { %561 = vmatprep.subr.bf16.mxu0 %v6675_v8  ;;  %614 = vmatprep.subr.bf16.mxu1 %v6677_v9  ;;  %v6693_v20 = vld [vmem:[%s10517_s1 + $0x54] ss:$20 sps:$4 sm:$0xff]   ;;  %v6697_v22 = vld [vmem:[%s10517_s1 + $0x50] ss:$20 sps:$4 sm:$0xff]   ;;  %v6698_v23 = vld [vmem:[%s10517_s1 + $0x58] ss:$20 sps:$4 sm:$0xff]  }
   0x9   :  { %v6699_v24 = vld [vmem:[%s10517_s1 + $0x2c] ss:$20 sps:$4 sm:$0xff]   ;;  %v6701_v25 = vld [vmem:[%s10517_s1 + $0x34] ss:$20 sps:$4 sm:$0xff]   ;;  %v6704_v27 = vld [vmem:[%s10517_s1 + $0x30] ss:$20 sps:$4 sm:$0xff]  }
   0xa   :  { %v6703_v26 = vld [vmem:[%s10517_s1 + $0x28] ss:$20 sps:$4 sm:$0xff]   ;;  %v6705_v28 = vld [vmem:[%s10517_s1 + $0x4] ss:$20 sps:$4 sm:$0xff]   ;;  %v6707_v29 = vld [vmem:[%s10517_s1 + $0xc] ss:$20 sps:$4 sm:$0xff]  }
   0xb   :  { %562 = vmatpush1.bf16.msra.mxu0 %v6679_v10  ;;  %615 = vmatpush1.bf16.msra.mxu1 %v6680_v11  ;;  %v6709_v30 = vld [vmem:[%s10517_s1] ss:$20 sps:$4 sm:$0xff]   ;;  %v6710_v31 = vld [vmem:[%s10517_s1 + $0x8] ss:$20 sps:$4 sm:$0xff]   ;;  %v6713_v33 = vld [vmem:[%s10517_s1 + $0x264] ss:$20 sps:$4 sm:$0xff]  }
   0xc   :  { %563 = vmatprep.subr.bf16.mxu0 %v6681_v12  ;;  %616 = vmatprep.subr.bf16.mxu1 %v6683_v13  ;;  %v6711_v32 = vld [vmem:[%s10517_s1 + $0x25c] ss:$20 sps:$4 sm:$0xff]   ;;  %v6715_v34 = vld [vmem:[%s10517_s1 + $0x258] ss:$20 sps:$4 sm:$0xff]   ;;  %v6716_v35 = vld [vmem:[%s10517_s1 + $0x260] ss:$20 sps:$4 sm:$0xff]  }
   0xd   :  { %v6717_v36 = vld [vmem:[%s10517_s1 + $0x234] ss:$20 sps:$4 sm:$0xff]   ;;  %v6719_v37 = vld [vmem:[%s10517_s1 + $0x23c] ss:$20 sps:$4 sm:$0xff]   ;;  %v6722_v39 = vld [vmem:[%s10517_s1 + $0x238] ss:$20 sps:$4 sm:$0xff]  }
   0xe   :  { %v6721_v38 = vld [vmem:[%s10517_s1 + $0x230] ss:$20 sps:$4 sm:$0xff]   ;;  %v6723_v40 = vld [vmem:[%s10517_s1 + $0x20c] ss:$20 sps:$4 sm:$0xff]   ;;  %v6725_v41 = vld [vmem:[%s10517_s1 + $0x214] ss:$20 sps:$4 sm:$0xff]  }
   0xf   :  { %564 = vmatpush1.bf16.msra.mxu0 %v6685_v14  ;;  %617 = vmatpush1.bf16.msra.mxu1 %v6686_v15  ;;  %v6727_v42 = vld [vmem:[%s10517_s1 + $0x208] ss:$20 sps:$4 sm:$0xff]   ;;  %v6728_v43 = vld [vmem:[%s10517_s1 + $0x210] ss:$20 sps:$4 sm:$0xff]   ;;  %v6731_v45 = vld [vmem:[%s10517_s1 + $0x1ec] ss:$20 sps:$4 sm:$0xff]  }
  0x10   :  { %565 = vmatprep.subr.bf16.mxu0 %v6687_v16  ;;  %618 = vmatprep.subr.bf16.mxu1 %v6689_v17  ;;  %v6729_v44 = vld [vmem:[%s10517_s1 + $0x1e4] ss:$20 sps:$4 sm:$0xff]   ;;  %v6733_v46 = vld [vmem:[%s10517_s1 + $0x1e0] ss:$20 sps:$4 sm:$0xff]   ;;  %v6734_v47 = vld [vmem:[%s10517_s1 + $0x1e8] ss:$20 sps:$4 sm:$0xff]  }
  0x11   :  { %v6759_v48 = vld [vmem:[%s10518_s0 + $0x4] ss:$8 sps:$4 sm:$0xff]   ;;  %v6735_v49 = vld [vmem:[%s10517_s1 + $0x1bc] ss:$20 sps:$4 sm:$0xff]   ;;  %v6740_v52 = vld [vmem:[%s10517_s1 + $0x1c0] ss:$20 sps:$4 sm:$0xff]  }
  0x12   :  { %v6737_v50 = vld [vmem:[%s10517_s1 + $0x1c4] ss:$20 sps:$4 sm:$0xff]   ;;  %589 = vmatprep.mubr.bf16.mxu0 %v6759_v48  ;;  %642 = vmatprep.mubr.bf16.mxu1 %v6759_v48  ;;  %v6741_v53 = vld [vmem:[%s10517_s1 + $0x194] ss:$20 sps:$4 sm:$0xff]   ;;  %v6743_v54 = vld [vmem:[%s10517_s1 + $0x19c] ss:$20 sps:$4 sm:$0xff]  }
  0x13   :  { %566 = vmatpush1.bf16.msra.mxu0 %v6691_v18  ;;  %619 = vmatpush1.bf16.msra.mxu1 %v6692_v19  ;;  %v6739_v51 = vld [vmem:[%s10517_s1 + $0x1b8] ss:$20 sps:$4 sm:$0xff]   ;;  %v6745_v55 = vld [vmem:[%s10517_s1 + $0x190] ss:$20 sps:$4 sm:$0xff]   ;;  %v6749_v58 = vld [vmem:[%s10517_s1 + $0x174] ss:$20 sps:$4 sm:$0xff]  }
  0x14   :  { %567 = vmatprep.subr.bf16.mxu0 %v6693_v20  ;;  %620 = vmatprep.subr.bf16.mxu1 %v6695_v21  ;;  %v6746_v56 = vld [vmem:[%s10517_s1 + $0x198] ss:$20 sps:$4 sm:$0xff]   ;;  %v6751_v59 = vld [vmem:[%s10517_s1 + $0x168] ss:$20 sps:$4 sm:$0xff]   ;;  %v6752_v60 = vld [vmem:[%s10517_s1 + $0x170] ss:$20 sps:$4 sm:$0xff]  }
  0x15   :  { %v6747_v57 = vld [vmem:[%s10517_s1 + $0x16c] ss:$20 sps:$4 sm:$0xff]   ;;  %v6753_v61 = vld [vmem:[%s10517_s1 + $0x144] ss:$20 sps:$4 sm:$0xff]   ;;  %v6758_v0 = vld [vmem:[%s10517_s1 + $0x148] ss:$20 sps:$4 sm:$0xff]  }
  0x16   :  { %v6755_v62 = vld [vmem:[%s10517_s1 + $0x14c] ss:$20 sps:$4 sm:$0xff]   ;;  %v6765_v1 = vld [vmem:[%s10517_s1 + $0x268] ss:$20 sps:$4 sm:$0xff]   ;;  %v6764_v8 = vld [vmem:[%s10518_s0 + $0x10] ss:$8 sps:$4 sm:$0xff]  }
  0x17   :  { %568 = vmatpush1.bf16.msra.mxu0 %v6697_v22  ;;  %621 = vmatpush1.bf16.msra.mxu1 %v6698_v23  ;;  %v6757_v63 = vld [vmem:[%s10517_s1 + $0x140] ss:$20 sps:$4 sm:$0xff]   ;;  %v6766_v4 = vld [vmem:[%s10517_s1 + $0x128] ss:$20 sps:$4 sm:$0xff]   ;;  %v6769_v7 = vld [vmem:[%s10517_s1 + $0x218] ss:$20 sps:$4 sm:$0xff]  }
  0x18   :  { %569 = vmatprep.subr.bf16.mxu0 %v6699_v24  ;;  %622 = vmatprep.subr.bf16.mxu1 %v6701_v25  ;;  %v6761_v2 = vld [vmem:[%s10518_s0] ss:$8 sps:$4 sm:$0xff]   ;;  %v6762_v3 = vld [vmem:[%s10518_s0 + $0x14] ss:$8 sps:$4 sm:$0xff]   ;;  %v6770_v9 = vld [vmem:[%s10517_s1 + $0xd8] ss:$20 sps:$4 sm:$0xff]  }
  0x19   :  { %v6767_v5 = vld [vmem:[%s10517_s1 + $0x240] ss:$20 sps:$4 sm:$0xff]   ;;  %v6771_v10 = vld [vmem:[%s10517_s1 + $0x1f0] ss:$20 sps:$4 sm:$0xff]   ;;  %v6773_v12 = vld [vmem:[%s10517_s1 + $0x1c8] ss:$20 sps:$4 sm:$0xff]  }
  0x1a   :  { %v6768_v6 = vld [vmem:[%s10517_s1 + $0x100] ss:$20 sps:$4 sm:$0xff]   ;;  %v6772_v11 = vld [vmem:[%s10517_s1 + $0xb0] ss:$20 sps:$4 sm:$0xff]   ;;  %v6774_v13 = vld [vmem:[%s10517_s1 + $0x88] ss:$20 sps:$4 sm:$0xff]  }
  0x1b   :  { %570 = vmatpush1.bf16.msra.mxu0 %v6703_v26  ;;  %623 = vmatpush1.bf16.msra.mxu1 %v6704_v27  ;;  %v6775_v14 = vld [vmem:[%s10517_s1 + $0x1a0] ss:$20 sps:$4 sm:$0xff]   ;;  %v6777_v16 = vld [vmem:[%s10517_s1 + $0x178] ss:$20 sps:$4 sm:$0xff]   ;;  %v6779_v18 = vld [vmem:[%s10517_s1 + $0x150] ss:$20 sps:$4 sm:$0xff]  }
  0x1c   :  { %571 = vmatprep.subr.bf16.mxu0 %v6705_v28  ;;  %624 = vmatprep.subr.bf16.mxu1 %v6707_v29  ;;  %v6776_v15 = vld [vmem:[%s10517_s1 + $0x60] ss:$20 sps:$4 sm:$0xff]   ;;  %v6778_v17 = vld [vmem:[%s10517_s1 + $0x38] ss:$20 sps:$4 sm:$0xff]   ;;  %v6780_v19 = vld [vmem:[%s10517_s1 + $0x10] ss:$20 sps:$4 sm:$0xff]  }
  0x1d   :  { %v10523_v20 = vmov 0  }
  0x1f   :  { %572 = vmatpush1.bf16.msra.mxu0 %v6709_v30  ;;  %625 = vmatpush1.bf16.msra.mxu1 %v6710_v31 }
  0x20   :  { %573 = vmatprep.subr.bf16.mxu0 %v6711_v32  ;;  %626 = vmatprep.subr.bf16.mxu1 %v6713_v33 }
  0x23   :  { %574 = vmatpush2.bf16.msra.mxu0 %v6715_v34  ;;  %627 = vmatpush2.bf16.msra.mxu1 %v6716_v35 }
  0x24   :  { %575 = vmatprep.subr.bf16.mxu0 %v6717_v36  ;;  %628 = vmatprep.subr.bf16.mxu1 %v6719_v37 }
  0x27   :  { %576 = vmatpush2.bf16.msra.mxu0 %v6721_v38  ;;  %629 = vmatpush2.bf16.msra.mxu1 %v6722_v39 }
  0x28   :  { %577 = vmatprep.subr.bf16.mxu0 %v6723_v40  ;;  %630 = vmatprep.subr.bf16.mxu1 %v6725_v41 }
  0x2b   :  { %578 = vmatpush2.bf16.msra.mxu0 %v6727_v42  ;;  %631 = vmatpush2.bf16.msra.mxu1 %v6728_v43 }
  0x2c   :  { %579 = vmatprep.subr.bf16.mxu0 %v6729_v44  ;;  %632 = vmatprep.subr.bf16.mxu1 %v6731_v45  ;;  %v7801_v45 = vld [vmem:[%s10519_s2] sm:$0xff]  }
  0x2f   :  { %580 = vmatpush2.bf16.msra.mxu0 %v6733_v46  ;;  %633 = vmatpush2.bf16.msra.mxu1 %v6734_v47  ;;  %v7812_v46 = vld [vmem:[%s10519_s2 + $0x8] sm:$0xff]  }
  0x30   :  { %581 = vmatprep.subr.bf16.mxu0 %v6735_v49  ;;  %634 = vmatprep.subr.bf16.mxu1 %v6737_v50  ;;  %v6796_v50 = vld [vmem:[%s10520_s3 + $0x5e0] ss:$16 sps:$4 sm:$0xff]  }
  0x33   :  { %582 = vmatpush2.bf16.msra.mxu0 %v6739_v51  ;;  %635 = vmatpush2.bf16.msra.mxu1 %v6740_v52  ;;  %v6798_v51 = vld [vmem:[%s10520_s3 + $0x5e4] ss:$16 sps:$4 sm:$0xff]  }
  0x34   :  { %583 = vmatprep.subr.bf16.mxu0 %v6741_v53  ;;  %636 = vmatprep.subr.bf16.mxu1 %v6743_v54  ;;  %v7829_v52 = vld [vmem:[%s10519_s2 + $0x10] sm:$0xff]  }
  0x37   :  { %584 = vmatpush2.bf16.msra.mxu0 %v6745_v55  ;;  %637 = vmatpush2.bf16.msra.mxu1 %v6746_v56  ;;  %v6804_v55 = vld [vmem:[%s10520_s3 + $0x5c4] ss:$16 sps:$4 sm:$0xff]  }
  0x38   :  { %585 = vmatprep.subr.bf16.mxu0 %v6747_v57  ;;  %638 = vmatprep.subr.bf16.mxu1 %v6749_v58  ;;  %v6802_v57 = vld [vmem:[%s10520_s3 + $0x5c0] ss:$16 sps:$4 sm:$0xff]  }
  0x3b   :  { %586 = vmatpush2.bf16.msra.mxu0 %v6751_v59  ;;  %639 = vmatpush2.bf16.msra.mxu1 %v6752_v60  ;;  %v6810_v59 = vld [vmem:[%s10520_s3 + $0x5a4] ss:$16 sps:$4 sm:$0xff]  }
  0x3c   :  { %587 = vmatprep.subr.bf16.mxu0 %v6753_v61  ;;  %640 = vmatprep.subr.bf16.mxu1 %v6755_v62  ;;  %v6808_v62 = vld [vmem:[%s10520_s3 + $0x5a0] ss:$16 sps:$4 sm:$0xff]  }
  0x3f   :  { %588 = vmatpush2.bf16.msra.mxu0 %v6757_v63  ;;  %641 = vmatpush2.bf16.msra.mxu1 %v6758_v0  ;;  %v7854_v63 = vld [vmem:[%s10519_s2 + $0x18] sm:$0xff]  }
  0x40   :  { %6588 = vmatprep.subr.bf16.mxu0 %v6765_v1 }
  0x42   :  { %590 = vmatmul.mubr.bf16.vlgmr.msra.gmra.mxu0 %v6761_v2  ;;  %643 = vmatmul.mubr.bf16.vlgmr.msra.gmra.mxu1 %v6761_v2 }
  0x43   :  { %599 = vmatprep.mubr.bf16.mxu0 %v6762_v3  ;;  %652 = vmatprep.mubr.bf16.mxu1 %v6762_v3 }
  0x44   :  { %6589 = vmatpush3.bf16.msra.mxu0 %v6766_v4 }
  0x45   :  { %6590 = vmatprep.subr.bf16.mxu0 %v6767_v5  ;;  %v6814_v5 = vld [vmem:[%s10520_s3 + $0x580] ss:$16 sps:$4 sm:$0xff]  }
  0x48   :  { %6591 = vmatpush3.bf16.msra.mxu0 %v6768_v6  ;;  %v6822_v6 = vld [vmem:[%s10520_s3 + $0x564] ss:$16 sps:$4 sm:$0xff]  }
  0x49   :  { %6592 = vmatprep.subr.bf16.mxu0 %v6769_v7 }
  0x4a   :  { %600 = vmatmul.mubr.bf16.gmra.mxu0 %v6764_v8  ;;  %653 = vmatmul.mubr.bf16.gmra.mxu1 %v6764_v8 }
  0x4b   :  { %695 = vmatprep.mubr.bf16.mxu0 %v6759_v48  ;;  %875 = vmatprep.mubr.bf16.mxu1 %v10523_v20 }
  0x4c   :  { %6593 = vmatpush3.bf16.msra.mxu0 %v6770_v9  ;;  %v7879_v9 = vld [vmem:[%s10519_s2 + $0x20] sm:$0xff]  }
  0x4d   :  { %6594 = vmatprep.subr.bf16.mxu0 %v6771_v10  ;;  %v6828_v10 = vld [vmem:[%s10520_s3 + $0x544] ss:$16 sps:$4 sm:$0xff]  }
  0x50   :  { %6595 = vmatpush3.bf16.msra.mxu0 %v6772_v11  ;;  %v6826_v11 = vld [vmem:[%s10520_s3 + $0x540] ss:$16 sps:$4 sm:$0xff]  }
  0x51   :  { %6596 = vmatprep.subr.bf16.mxu0 %v6773_v12  ;;  %v7897_v12 = vld [vmem:[%s10519_s2 + $0x28] sm:$0xff]  }
  0x54   :  { %6597 = vmatpush3.bf16.msra.mxu0 %v6774_v13  ;;  %v7908_v13 = vld [vmem:[%s10519_s2 + $0x30] sm:$0xff]  }
  0x55   :  { %6598 = vmatprep.subr.bf16.mxu0 %v6775_v14  ;;  %v7919_v14 = vld [vmem:[%s10519_s2 + $0x38] sm:$0xff]  }
  0x58   :  { %6599 = vmatpush3.bf16.msra.mxu0 %v6776_v15  ;;  %v7930_v15 = vld [vmem:[%s10519_s2 + $0x40] sm:$0xff]  }
  0x59   :  { %6600 = vmatprep.subr.bf16.mxu0 %v6777_v16  ;;  %v6834_v16 = vld [vmem:[%s10520_s3 + $0x524] ss:$16 sps:$4 sm:$0xff]  }
  0x5c   :  { %6601 = vmatpush3.bf16.msra.mxu0 %v6778_v17  ;;  %v6832_v17 = vld [vmem:[%s10520_s3 + $0x520] ss:$16 sps:$4 sm:$0xff]  }
  0x5d   :  { %6602 = vmatprep.subr.bf16.mxu0 %v6779_v18  ;;  %v7947_v18 = vld [vmem:[%s10519_s2 + $0x48] sm:$0xff]  }
  0x60   :  { %6603 = vmatpush3.bf16.msra.mxu0 %v6780_v19  ;;  %v6840_v19 = vld [vmem:[%s10520_s3 + $0x504] ss:$16 sps:$4 sm:$0xff]  }
  0x63   :  { %696 = vmatmul.mubr.bf16.vlgmr.msra.gmra.mxu0 %v6761_v2 }
  0x64   :  { %703 = vmatprep.mubr.bf16.mxu0 %v6762_v3  ;;  %v6816_v3 = vld [vmem:[%s10520_s3 + $0x584] ss:$16 sps:$4 sm:$0xff]  }
  0x6b   :  { %704 = vmatmul.mubr.bf16.gmra.mxu0 %v6764_v8  ;;  %v6820_v8 = vld [vmem:[%s10520_s3 + $0x560] ss:$16 sps:$4 sm:$0xff]  }
  0x6c   :  { %1028 = vmatprep.mubr.bf16.mxu0 %v10523_v20 }
 0x102   :  { %v591_v21 = vpop.f32.mrf.mxu0  ;;  %v644_v22 = vpop.f32.mrf.mxu1 }
 0x104   :  { %v593_v23 = vpop.f32.mrf.mxu0  ;;  %v646_v24 = vpop.f32.mrf.mxu1 }
 0x106   :  { %v595_v25 = vpop.f32.mrf.mxu0  ;;  %v648_v26 = vpop.f32.mrf.mxu1 }
 0x107   :  { %v738_v43 = vpack.c.bf16 %v648_v26, %v644_v22  ;;  %v736_v44 = vpack.c.bf16 %v595_v25, %v591_v21  ;;  %v6838_v21 = vld [vmem:[%s10520_s3 + $0x500] ss:$16 sps:$4 sm:$0xff]   ;;  %v6846_v22 = vld [vmem:[%s10520_s3 + $0x6e4] ss:$16 sps:$4 sm:$0xff]  }
 0x108   :  { %v597_v27 = vpop.f32.mrf.mxu0  ;;  %v650_v28 = vpop.f32.mrf.mxu1  ;;  %v6852_v25 = vld [vmem:[%s10520_s3 + $0x6c4] ss:$16 sps:$4 sm:$0xff]   ;;  %v6850_v26 = vld [vmem:[%s10520_s3 + $0x6c0] ss:$16 sps:$4 sm:$0xff]  }
 0x109   :  { %v739_v38 = vpack.c.bf16 %v650_v28, %v646_v24  ;;  %v737_v42 = vpack.c.bf16 %v597_v27, %v593_v23  ;;  %v6844_v23 = vld [vmem:[%s10520_s3 + $0x6e0] ss:$16 sps:$4 sm:$0xff]   ;;  %v6858_v27 = vld [vmem:[%s10520_s3 + $0x6a4] ss:$16 sps:$4 sm:$0xff]  }
 0x10a   :  { %v601_v29 = vpop.f32.mrf.mxu0  ;;  %v654_v30 = vpop.f32.mrf.mxu1  ;;  %v7969_v24 = vld [vmem:[%s10519_s2 + $0x50] sm:$0xff]  }
 0x10b   :  { %v6856_v28 = vld [vmem:[%s10520_s3 + $0x6a0] ss:$16 sps:$4 sm:$0xff]  }
 0x10c   :  { %v603_v31 = vpop.f32.mrf.mxu0  ;;  %v656_v32 = vpop.f32.mrf.mxu1 }
 0x10e   :  { %v605_v33 = vpop.f32.mrf.mxu0  ;;  %v658_v34 = vpop.f32.mrf.mxu1 }
 0x10f   :  { %v743_v35 = vpack.c.bf16 %v658_v34, %v654_v30  ;;  %v741_v41 = vpack.c.bf16 %v605_v33, %v601_v29  ;;  %v7989_v29 = vld [vmem:[%s10519_s2 + $0x58] sm:$0xff]   ;;  %v6864_v30 = vld [vmem:[%s10520_s3 + $0x684] ss:$16 sps:$4 sm:$0xff]   ;;  %v6868_v33 = vld [vmem:[%s10520_s3 + $0x660] ss:$16 sps:$4 sm:$0xff]  }
 0x110   :  { %v607_v36 = vpop.f32.mrf.mxu0  ;;  %v660_v37 = vpop.f32.mrf.mxu1  ;;  %v6876_v34 = vld [vmem:[%s10520_s3 + $0x644] ss:$16 sps:$4 sm:$0xff]  }
 0x111   :  { %v742_v39 = vpack.c.bf16 %v607_v36, %v603_v31  ;;  %v744_v40 = vpack.c.bf16 %v660_v37, %v656_v32  ;;  %v6862_v31 = vld [vmem:[%s10520_s3 + $0x680] ss:$16 sps:$4 sm:$0xff]   ;;  %v6870_v32 = vld [vmem:[%s10520_s3 + $0x664] ss:$16 sps:$4 sm:$0xff]  }
 0x112   :  { %v6795_v36 = vld [vmem:[%s10520_s3 + $0x7e4] ss:$16 sps:$4 sm:$0xff]  }
 0x113   :  { %855 = vmatprep.subr.bf16.mxu1 %v742_v39  ;;  %1008 = vmatprep.subr.bf16.mxu0 %v744_v40  ;;  %v6882_v37 = vld [vmem:[%s10520_s3 + $0x624] ss:$16 sps:$4 sm:$0xff]  }
 0x114   :  { %856 = vmatpush1.bf16.msra.mxu1 %v741_v41  ;;  %1009 = vmatpush1.bf16.msra.mxu0 %v743_v35  ;;  %v6888_v39 = vld [vmem:[%s10520_s3 + $0x604] ss:$16 sps:$4 sm:$0xff]   ;;  %v6793_v41 = vld [vmem:[%s10520_s3 + $0x7e0] ss:$16 sps:$4 sm:$0xff]  }
 0x115   :  { %857 = vmatprep.subr.bf16.mxu1 %v737_v42  ;;  %1010 = vmatprep.subr.bf16.mxu0 %v739_v38  ;;  %v6801_v42 = vld [vmem:[%s10520_s3 + $0x7c4] ss:$16 sps:$4 sm:$0xff]  }
 0x118   :  { %858 = vmatpush1.bf16.msra.mxu1 %v736_v44  ;;  %1011 = vmatpush1.bf16.msra.mxu0 %v738_v43  ;;  %v6807_v44 = vld [vmem:[%s10520_s3 + $0x7a4] ss:$16 sps:$4 sm:$0xff]  }
 0x119   :  { %6658 = vmatprep.subr.bf16.mxu1 %v744_v40  ;;  %2459 = vmatprep.subr.bf16.mxu0 %v6798_v51  ;;  %v6886_v40 = vld [vmem:[%s10520_s3 + $0x600] ss:$16 sps:$4 sm:$0xff]  }
 0x11a   :  { %v6823_v51 = vld [vmem:[%s10520_s3 + $0x740] ss:$16 sps:$4 sm:$0xff]  }
 0x11b   :  { %5752 = vmatmul.mubr.msk.bf16.vlgmr.msra.gmra.mxu1 %vm806_vm0, %v7801_v45  ;;  %5764 = vmatmul.mubr.msk.bf16.vlgmr.msra.gmra.mxu0 %vm806_vm0, %v7801_v45 }
 0x11c   :  { %6660 = vmatpush1.bf16.msra.mxu1 %v743_v35  ;;  %885 = vmatprep.mubr.bf16.mxu1 %v10523_v20  ;;  %v6874_v35 = vld [vmem:[%s10520_s3 + $0x640] ss:$16 sps:$4 sm:$0xff]  }
 0x11d   :  { %6659 = vmatprep.subr.bf16.mxu1 %v739_v38  ;;  %1038 = vmatprep.mubr.bf16.mxu0 %v10523_v20  ;;  %v6880_v38 = vld [vmem:[%s10520_s3 + $0x620] ss:$16 sps:$4 sm:$0xff]  }
 0x11e   :  { %2460 = vmatpush1.bf16.msra.mxu0 %v6796_v50  ;;  %v6825_v50 = vld [vmem:[%s10520_s3 + $0x744] ss:$16 sps:$4 sm:$0xff]  }
 0x11f   :  { %2461 = vmatprep.subr.bf16.mxu0 %v6804_v55  ;;  %v6835_v55 = vld [vmem:[%s10520_s3 + $0x700] ss:$16 sps:$4 sm:$0xff]  }
 0x120   :  { %6661 = vmatpush1.bf16.msra.mxu1 %v738_v43  ;;  %v6799_v43 = vld [vmem:[%s10520_s3 + $0x7c0] ss:$16 sps:$4 sm:$0xff]  }
 0x122   :  { %2462 = vmatpush1.bf16.msra.mxu0 %v6802_v57  ;;  %v6841_v57 = vld [vmem:[%s10520_s3 + $0x8e0] ss:$16 sps:$4 sm:$0xff]  }
 0x123   :  { %5753 = vmatmul.mubr.msk.bf16.gmra.mxu1 %vm806_vm0, %v7812_v46  ;;  %5765 = vmatmul.mubr.msk.bf16.gmra.mxu0 %vm806_vm0, %v7812_v46  ;;  %v6604_v47 = vpop.f32.mrf.mxu0 }
 0x124   :  { %895 = vmatprep.mubr.bf16.mxu1 %v10523_v20  ;;  %1048 = vmatprep.mubr.bf16.mxu0 %v10523_v20 }
 0x125   :  { %v6605_v48 = vpop.f32.mrf.mxu0  ;;  %2463 = vmatprep.subr.bf16.mxu0 %v6810_v59  ;;  %v6847_v59 = vld [vmem:[%s10520_s3 + $0x8c0] ss:$16 sps:$4 sm:$0xff]  }
 0x126   :  { %v6606_v49 = vadd.f32 %v6605_v48, %v6604_v47  ;;  %2464 = vmatpush1.bf16.msra.mxu0 %v6808_v62  ;;  %v6811_v47 = vld [vmem:[%s10520_s3 + $0x780] ss:$16 sps:$4 sm:$0xff]   ;;  %v6819_v48 = vld [vmem:[%s10520_s3 + $0x764] ss:$16 sps:$4 sm:$0xff]  }
 0x127   :  { %v6607_v53 = vpop.f32.mrf.mxu0  ;;  %2465 = vmatprep.subr.bf16.mxu0 %v6816_v3  ;;  %v6861_v62 = vld [vmem:[%s10520_s3 + $0x884] ss:$16 sps:$4 sm:$0xff]   ;;  %v6871_v3 = vld [vmem:[%s10520_s3 + $0x840] ss:$16 sps:$4 sm:$0xff]  }
 0x129   :  { %v6608_v54 = vpop.f32.mrf.mxu0 }
 0x12a   :  { %v6609_v56 = vadd.f32 %v6608_v54, %v6607_v53  ;;  %2466 = vmatpush1.bf16.msra.mxu0 %v6814_v5  ;;  %v6829_v53 = vld [vmem:[%s10520_s3 + $0x720] ss:$16 sps:$4 sm:$0xff]   ;;  %v6837_v54 = vld [vmem:[%s10520_s3 + $0x704] ss:$16 sps:$4 sm:$0xff]  }
 0x12b   :  { %5754 = vmatmul.mubr.msk.bf16.gmra.mxu1 %vm806_vm0, %v7829_v52  ;;  %5766 = vmatmul.mubr.msk.bf16.gmra.mxu0 %vm806_vm0, %v7829_v52  ;;  %v6610_v58 = vpop.f32.mrf.mxu0  ;;  %v6877_v5 = vld [vmem:[%s10520_s3 + $0x820] ss:$16 sps:$4 sm:$0xff]  }
 0x12c   :  { %905 = vmatprep.mubr.bf16.mxu1 %v10523_v20  ;;  %1058 = vmatprep.mubr.bf16.mxu0 %v10523_v20  ;;  %v7846_v60 = vpack.c.bf16 %v6609_v56, %v6606_v49  ;;  %v6817_v49 = vld [vmem:[%s10520_s3 + $0x760] ss:$16 sps:$4 sm:$0xff]   ;;  %v6843_v56 = vld [vmem:[%s10520_s3 + $0x8e4] ss:$16 sps:$4 sm:$0xff]  }
 0x12d   :  { %v6611_v61 = vpop.f32.mrf.mxu0  ;;  %2467 = vmatprep.subr.bf16.mxu0 %v6822_v6  ;;  %v6885_v6 = vld [vmem:[%s10520_s3 + $0x804] ss:$16 sps:$4 sm:$0xff]  }
 0x12e   :  { %v6612_v1 = vadd.f32 %v6611_v61, %v6610_v58  ;;  %2468 = vmatpush1.bf16.msra.mxu0 %v6820_v8  ;;  %v6849_v58 = vld [vmem:[%s10520_s3 + $0x8c4] ss:$16 sps:$4 sm:$0xff]   ;;  %v6853_v61 = vld [vmem:[%s10520_s3 + $0x8a0] ss:$16 sps:$4 sm:$0xff]  }
 0x12f   :  { %v6613_v0 = vpop.f32.mrf.mxu0  ;;  %2469 = vmatprep.subr.bf16.mxu0 %v6828_v10  ;;  %v6883_v8 = vld [vmem:[%s10520_s3 + $0x800] ss:$16 sps:$4 sm:$0xff]  }
 0x131   :  { %v6614_v2 = vpop.f32.mrf.mxu0 }
 0x132   :  { %v6615_v4 = vadd.f32 %v6614_v2, %v6613_v0  ;;  %2470 = vmatpush1.bf16.msra.mxu0 %v6826_v11  ;;  %v6867_v0 = vld [vmem:[%s10520_s3 + $0x864] ss:$16 sps:$4 sm:$0xff]  }
 0x133   :  { %5755 = vmatmul.mubr.msk.bf16.gmra.mxu1 %vm806_vm0, %v7854_v63  ;;  %5767 = vmatmul.mubr.msk.bf16.gmra.mxu0 %vm806_vm0, %v7854_v63  ;;  %v6873_v2 = vld [vmem:[%s10520_s3 + $0x844] ss:$16 sps:$4 sm:$0xff]  }
 0x134   :  { %915 = vmatprep.mubr.bf16.mxu1 %v10523_v20  ;;  %1068 = vmatprep.mubr.bf16.mxu0 %v10523_v20  ;;  %v7871_v7 = vpack.c.bf16 %v6615_v4, %v6612_v1  ;;  %v6865_v1 = vld [vmem:[%s10520_s3 + $0x860] ss:$16 sps:$4 sm:$0xff]   ;;  %v6879_v4 = vld [vmem:[%s10520_s3 + $0x824] ss:$16 sps:$4 sm:$0xff]  }
 0x135   :  { %2471 = vmatprep.subr.bf16.mxu0 %v6834_v16 }
 0x136   :  { %6630 = vmatprep.subr.bf16.mxu1 %v7871_v7  ;;  %2472 = vmatpush1.bf16.msra.mxu0 %v6832_v17 }
 0x137   :  { %2473 = vmatprep.subr.bf16.mxu0 %v6840_v19 }
 0x13a   :  { %2474 = vmatpush1.bf16.msra.mxu0 %v6838_v21 }
 0x13b   :  { %5756 = vmatmul.mubr.msk.bf16.gmra.mxu1 %vm806_vm0, %v7879_v9  ;;  %5768 = vmatmul.mubr.msk.bf16.gmra.mxu0 %vm806_vm0, %v7879_v9 }
 0x13c   :  { %925 = vmatprep.mubr.bf16.mxu1 %v10523_v20  ;;  %1078 = vmatprep.mubr.bf16.mxu0 %v10523_v20 }
 0x13d   :  { %2475 = vmatprep.subr.bf16.mxu0 %v6846_v22 }
 0x13e   :  { %2476 = vmatpush2.bf16.msra.mxu0 %v6844_v23 }
 0x13f   :  { %2477 = vmatprep.subr.bf16.mxu0 %v6852_v25 }
 0x142   :  { %2478 = vmatpush2.bf16.msra.mxu0 %v6850_v26 }
 0x143   :  { %5757 = vmatmul.mubr.msk.bf16.gmra.mxu1 %vm806_vm0, %v7897_v12  ;;  %5769 = vmatmul.mubr.msk.bf16.gmra.mxu0 %vm806_vm0, %v7897_v12 }
 0x144   :  { %935 = vmatprep.mubr.bf16.mxu1 %v10523_v20  ;;  %1088 = vmatprep.mubr.bf16.mxu0 %v10523_v20 }
 0x145   :  { %2479 = vmatprep.subr.bf16.mxu0 %v6858_v27 }
 0x146   :  { %2480 = vmatpush2.bf16.msra.mxu0 %v6856_v28 }
 0x147   :  { %2481 = vmatprep.subr.bf16.mxu0 %v6864_v30 }
 0x14a   :  { %2482 = vmatpush2.bf16.msra.mxu0 %v6862_v31 }
 0x14b   :  { %5758 = vmatmul.mubr.msk.bf16.gmra.mxu1 %vm806_vm0, %v7908_v13  ;;  %5770 = vmatmul.mubr.msk.bf16.gmra.mxu0 %vm806_vm0, %v7908_v13 }
 0x14c   :  { %945 = vmatprep.mubr.bf16.mxu1 %v10523_v20  ;;  %1098 = vmatprep.mubr.bf16.mxu0 %v10523_v20 }
 0x14d   :  { %2483 = vmatprep.subr.bf16.mxu0 %v6870_v32 }
 0x14e   :  { %2484 = vmatpush2.bf16.msra.mxu0 %v6868_v33 }
 0x14f   :  { %2485 = vmatprep.subr.bf16.mxu0 %v6876_v34 }
 0x152   :  { %2486 = vmatpush2.bf16.msra.mxu0 %v6874_v35 }
 0x153   :  { %5759 = vmatmul.mubr.msk.bf16.gmra.mxu1 %vm806_vm0, %v7919_v14  ;;  %5771 = vmatmul.mubr.msk.bf16.gmra.mxu0 %vm806_vm0, %v7919_v14 }
 0x154   :  { %955 = vmatprep.mubr.bf16.mxu1 %v10523_v20  ;;  %1108 = vmatprep.mubr.bf16.mxu0 %v10523_v20 }
 0x155   :  { %2487 = vmatprep.subr.bf16.mxu0 %v6882_v37 }
 0x156   :  { %2488 = vmatpush2.bf16.msra.mxu0 %v6880_v38 }
 0x157   :  { %2489 = vmatprep.subr.bf16.mxu0 %v6888_v39 }
 0x15a   :  { %2490 = vmatpush2.bf16.msra.mxu0 %v6886_v40 }
 0x15b   :  { %5760 = vmatmul.mubr.msk.bf16.gmra.mxu1 %vm806_vm0, %v7930_v15  ;;  %5772 = vmatmul.mubr.msk.bf16.gmra.mxu0 %vm806_vm0, %v7930_v15 }
 0x15c   :  { %965 = vmatprep.mubr.bf16.mxu1 %v10523_v20  ;;  %1118 = vmatprep.mubr.bf16.mxu0 %v10523_v20 }
 0x163   :  { %5761 = vmatmul.mubr.msk.bf16.gmra.mxu1 %vm806_vm0, %v7947_v18  ;;  %5773 = vmatmul.mubr.msk.bf16.gmra.mxu0 %vm806_vm0, %v7947_v18 }
 0x164   :  { %975 = vmatprep.mubr.bf16.mxu1 %v10523_v20 }
 0x16b   :  { %5762 = vmatmul.mubr.msk.bf16.gmra.mxu1 %vm806_vm0, %v7969_v24 }
 0x16c   :  { %985 = vmatprep.mubr.bf16.mxu1 %v10523_v20 }
 0x173   :  { %5763 = vmatmul.mubr.msk.bf16.gmra.mxu1 %vm806_vm0, %v7989_v29 }
 0x174   :  { %1128 = vmatprep.mubr.bf16.mxu1 %v10523_v20 }
 0x17b   :  { %5774 = vmatmul.mubr.msk.bf16.vlgmr.msra.gmra.mxu1 %vm806_vm0, %v7969_v24 }
 0x17c   :  { %6631 = vmatpush3.bf16.msra.mxu1 %v7871_v7  ;;  %1138 = vmatprep.mubr.bf16.mxu1 %v10523_v20  ;;  %v6939_v7 = vld [vmem:[%s10520_s3 + $0x9e4] ss:$16 sps:$4 sm:$0xff]  }
 0x17d   :  { %6632 = vmatprep.subr.bf16.mxu1 %v7846_v60  ;;  %2605 = vmatprep.subr.bf16.mxu0 %v6939_v7  ;;  %v6892_v7 = vld [vmem:[%s10520_s3 + $0x7c8] ss:$16 sps:$4 sm:$0xff]  }
 0x180   :  { %6633 = vmatpush3.bf16.msra.mxu1 %v7846_v60  ;;  %v6855_v60 = vld [vmem:[%s10520_s3 + $0x8a4] ss:$16 sps:$4 sm:$0xff]  }
 0x181   :  { %2532 = vmatprep.subr.bf16.mxu1 %v6795_v36 }
 0x183   :  { %5775 = vmatmul.mubr.msk.bf16.gmra.mxu1 %vm806_vm0, %v7989_v29 }
 0x184   :  { %6634 = vmatprep.mubr.msk.bf16.mxu1 %vm806_vm0, %v7801_v45  ;;  %v6805_v45 = vld [vmem:[%s10520_s3 + $0x7a0] ss:$16 sps:$4 sm:$0xff]  }
 0x18b   :  { %6635 = vmatmul.mubr.msk.bf16.vlgmr.msra.gmra.mxu1 %vm806_vm0, %v7812_v46  ;;  %v6813_v46 = vld [vmem:[%s10520_s3 + $0x784] ss:$16 sps:$4 sm:$0xff]  }
 0x18c   :  { %6638 = vmatprep.mubr.msk.bf16.mxu1 %vm806_vm0, %v7829_v52  ;;  %2533 = vmatpush1.bf16.msra.mxu1 %v6793_v41  ;;  %v6831_v52 = vld [vmem:[%s10520_s3 + $0x724] ss:$16 sps:$4 sm:$0xff]  }
 0x18d   :  { %2534 = vmatprep.subr.bf16.mxu1 %v6801_v42 }
 0x190   :  { %2535 = vmatpush1.bf16.msra.mxu1 %v6799_v43 }
 0x191   :  { %2536 = vmatprep.subr.bf16.mxu1 %v6807_v44 }
 0x193   :  { %6639 = vmatmul.mubr.msk.bf16.gmra.mxu1 %vm806_vm0, %v7854_v63  ;;  %v6859_v63 = vld [vmem:[%s10520_s3 + $0x880] ss:$16 sps:$4 sm:$0xff]  }
 0x194   :  { %6642 = vmatprep.mubr.msk.bf16.mxu1 %vm806_vm0, %v7879_v9  ;;  %2537 = vmatpush1.bf16.msra.mxu1 %v6805_v45  ;;  %v6891_v9 = vld [vmem:[%s10520_s3 + $0x7ec] ss:$16 sps:$4 sm:$0xff]  }
 0x195   :  { %2538 = vmatprep.subr.bf16.mxu1 %v6813_v46 }
 0x198   :  { %2539 = vmatpush1.bf16.msra.mxu1 %v6811_v47 }
 0x199   :  { %2540 = vmatprep.subr.bf16.mxu1 %v6819_v48 }
 0x19b   :  { %6643 = vmatmul.mubr.msk.bf16.gmra.mxu1 %vm806_vm0, %v7897_v12 }
 0x19c   :  { %6646 = vmatprep.mubr.msk.bf16.mxu1 %vm806_vm0, %v7908_v13  ;;  %2541 = vmatpush1.bf16.msra.mxu1 %v6817_v49 }
 0x19d   :  { %2542 = vmatprep.subr.bf16.mxu1 %v6825_v50 }
 0x1a0   :  { %2543 = vmatpush1.bf16.msra.mxu1 %v6823_v51 }
 0x1a1   :  { %2544 = vmatprep.subr.bf16.mxu1 %v6831_v52 }
 0x1a3   :  { %6647 = vmatmul.mubr.msk.bf16.gmra.mxu1 %vm806_vm0, %v7919_v14 }
 0x1a4   :  { %2545 = vmatpush1.bf16.msra.mxu1 %v6829_v53  ;;  %6650 = vmatprep.mubr.msk.bf16.mxu1 %vm806_vm0, %v7930_v15 }
 0x1a5   :  { %2546 = vmatprep.subr.bf16.mxu1 %v6837_v54 }
 0x1a8   :  { %2547 = vmatpush1.bf16.msra.mxu1 %v6835_v55 }
 0x1a9   :  { %2548 = vmatprep.subr.bf16.mxu1 %v6843_v56 }
 0x1ab   :  { %6651 = vmatmul.mubr.msk.bf16.gmra.mxu1 %vm806_vm0, %v7947_v18 }
 0x1ac   :  { %2549 = vmatpush2.bf16.msra.mxu1 %v6841_v57  ;;  %6654 = vmatprep.mubr.msk.bf16.mxu1 %vm806_vm0, %v7969_v24 }
 0x1ad   :  { %2550 = vmatprep.subr.bf16.mxu1 %v6849_v58 }
 0x1b0   :  { %2551 = vmatpush2.bf16.msra.mxu1 %v6847_v59 }
 0x1b1   :  { %2552 = vmatprep.subr.bf16.mxu1 %v6855_v60 }
 0x1b3   :  { %6655 = vmatmul.mubr.msk.bf16.gmra.mxu1 %vm806_vm0, %v7989_v29 }
 0x1b4   :  { %2553 = vmatpush2.bf16.msra.mxu1 %v6853_v61 }
 0x1b5   :  { %2554 = vmatprep.subr.bf16.mxu1 %v6861_v62  ;;  %v6889_v62 = vld [vmem:[%s10520_s3 + $0x7e8] ss:$16 sps:$4 sm:$0xff]  }
 0x1b8   :  { %2555 = vmatpush2.bf16.msra.mxu1 %v6859_v63  ;;  %v6937_v63 = vld [vmem:[%s10520_s3 + $0x9e0] ss:$16 sps:$4 sm:$0xff]  }
 0x1b9   :  { %2556 = vmatprep.subr.bf16.mxu1 %v6867_v0 }
 0x1bc   :  { %2557 = vmatpush2.bf16.msra.mxu1 %v6865_v1 }
 0x1bd   :  { %2558 = vmatprep.subr.bf16.mxu1 %v6873_v2 }
 0x1c0   :  { %2559 = vmatpush2.bf16.msra.mxu1 %v6871_v3  ;;  %v6894_v3 = vld [vmem:[%s10520_s3 + $0x7cc] ss:$16 sps:$4 sm:$0xff]  }
 0x1c1   :  { %2560 = vmatprep.subr.bf16.mxu1 %v6879_v4  ;;  %v6945_v4 = vld [vmem:[%s10520_s3 + $0x9c4] ss:$16 sps:$4 sm:$0xff]  }
 0x1c4   :  { %2561 = vmatpush2.bf16.msra.mxu1 %v6877_v5 }
 0x1c5   :  { %2562 = vmatprep.subr.bf16.mxu1 %v6885_v6 }
 0x1c8   :  { %2563 = vmatpush2.bf16.msra.mxu1 %v6883_v8  ;;  %v6943_v8 = vld [vmem:[%s10520_s3 + $0x9c0] ss:$16 sps:$4 sm:$0xff]  }
 0x1c9   :  { %2751 = vmatprep.subr.bf16.mxu1 %v6891_v9 }
 0x1db   :  { %v877_v10 = vpop.f32.mrf.mxu1  ;;  %v1030_v11 = vpop.f32.mrf.mxu0 }
 0x1dd   :  { %v8158_v12 = vpop.f32.mrf.mxu1  ;;  %v8160_v13 = vpop.f32.mrf.mxu0 }
 0x1df   :  { %v881_v14 = vpop.f32.mrf.mxu1  ;;  %v1034_v15 = vpop.f32.mrf.mxu0 }
 0x1e0   :  { %v8162_v16 = vpack.c.bf16 %v881_v14, %v877_v10  ;;  %v8164_v17 = vpack.c.bf16 %v1034_v15, %v1030_v11  ;;  %v6897_v11 = vld [vmem:[%s10520_s3 + $0x7ac] ss:$16 sps:$4 sm:$0xff]   ;;  %v6951_v14 = vld [vmem:[%s10520_s3 + $0x9a4] ss:$16 sps:$4 sm:$0xff]  }
 0x1e1   :  { %v8166_v18 = vpop.f32.mrf.mxu1  ;;  %v8168_v19 = vpop.f32.mrf.mxu0 }
 0x1e3   :  { %v887_v21 = vpop.f32.mrf.mxu1  ;;  %v1040_v22 = vpop.f32.mrf.mxu0 }
 0x1e5   :  { %v8170_v23 = vpop.f32.mrf.mxu1  ;;  %v8172_v24 = vpop.f32.mrf.mxu0 }
 0x1e7   :  { %v891_v25 = vpop.f32.mrf.mxu1  ;;  %v1044_v26 = vpop.f32.mrf.mxu0 }
 0x1e8   :  { %v8174_v27 = vpack.c.bf16 %v891_v25, %v887_v21  ;;  %v8176_v28 = vpack.c.bf16 %v1044_v26, %v1040_v22 }
 0x1e9   :  { %v8178_v29 = vpop.f32.mrf.mxu1  ;;  %v8180_v30 = vpop.f32.mrf.mxu0 }
 0x1eb   :  { %v897_v31 = vpop.f32.mrf.mxu1  ;;  %v1050_v32 = vpop.f32.mrf.mxu0 }
 0x1ed   :  { %v8182_v33 = vpop.f32.mrf.mxu1  ;;  %v8184_v34 = vpop.f32.mrf.mxu0 }
 0x1ef   :  { %v901_v35 = vpop.f32.mrf.mxu1  ;;  %v1054_v36 = vpop.f32.mrf.mxu0 }
 0x1f0   :  { %v8186_v37 = vpack.c.bf16 %v901_v35, %v897_v31  ;;  %v8188_v38 = vpack.c.bf16 %v1054_v36, %v1050_v32  ;;  %v6895_v31 = vld [vmem:[%s10520_s3 + $0x7a8] ss:$16 sps:$4 sm:$0xff]   ;;  %v6949_v32 = vld [vmem:[%s10520_s3 + $0x9a0] ss:$16 sps:$4 sm:$0xff]  }
 0x1f1   :  { %v8190_v39 = vpop.f32.mrf.mxu1  ;;  %v8192_v40 = vpop.f32.mrf.mxu0 }
 0x1f3   :  { %v907_v41 = vpop.f32.mrf.mxu1  ;;  %v1060_v42 = vpop.f32.mrf.mxu0 }
 0x1f5   :  { %v8194_v43 = vpop.f32.mrf.mxu1  ;;  %v8196_v44 = vpop.f32.mrf.mxu0 }
 0x1f7   :  { %v911_v45 = vpop.f32.mrf.mxu1  ;;  %v1064_v46 = vpop.f32.mrf.mxu0 }
 0x1f8   :  { %v8198_v47 = vpack.c.bf16 %v911_v45, %v907_v41  ;;  %v8200_v48 = vpack.c.bf16 %v1064_v46, %v1060_v42  ;;  %v6900_v42 = vld [vmem:[%s10520_s3 + $0x78c] ss:$16 sps:$4 sm:$0xff]   ;;  %v6957_v45 = vld [vmem:[%s10520_s3 + $0x984] ss:$16 sps:$4 sm:$0xff]  }
 0x1f9   :  { %v8202_v49 = vpop.f32.mrf.mxu1  ;;  %v8204_v50 = vpop.f32.mrf.mxu0 }
 0x1fb   :  { %v917_v51 = vpop.f32.mrf.mxu1  ;;  %v1070_v52 = vpop.f32.mrf.mxu0 }
 0x1fd   :  { %v919_v53 = vpop.f32.mrf.mxu1  ;;  %v1072_v54 = vpop.f32.mrf.mxu0 }
 0x1ff   :  { %v921_v55 = vpop.f32.mrf.mxu1  ;;  %v1074_v56 = vpop.f32.mrf.mxu0 }
 0x200   :  { %v8206_v57 = vpack.c.bf16 %v1074_v56, %v1070_v52  ;;  %v8218_v0 = vpack.c.bf16 %v921_v55, %v917_v51  ;;  %v6898_v52 = vld [vmem:[%s10520_s3 + $0x788] ss:$16 sps:$4 sm:$0xff]   ;;  %v6903_v56 = vld [vmem:[%s10520_s3 + $0x76c] ss:$16 sps:$4 sm:$0xff]  }
 0x201   :  { %v923_v58 = vpop.f32.mrf.mxu1  ;;  %v1076_v59 = vpop.f32.mrf.mxu0 }
 0x202   :  { %v8208_v60 = vpack.c.bf16 %v923_v58, %v919_v53  ;;  %v8210_v61 = vpack.c.bf16 %v1076_v59, %v1072_v54  ;;  %v6955_v53 = vld [vmem:[%s10520_s3 + $0x980] ss:$16 sps:$4 sm:$0xff]   ;;  %v6963_v58 = vld [vmem:[%s10520_s3 + $0x964] ss:$16 sps:$4 sm:$0xff]  }
 0x203   :  { %v927_v1 = vpop.f32.mrf.mxu1  ;;  %v1080_v2 = vpop.f32.mrf.mxu0 }
 0x204   :  { %2491 = vmatprep.mubr.bf16.mxu0 %v8208_v60  ;;  %2564 = vmatprep.mubr.bf16.mxu1 %v8210_v61 }
 0x205   :  { %v929_v5 = vpop.f32.mrf.mxu1  ;;  %v1082_v6 = vpop.f32.mrf.mxu0  ;;  %2492 = vmatmul.mubr.bf16.vlgmr.msra.gmra.mxu0 %v8218_v0  ;;  %2565 = vmatmul.mubr.bf16.vlgmr.msra.gmra.mxu1 %v8206_v57 }
 0x206   :  { %2752 = vmatpush1.bf16.msra.mxu1 %v6889_v62  ;;  %2606 = vmatpush1.bf16.msra.mxu0 %v6937_v63 }
 0x207   :  { %v931_v9 = vpop.f32.mrf.mxu1  ;;  %v1084_v10 = vpop.f32.mrf.mxu0  ;;  %2753 = vmatprep.subr.bf16.mxu1 %v6894_v3  ;;  %2607 = vmatprep.subr.bf16.mxu0 %v6945_v4  ;;  %v6901_v3 = vld [vmem:[%s10520_s3 + $0x768] ss:$16 sps:$4 sm:$0xff]   ;;  %v6961_v4 = vld [vmem:[%s10520_s3 + $0x960] ss:$16 sps:$4 sm:$0xff]  }
 0x208   :  { %v8242_v15 = vpack.c.bf16 %v1084_v10, %v1080_v2  ;;  %v8254_v35 = vpack.c.bf16 %v931_v9, %v927_v1  ;;  %v6969_v9 = vld [vmem:[%s10520_s3 + $0x944] ss:$16 sps:$4 sm:$0xff]  }
 0x209   :  { %v933_v21 = vpop.f32.mrf.mxu1  ;;  %v1086_v22 = vpop.f32.mrf.mxu0 }
 0x20a   :  { %v8244_v25 = vpack.c.bf16 %v933_v21, %v929_v5  ;;  %v8246_v26 = vpack.c.bf16 %v1086_v22, %v1082_v6  ;;  %2754 = vmatpush1.bf16.msra.mxu1 %v6892_v7  ;;  %2608 = vmatpush1.bf16.msra.mxu0 %v6943_v8  ;;  %v6906_v8 = vld [vmem:[%s10520_s3 + $0x74c] ss:$16 sps:$4 sm:$0xff]   ;;  %v6967_v21 = vld [vmem:[%s10520_s3 + $0x940] ss:$16 sps:$4 sm:$0xff]  }
 0x20b   :  { %v937_v36 = vpop.f32.mrf.mxu1  ;;  %v1090_v41 = vpop.f32.mrf.mxu0  ;;  %2755 = vmatprep.subr.bf16.mxu1 %v6897_v11  ;;  %2609 = vmatprep.subr.bf16.mxu0 %v6951_v14  ;;  %v6904_v14 = vld [vmem:[%s10520_s3 + $0x748] ss:$16 sps:$4 sm:$0xff]  }
 0x20c   :  { %2501 = vmatprep.mubr.bf16.mxu0 %v8244_v25  ;;  %2574 = vmatprep.mubr.bf16.mxu1 %v8246_v26 }
 0x20d   :  { %v939_v46 = vpop.f32.mrf.mxu1  ;;  %v1092_v51 = vpop.f32.mrf.mxu0  ;;  %2502 = vmatmul.mubr.bf16.gmra.mxu0 %v8254_v35  ;;  %2575 = vmatmul.mubr.bf16.gmra.mxu1 %v8242_v15 }
 0x20e   :  { %2756 = vmatpush1.bf16.msra.mxu1 %v6895_v31  ;;  %2610 = vmatpush1.bf16.msra.mxu0 %v6949_v32  ;;  %v6909_v32 = vld [vmem:[%s10520_s3 + $0x72c] ss:$16 sps:$4 sm:$0xff]  }
 0x20f   :  { %v941_v54 = vpop.f32.mrf.mxu1  ;;  %v1094_v55 = vpop.f32.mrf.mxu0  ;;  %2757 = vmatprep.subr.bf16.mxu1 %v6900_v42  ;;  %2611 = vmatprep.subr.bf16.mxu0 %v6957_v45 }
 0x210   :  { %v8278_v59 = vpack.c.bf16 %v1094_v55, %v1090_v41  ;;  %v8290_v5 = vpack.c.bf16 %v941_v54, %v937_v36  ;;  %v6975_v36 = vld [vmem:[%s10520_s3 + $0x924] ss:$16 sps:$4 sm:$0xff]   ;;  %v6912_v55 = vld [vmem:[%s10520_s3 + $0x70c] ss:$16 sps:$4 sm:$0xff]  }
 0x211   :  { %v943_v62 = vpop.f32.mrf.mxu1  ;;  %v1096_v63 = vpop.f32.mrf.mxu0 }
 0x212   :  { %v8280_v1 = vpack.c.bf16 %v943_v62, %v939_v46  ;;  %v8282_v2 = vpack.c.bf16 %v1096_v63, %v1092_v51  ;;  %2758 = vmatpush1.bf16.msra.mxu1 %v6898_v52  ;;  %2612 = vmatpush1.bf16.msra.mxu0 %v6955_v53  ;;  %v6907_v52 = vld [vmem:[%s10520_s3 + $0x728] ss:$16 sps:$4 sm:$0xff]  }
 0x213   :  { %v947_v6 = vpop.f32.mrf.mxu1  ;;  %v1100_v7 = vpop.f32.mrf.mxu0  ;;  %2759 = vmatprep.subr.bf16.mxu1 %v6903_v56  ;;  %2613 = vmatprep.subr.bf16.mxu0 %v6963_v58  ;;  %v6973_v56 = vld [vmem:[%s10520_s3 + $0x920] ss:$16 sps:$4 sm:$0xff]   ;;  %v6981_v58 = vld [vmem:[%s10520_s3 + $0x904] ss:$16 sps:$4 sm:$0xff]   ;;  %v6910_v63 = vld [vmem:[%s10520_s3 + $0x708] ss:$16 sps:$4 sm:$0xff]  }
 0x214   :  { %2511 = vmatprep.mubr.bf16.mxu0 %v8280_v1  ;;  %2584 = vmatprep.mubr.bf16.mxu1 %v8282_v2 }
 0x215   :  { %v949_v10 = vpop.f32.mrf.mxu1  ;;  %v1102_v11 = vpop.f32.mrf.mxu0  ;;  %2512 = vmatmul.mubr.bf16.gmra.mxu0 %v8290_v5  ;;  %2585 = vmatmul.mubr.bf16.gmra.mxu1 %v8278_v59 }
 0x216   :  { %2760 = vmatpush1.bf16.msra.mxu1 %v6901_v3  ;;  %2614 = vmatpush1.bf16.msra.mxu0 %v6961_v4  ;;  %v6915_v4 = vld [vmem:[%s10520_s3 + $0x8ec] ss:$16 sps:$4 sm:$0xff]  }
 0x217   :  { %v951_v22 = vpop.f32.mrf.mxu1  ;;  %v1104_v31 = vpop.f32.mrf.mxu0  ;;  %2761 = vmatprep.subr.bf16.mxu1 %v6906_v8  ;;  %2615 = vmatprep.subr.bf16.mxu0 %v6969_v9  ;;  %v6913_v9 = vld [vmem:[%s10520_s3 + $0x8e8] ss:$16 sps:$4 sm:$0xff]  }
 0x218   :  { %v8314_v41 = vpack.c.bf16 %v1104_v31, %v1100_v7  ;;  %v8323_v53 = vpack.c.bf16 %v951_v22, %v947_v6  ;;  %v6979_v6 = vld [vmem:[%s10520_s3 + $0x900] ss:$16 sps:$4 sm:$0xff]   ;;  %v6921_v31 = vld [vmem:[%s10520_s3 + $0x8ac] ss:$16 sps:$4 sm:$0xff]  }
 0x219   :  { %v953_v42 = vpop.f32.mrf.mxu1  ;;  %v1106_v45 = vpop.f32.mrf.mxu0 }
 0x21a   :  { %v8316_v46 = vpack.c.bf16 %v953_v42, %v949_v10  ;;  %v8318_v51 = vpack.c.bf16 %v1106_v45, %v1102_v11  ;;  %2762 = vmatpush1.bf16.msra.mxu1 %v6904_v14  ;;  %2616 = vmatpush1.bf16.msra.mxu0 %v6967_v21  ;;  %v6918_v11 = vld [vmem:[%s10520_s3 + $0x8cc] ss:$16 sps:$4 sm:$0xff]   ;;  %v6916_v21 = vld [vmem:[%s10520_s3 + $0x8c8] ss:$16 sps:$4 sm:$0xff]  }
 0x21b   :  { %v957_v54 = vpop.f32.mrf.mxu1  ;;  %2763 = vmatprep.subr.bf16.mxu1 %v6909_v32  ;;  %2617 = vmatprep.subr.bf16.mxu0 %v6975_v36  ;;  %v6919_v42 = vld [vmem:[%s10520_s3 + $0x8a8] ss:$16 sps:$4 sm:$0xff]  }
 0x21c   :  { %2521 = vmatprep.mubr.bf16.mxu0 %v8316_v46  ;;  %2594 = vmatprep.mubr.bf16.mxu1 %v8318_v51 }
 0x21d   :  { %v8336_v62 = vpop.f32.mrf.mxu1  ;;  %2522 = vmatmul.mubr.bf16.gmra.mxu0 %v8323_v53  ;;  %2595 = vmatmul.mubr.bf16.gmra.mxu1 %v8314_v41 }
 0x21e   :  { %2764 = vmatpush1.bf16.msra.mxu1 %v6907_v52  ;;  %2783 = vmatprep.mubr.bf16.mxu1 %v8210_v61  ;;  %v6987_v61 = vld [vmem:[%s10520_s3 + $0x5ec] ss:$16 sps:$4 sm:$0xff]  }
 0x21f   :  { %v961_v3 = vpop.f32.mrf.mxu1  ;;  %2765 = vmatprep.subr.bf16.mxu1 %v6912_v55  ;;  %2618 = vmatpush1.bf16.msra.mxu0 %v6973_v56  ;;  %v6924_v52 = vld [vmem:[%s10520_s3 + $0x88c] ss:$16 sps:$4 sm:$0xff]   ;;  %v6922_v55 = vld [vmem:[%s10520_s3 + $0x888] ss:$16 sps:$4 sm:$0xff]  }
 0x220   :  { %v8350_v7 = vpack.c.bf16 %v961_v3, %v957_v54  ;;  %2619 = vmatprep.subr.bf16.mxu0 %v6981_v58  ;;  %2637 = vmatprep.mubr.bf16.mxu0 %v10523_v20  ;;  %v6927_v58 = vld [vmem:[%s10520_s3 + $0x86c] ss:$16 sps:$4 sm:$0xff]  }
 0x221   :  { %v8356_v8 = vpop.f32.mrf.mxu1 }
 0x222   :  { %2766 = vmatpush1.bf16.msra.mxu1 %v6910_v63 }
 0x223   :  { %v967_v10 = vpop.f32.mrf.mxu1  ;;  %2767 = vmatprep.subr.bf16.mxu1 %v6915_v4  ;;  %2620 = vmatpush1.bf16.msra.mxu0 %v6979_v6  ;;  %v6925_v4 = vld [vmem:[%s10520_s3 + $0x868] ss:$16 sps:$4 sm:$0xff]  }
 0x224   :  { %2678 = vmatprep.subr.bf16.mxu0 %v6987_v61  ;;  %v6930_v61 = vld [vmem:[%s10520_s3 + $0x84c] ss:$16 sps:$4 sm:$0xff]  }
 0x225   :  { %v8364_v14 = vpop.f32.mrf.mxu1 }
 0x226   :  { %2768 = vmatpush2.bf16.msra.mxu1 %v6913_v9 }
 0x227   :  { %v971_v22 = vpop.f32.mrf.mxu1  ;;  %2769 = vmatprep.subr.bf16.mxu1 %v6918_v11 }
 0x228   :  { %v8372_v32 = vpack.c.bf16 %v971_v22, %v967_v10  ;;  %v6928_v10 = vld [vmem:[%s10520_s3 + $0x848] ss:$16 sps:$4 sm:$0xff]  }
 0x229   :  { %v8374_v36 = vpop.f32.mrf.mxu1 }
 0x22a   :  { %2770 = vmatpush2.bf16.msra.mxu1 %v6916_v21  ;;  %v6933_v21 = vld [vmem:[%s10520_s3 + $0x82c] ss:$16 sps:$4 sm:$0xff]  }
 0x22b   :  { %v977_v45 = vpop.f32.mrf.mxu1  ;;  %2771 = vmatprep.subr.bf16.mxu1 %v6921_v31 }
 0x22d   :  { %v8382_v54 = vpop.f32.mrf.mxu1 }
 0x22e   :  { %2772 = vmatpush2.bf16.msra.mxu1 %v6919_v42  ;;  %v6931_v42 = vld [vmem:[%s10520_s3 + $0x828] ss:$16 sps:$4 sm:$0xff]  }
 0x22f   :  { %v981_v56 = vpop.f32.mrf.mxu1  ;;  %2773 = vmatprep.subr.bf16.mxu1 %v6924_v52  ;;  %v6936_v52 = vld [vmem:[%s10520_s3 + $0x80c] ss:$16 sps:$4 sm:$0xff]  }
 0x230   :  { %v8390_v63 = vpack.c.bf16 %v981_v56, %v977_v45  ;;  %v6934_v56 = vld [vmem:[%s10520_s3 + $0x808] ss:$16 sps:$4 sm:$0xff]  }
 0x231   :  { %v8392_v3 = vpop.f32.mrf.mxu1 }
 0x232   :  { %10539 = vst [vmem:[#allocation2_spill] sm:$0xff] %v8390_v63  ;;  %2774 = vmatpush2.bf16.msra.mxu1 %v6922_v55 }
 0x233   :  { %v987_v6 = vpop.f32.mrf.mxu1  ;;  %2775 = vmatprep.subr.bf16.mxu1 %v6927_v58 }
 0x235   :  { %v8400_v9 = vpop.f32.mrf.mxu1 }
 0x236   :  { %2776 = vmatpush2.bf16.msra.mxu1 %v6925_v4  ;;  %v6942_v4 = vld [vmem:[%s10520_s3 + $0xe4] ss:$16 sps:$4 sm:$0xff]  }
 0x237   :  { %v991_v11 = vpop.f32.mrf.mxu1  ;;  %2777 = vmatprep.subr.bf16.mxu1 %v6930_v61 }
 0x238   :  { %v8408_v22 = vpack.c.bf16 %v991_v11, %v987_v6 }
 0x239   :  { %v8410_v31 = vpop.f32.mrf.mxu1 }
 0x23a   :  { %10540 = vst [vmem:[#allocation3_spill] sm:$0xff] %v8408_v22  ;;  %2778 = vmatpush2.bf16.msra.mxu1 %v6928_v10  ;;  %v6940_v10 = vld [vmem:[%s10520_s3 + $0xe0] ss:$16 sps:$4 sm:$0xff]  }
 0x23b   :  { %v1130_v45 = vpop.f32.mrf.mxu1  ;;  %2779 = vmatprep.subr.bf16.mxu1 %v6933_v21  ;;  %v6948_v21 = vld [vmem:[%s10520_s3 + $0xc4] ss:$16 sps:$4 sm:$0xff]  }
 0x23d   :  { %v8418_v55 = vpop.f32.mrf.mxu1 }
 0x23e   :  { %10541 = vst [vmem:[#allocation4_spill] sm:$0xff] %v8418_v55  ;;  %2780 = vmatpush2.bf16.msra.mxu1 %v6931_v42  ;;  %v7000_v55 = vld [vmem:[%s10520_s3 + $0x1a0] ss:$16 sps:$4 sm:$0xff]  }
 0x23f   :  { %v1134_v58 = vpop.f32.mrf.mxu1  ;;  %2781 = vmatprep.subr.bf16.mxu1 %v6936_v52 }
 0x240   :  { %v8426_v6 = vpack.c.bf16 %v1134_v58, %v1130_v45  ;;  %v6946_v45 = vld [vmem:[%s10520_s3 + $0xc0] ss:$16 sps:$4 sm:$0xff]  }
 0x241   :  { %v8428_v61 = vpop.f32.mrf.mxu1 }
 0x242   :  { %10542 = vst [vmem:[#allocation5_spill] sm:$0xff] %v8426_v6  ;;  %10543 = vst [vmem:[#allocation6_spill] sm:$0xff] %v8428_v61  ;;  %2782 = vmatpush2.bf16.msra.mxu1 %v6934_v56  ;;  %v6954_v56 = vld [vmem:[%s10520_s3 + $0xa4] ss:$16 sps:$4 sm:$0xff]   ;;  %v6997_v61 = vld [vmem:[%s10520_s3 + $0x5a8] ss:$16 sps:$4 sm:$0xff]  }
 0x243   :  { %v1140_v11 = vpop.f32.mrf.mxu1  ;;  %3697 = vmatprep.subr.bf16.mxu1 %v6942_v4 }
 0x245   :  { %2784 = vmatmul.mubr.bf16.vlgmr.msra.gmra.mxu1 %v8206_v57  ;;  %v8437_v42 = vpop.f32.mrf.mxu1  ;;  %v6952_v57 = vld [vmem:[%s10520_s3 + $0xa0] ss:$16 sps:$4 sm:$0xff]  }
 0x246   :  { %10544 = vst [vmem:[#allocation7_spill] sm:$0xff] %v8437_v42  ;;  %3698 = vmatpush1.bf16.msra.mxu1 %v6940_v10  ;;  %2793 = vmatprep.mubr.bf16.mxu1 %v8246_v26  ;;  %v6960_v26 = vld [vmem:[%s10520_s3 + $0x84] ss:$16 sps:$4 sm:$0xff]   ;;  %v6999_v42 = vld [vmem:[%s10520_s3 + $0x5ac] ss:$16 sps:$4 sm:$0xff]  }
 0x247   :  { %v1144_v52 = vpop.f32.mrf.mxu1  ;;  %3699 = vmatprep.subr.bf16.mxu1 %v6948_v21 }
 0x248   :  { %v8446_v58 = vpack.c.bf16 %v1144_v52, %v1140_v11  ;;  %v6958_v11 = vld [vmem:[%s10520_s3 + $0x80] ss:$16 sps:$4 sm:$0xff]   ;;  %v6966_v52 = vld [vmem:[%s10520_s3 + $0x64] ss:$16 sps:$4 sm:$0xff]  }
 0x249   :  { %v8448_v4 = vpop.f32.mrf.mxu1 }
 0x24a   :  { %10545 = vst [vmem:[#allocation8_spill] sm:$0xff] %v8446_v58  ;;  %10546 = vst [vmem:[#allocation9_spill] sm:$0xff] %v8448_v4  ;;  %3700 = vmatpush1.bf16.msra.mxu1 %v6946_v45 }
 0x24b   :  { %v6636_v10 = vpop.f32.mrf.mxu1  ;;  %3701 = vmatprep.subr.bf16.mxu1 %v6954_v56 }
 0x24d   :  { %2794 = vmatmul.mubr.bf16.gmra.mxu1 %v8242_v15  ;;  %v8457_v21 = vpop.f32.mrf.mxu1  ;;  %v6964_v15 = vld [vmem:[%s10520_s3 + $0x60] ss:$16 sps:$4 sm:$0xff]  }
 0x24e   :  { %3702 = vmatpush1.bf16.msra.mxu1 %v6952_v57  ;;  %2803 = vmatprep.mubr.bf16.mxu1 %v8282_v2  ;;  %v6972_v2 = vld [vmem:[%s10520_s3 + $0x44] ss:$16 sps:$4 sm:$0xff]  }
 0x24f   :  { %v6637_v45 = vpop.f32.mrf.mxu1  ;;  %3703 = vmatprep.subr.bf16.mxu1 %v6960_v26 }
 0x250   :  { %v8466_v56 = vpack.c.bf16 %v6637_v45, %v6636_v10  ;;  %v6970_v10 = vld [vmem:[%s10520_s3 + $0x40] ss:$16 sps:$4 sm:$0xff]   ;;  %v6978_v45 = vld [vmem:[%s10520_s3 + $0x24] ss:$16 sps:$4 sm:$0xff]  }
 0x251   :  { %v8468_v20 = vpop.f32.mrf.mxu1 }
 0x252   :  { %10547 = vst [vmem:[#allocation10_spill] sm:$0xff] %v8466_v56  ;;  %3704 = vmatpush1.bf16.msra.mxu1 %v6958_v11 }
 0x253   :  { %v6640_v57 = vpop.f32.mrf.mxu1  ;;  %3705 = vmatprep.subr.bf16.mxu1 %v6966_v52 }
 0x255   :  { %2804 = vmatmul.mubr.bf16.gmra.mxu1 %v8278_v59  ;;  %v8477_v26 = vpop.f32.mrf.mxu1  ;;  %v6976_v59 = vld [vmem:[%s10520_s3 + $0x20] ss:$16 sps:$4 sm:$0xff]  }
 0x256   :  { %3706 = vmatpush1.bf16.msra.mxu1 %v6964_v15  ;;  %2813 = vmatprep.mubr.bf16.mxu1 %v8318_v51  ;;  %v6984_v51 = vld [vmem:[%s10520_s3 + $0x4] ss:$16 sps:$4 sm:$0xff]  }
 0x257   :  { %v6641_v11 = vpop.f32.mrf.mxu1  ;;  %3707 = vmatprep.subr.bf16.mxu1 %v6972_v2  ;;  %v8498_v2 = vpack.c.bf16 %v8166_v18, %v8158_v12  ;;  %v6985_v12 = vld [vmem:[%s10520_s3 + $0x5e8] ss:$16 sps:$4 sm:$0xff]  }
 0x258   :  { %v8486_v52 = vpack.c.bf16 %v6641_v11, %v6640_v57 }
 0x259   :  { %v8488_v58 = vpop.f32.mrf.mxu1 }
 0x25a   :  { %10548 = vst [vmem:[#allocation11_spill] sm:$0xff] %v8486_v52  ;;  %3708 = vmatpush1.bf16.msra.mxu1 %v6970_v10  ;;  %v6982_v10 = vld [vmem:[%s10520_s3] ss:$16 sps:$4 sm:$0xff]  }
 0x25b   :  { %v6644_v15 = vpop.f32.mrf.mxu1  ;;  %3709 = vmatprep.subr.bf16.mxu1 %v6978_v45  ;;  %v6990_v45 = vld [vmem:[%s10520_s3 + $0x1e4] ss:$16 sps:$4 sm:$0xff]  }
 0x25d   :  { %2814 = vmatmul.mubr.bf16.gmra.mxu1 %v8314_v41  ;;  %v1215_v57 = vpop.f32.mrf.mxu1  ;;  %v6988_v41 = vld [vmem:[%s10520_s3 + $0x1e0] ss:$16 sps:$4 sm:$0xff]  }
 0x25e   :  { %3710 = vmatpush1.bf16.msra.mxu1 %v6976_v59  ;;  %3729 = vmatprep.mubr.bf16.mxu1 %v8498_v2  ;;  %v6993_v59 = vld [vmem:[%s10520_s3 + $0x5cc] ss:$16 sps:$4 sm:$0xff]  }
 0x25f   :  { %v6645_v11 = vpop.f32.mrf.mxu1  ;;  %3711 = vmatprep.subr.bf16.mxu1 %v6984_v51  ;;  %v6996_v51 = vld [vmem:[%s10520_s3 + $0x1c4] ss:$16 sps:$4 sm:$0xff]  }
 0x261   :  { %v1218_v6 = vpop.f32.mrf.mxu1 }
 0x262   :  { %v8511_v18 = vpack.c.bf16 %v1218_v6, %v1215_v57  ;;  %3712 = vmatpush1.bf16.msra.mxu1 %v6982_v10  ;;  %v6991_v6 = vld [vmem:[%s10520_s3 + $0x5c8] ss:$16 sps:$4 sm:$0xff]   ;;  %v10549_v57 = vmov 0  }
 0x263   :  { %3713 = vmatprep.subr.bf16.mxu1 %v6990_v45  ;;  %v6648_v4 = vpop.f32.mrf.mxu1  ;;  %v6994_v45 = vld [vmem:[%s10520_s3 + $0x1c0] ss:$16 sps:$4 sm:$0xff]  }
 0x264   :  { %2638 = vmatmul.mubr.bf16.vlgmr.msra.gmra.mxu0 %v8511_v18 }
 0x265   :  { %2679 = vmatpush1.bf16.msra.mxu0 %v6985_v12  ;;  %2647 = vmatprep.mubr.bf16.mxu0 %v10549_v57  ;;  %v1231_v10 = vpop.f32.mrf.mxu1  ;;  %v7002_v12 = vld [vmem:[%s10520_s3 + $0x1a4] ss:$16 sps:$4 sm:$0xff]  }
 0x266   :  { %3714 = vmatpush2.bf16.msra.mxu1 %v6988_v41  ;;  %2680 = vmatprep.subr.bf16.mxu0 %v6993_v59  ;;  %v8539_v59 = vpack.c.bf16 %v6645_v11, %v6644_v15  ;;  %v7006_v11 = vld [vmem:[%s10520_s3 + $0x180] ss:$16 sps:$4 sm:$0xff]  }
 0x267   :  { %3715 = vmatprep.subr.bf16.mxu1 %v6996_v51  ;;  %v6649_v41 = vpop.f32.mrf.mxu1  ;;  %v7005_v51 = vld [vmem:[%s10520_s3 + $0x58c] ss:$16 sps:$4 sm:$0xff]  }
 0x269   :  { %2681 = vmatpush1.bf16.msra.mxu0 %v6991_v6  ;;  %v7008_v6 = vld [vmem:[%s10520_s3 + $0x184] ss:$16 sps:$4 sm:$0xff]   ;;  %v1234_v15 = vpop.f32.mrf.mxu1 }
 0x26a   :  { %3716 = vmatpush2.bf16.msra.mxu1 %v6994_v45  ;;  %2682 = vmatprep.subr.bf16.mxu0 %v6999_v42  ;;  %v7003_v42 = vld [vmem:[%s10520_s3 + $0x588] ss:$16 sps:$4 sm:$0xff]   ;;  %v7011_v45 = vld [vmem:[%s10520_s3 + $0x56c] ss:$16 sps:$4 sm:$0xff]  }
 0x26b   :  { %3717 = vmatprep.subr.bf16.mxu1 %v7002_v12  ;;  %v8564_v12 = vpack.c.bf16 %v1234_v15, %v1231_v10  ;;  %v7020_v10 = vld [vmem:[%s10520_s3 + $0x144] ss:$16 sps:$4 sm:$0xff]   ;;  %v7018_v15 = vld [vmem:[%s10520_s3 + $0x140] ss:$16 sps:$4 sm:$0xff]  }
 0x26c   :  { %2648 = vmatmul.mubr.bf16.gmra.mxu0 %v8539_v59 }
 0x26d   :  { %2683 = vmatpush1.bf16.msra.mxu0 %v6997_v61  ;;  %2657 = vmatprep.mubr.bf16.mxu0 %v10549_v57  ;;  %v7014_v61 = vld [vmem:[%s10520_s3 + $0x164] ss:$16 sps:$4 sm:$0xff]  }
 0x26e   :  { %3718 = vmatpush2.bf16.msra.mxu1 %v7000_v55  ;;  %2684 = vmatprep.subr.bf16.mxu0 %v7005_v51  ;;  %v7009_v55 = vld [vmem:[%s10520_s3 + $0x568] ss:$16 sps:$4 sm:$0xff]   ;;  %v7012_v51 = vld [vmem:[%s10520_s3 + $0x160] ss:$16 sps:$4 sm:$0xff]  }
 0x26f   :  { %3719 = vmatprep.subr.bf16.mxu1 %v7008_v6  ;;  %v7017_v6 = vld [vmem:[%s10520_s3 + $0x54c] ss:$16 sps:$4 sm:$0xff]  }
 0x271   :  { %2685 = vmatpush1.bf16.msra.mxu0 %v7003_v42  ;;  %v7015_v42 = vld [vmem:[%s10520_s3 + $0x548] ss:$16 sps:$4 sm:$0xff]  }
 0x272   :  { %3720 = vmatpush2.bf16.msra.mxu1 %v7006_v11  ;;  %2686 = vmatprep.subr.bf16.mxu0 %v7011_v45  ;;  %v7023_v11 = vld [vmem:[%s10520_s3 + $0x52c] ss:$16 sps:$4 sm:$0xff]   ;;  %v7026_v45 = vld [vmem:[%s10520_s3 + $0x124] ss:$16 sps:$4 sm:$0xff]  }
 0x273   :  { %3721 = vmatprep.subr.bf16.mxu1 %v7014_v61  ;;  %v8592_v61 = vpack.c.bf16 %v6649_v41, %v6648_v4  ;;  %v7032_v4 = vld [vmem:[%s10520_s3 + $0x104] ss:$16 sps:$4 sm:$0xff]   ;;  %v7027_v41 = vld [vmem:[%s10520_s3 + $0x508] ss:$16 sps:$4 sm:$0xff]  }
 0x274   :  { %2658 = vmatmul.mubr.bf16.gmra.mxu0 %v8564_v12 }
 0x275   :  { %2687 = vmatpush1.bf16.msra.mxu0 %v7009_v55  ;;  %2667 = vmatprep.mubr.bf16.mxu0 %v10549_v57  ;;  %v7021_v55 = vld [vmem:[%s10520_s3 + $0x528] ss:$16 sps:$4 sm:$0xff]  }
 0x276   :  { %3722 = vmatpush2.bf16.msra.mxu1 %v7012_v51  ;;  %2688 = vmatprep.subr.bf16.mxu0 %v7017_v6  ;;  %v7024_v51 = vld [vmem:[%s10520_s3 + $0x120] ss:$16 sps:$4 sm:$0xff]   ;;  %v7029_v6 = vld [vmem:[%s10520_s3 + $0x50c] ss:$16 sps:$4 sm:$0xff]  }
 0x277   :  { %3723 = vmatprep.subr.bf16.mxu1 %v7020_v10  ;;  %v7030_v10 = vld [vmem:[%s10520_s3 + $0x100] ss:$16 sps:$4 sm:$0xff]  }
 0x279   :  { %2689 = vmatpush1.bf16.msra.mxu0 %v7015_v42  ;;  %v7035_v42 = vld [vmem:[%s10520_s3 + $0x6ec] ss:$16 sps:$4 sm:$0xff]  }
 0x27a   :  { %3724 = vmatpush2.bf16.msra.mxu1 %v7018_v15  ;;  %2690 = vmatprep.subr.bf16.mxu0 %v7023_v11  ;;  %v7038_v15 = vld [vmem:[%s10520_s3 + $0x4e4] ss:$16 sps:$4 sm:$0xff]   ;;  %v7036_v11 = vld [vmem:[%s10520_s3 + $0x4e0] ss:$16 sps:$4 sm:$0xff]  }
 0x27b   :  { %3725 = vmatprep.subr.bf16.mxu1 %v7026_v45  ;;  %v7041_v45 = vld [vmem:[%s10520_s3 + $0x6cc] ss:$16 sps:$4 sm:$0xff]  }
 0x27c   :  { %2668 = vmatmul.mubr.bf16.gmra.mxu0 %v8592_v61 }
 0x27d   :  { %2691 = vmatpush1.bf16.msra.mxu0 %v7021_v55  ;;  %2710 = vmatprep.mubr.bf16.mxu0 %v8208_v60  ;;  %v7033_v60 = vld [vmem:[%s10520_s3 + $0x6e8] ss:$16 sps:$4 sm:$0xff]   ;;  %v7044_v55 = vld [vmem:[%s10520_s3 + $0x4c4] ss:$16 sps:$4 sm:$0xff]  }
 0x27e   :  { %3726 = vmatpush2.bf16.msra.mxu1 %v7024_v51  ;;  %2692 = vmatprep.subr.bf16.mxu0 %v7029_v6  ;;  %v8634_v51 = vpack.c.bf16 %v8178_v29, %v8170_v23  ;;  %v7039_v6 = vld [vmem:[%s10520_s3 + $0x6c8] ss:$16 sps:$4 sm:$0xff]   ;;  %v7050_v23 = vld [vmem:[%s10520_s3 + $0x4a4] ss:$16 sps:$4 sm:$0xff]  }
 0x27f   :  { %3727 = vmatprep.subr.bf16.mxu1 %v7032_v4  ;;  %v7042_v4 = vld [vmem:[%s10520_s3 + $0x4c0] ss:$16 sps:$4 sm:$0xff]   ;;  %v7045_v29 = vld [vmem:[%s10520_s3 + $0x6a8] ss:$16 sps:$4 sm:$0xff]  }
 0x281   :  { %2693 = vmatpush1.bf16.msra.mxu0 %v7027_v41  ;;  %v7047_v41 = vld [vmem:[%s10520_s3 + $0x6ac] ss:$16 sps:$4 sm:$0xff]  }
 0x282   :  { %3728 = vmatpush2.bf16.msra.mxu1 %v7030_v10  ;;  %2694 = vmatprep.subr.bf16.mxu0 %v7035_v42  ;;  %v7048_v10 = vld [vmem:[%s10520_s3 + $0x4a0] ss:$16 sps:$4 sm:$0xff]   ;;  %v7053_v42 = vld [vmem:[%s10520_s3 + $0x68c] ss:$16 sps:$4 sm:$0xff]  }
 0x283   :  { %3843 = vmatprep.subr.bf16.mxu1 %v7038_v15  ;;  %v7056_v15 = vld [vmem:[%s10520_s3 + $0x484] ss:$16 sps:$4 sm:$0xff]  }
 0x285   :  { %2695 = vmatpush2.bf16.msra.mxu0 %v7033_v60  ;;  %3730 = vmatmul.mubr.bf16.vlgmr.msra.gmra.mxu1 %v8162_v16  ;;  %v8664_v60 = vpack.c.bf16 %v8190_v39, %v8182_v33  ;;  %v7062_v33 = vld [vmem:[%s10520_s3 + $0x464] ss:$16 sps:$4 sm:$0xff]   ;;  %v7057_v39 = vld [vmem:[%s10520_s3 + $0x668] ss:$16 sps:$4 sm:$0xff]  }
 0x286   :  { %3739 = vmatprep.mubr.bf16.mxu1 %v8634_v51  ;;  %3844 = vmatpush1.bf16.msra.mxu1 %v7036_v11  ;;  %v7051_v11 = vld [vmem:[%s10520_s3 + $0x688] ss:$16 sps:$4 sm:$0xff]  }
 0x287   :  { %2696 = vmatprep.subr.bf16.mxu0 %v7041_v45  ;;  %3845 = vmatprep.subr.bf16.mxu1 %v7044_v55  ;;  %v7054_v45 = vld [vmem:[%s10520_s3 + $0x480] ss:$16 sps:$4 sm:$0xff]   ;;  %v7059_v55 = vld [vmem:[%s10520_s3 + $0x66c] ss:$16 sps:$4 sm:$0xff]  }
 0x289   :  { %2697 = vmatpush2.bf16.msra.mxu0 %v7039_v6  ;;  %v7060_v6 = vld [vmem:[%s10520_s3 + $0x460] ss:$16 sps:$4 sm:$0xff]  }
 0x28a   :  { %3846 = vmatpush1.bf16.msra.mxu1 %v7042_v4  ;;  %2698 = vmatprep.subr.bf16.mxu0 %v7047_v41  ;;  %v7065_v4 = vld [vmem:[%s10520_s3 + $0x64c] ss:$16 sps:$4 sm:$0xff]   ;;  %v7068_v41 = vld [vmem:[%s10520_s3 + $0x444] ss:$16 sps:$4 sm:$0xff]  }
 0x28b   :  { %3847 = vmatprep.subr.bf16.mxu1 %v7050_v23  ;;  %v8694_v23 = vpack.c.bf16 %v8202_v49, %v8194_v43  ;;  %v7074_v43 = vld [vmem:[%s10520_s3 + $0x424] ss:$16 sps:$4 sm:$0xff]   ;;  %v7069_v49 = vld [vmem:[%s10520_s3 + $0x628] ss:$16 sps:$4 sm:$0xff]  }
 0x28d   :  { %2699 = vmatpush2.bf16.msra.mxu0 %v7045_v29  ;;  %3740 = vmatmul.mubr.bf16.gmra.mxu1 %v8174_v27  ;;  %v7063_v29 = vld [vmem:[%s10520_s3 + $0x648] ss:$16 sps:$4 sm:$0xff]  }
 0x28e   :  { %3749 = vmatprep.mubr.bf16.mxu1 %v8664_v60  ;;  %3848 = vmatpush1.bf16.msra.mxu1 %v7048_v10  ;;  %v7066_v10 = vld [vmem:[%s10520_s3 + $0x440] ss:$16 sps:$4 sm:$0xff]  }
 0x28f   :  { %2700 = vmatprep.subr.bf16.mxu0 %v7053_v42  ;;  %3849 = vmatprep.subr.bf16.mxu1 %v7056_v15  ;;  %v7071_v42 = vld [vmem:[%s10520_s3 + $0x62c] ss:$16 sps:$4 sm:$0xff]   ;;  %v7072_v15 = vld [vmem:[%s10520_s3 + $0x420] ss:$16 sps:$4 sm:$0xff]  }
 0x291   :  { %2701 = vmatpush2.bf16.msra.mxu0 %v7051_v11  ;;  %v7077_v11 = vld [vmem:[%s10520_s3 + $0x60c] ss:$16 sps:$4 sm:$0xff]  }
 0x292   :  { %3850 = vmatpush1.bf16.msra.mxu1 %v7054_v45  ;;  %2702 = vmatprep.subr.bf16.mxu0 %v7059_v55  ;;  %v7080_v45 = vld [vmem:[%s10520_s3 + $0x404] ss:$16 sps:$4 sm:$0xff]   ;;  %v7075_v55 = vld [vmem:[%s10520_s3 + $0x608] ss:$16 sps:$4 sm:$0xff]  }
 0x293   :  { %3851 = vmatprep.subr.bf16.mxu1 %v7062_v33  ;;  %v7078_v33 = vld [vmem:[%s10520_s3 + $0x400] ss:$16 sps:$4 sm:$0xff]  }
 0x295   :  { %2703 = vmatpush2.bf16.msra.mxu0 %v7057_v39  ;;  %3750 = vmatmul.mubr.bf16.gmra.mxu1 %v8186_v37  ;;  %v7083_v39 = vld [vmem:[%s10520_s3 + $0x9ec] ss:$16 sps:$4 sm:$0xff]  }
 0x296   :  { %3759 = vmatprep.mubr.bf16.mxu1 %v8694_v23  ;;  %3852 = vmatpush1.bf16.msra.mxu1 %v7060_v6  ;;  %v7086_v6 = vld [vmem:[%s10520_s3 + $0x2ec] ss:$16 sps:$4 sm:$0xff]  }
 0x297   :  { %2704 = vmatprep.subr.bf16.mxu0 %v7065_v4  ;;  %3853 = vmatprep.subr.bf16.mxu1 %v7068_v41  ;;  %v7081_v4 = vld [vmem:[%s10520_s3 + $0x9e8] ss:$16 sps:$4 sm:$0xff]   ;;  %v7089_v41 = vld [vmem:[%s10520_s3 + $0x9cc] ss:$16 sps:$4 sm:$0xff]  }
 0x299   :  { %2705 = vmatpush2.bf16.msra.mxu0 %v7063_v29  ;;  %v7084_v29 = vld [vmem:[%s10520_s3 + $0x2e8] ss:$16 sps:$4 sm:$0xff]  }
 0x29a   :  { %3854 = vmatpush1.bf16.msra.mxu1 %v7066_v10  ;;  %2706 = vmatprep.subr.bf16.mxu0 %v7071_v42  ;;  %v8747_v10 = vpack.c.bf16 %v8468_v20, %v8457_v21  ;;  %v7092_v42 = vld [vmem:[%s10520_s3 + $0x2cc] ss:$16 sps:$4 sm:$0xff]   ;;  %v7093_v21 = vld [vmem:[%s10520_s3 + $0x9a8] ss:$16 sps:$4 sm:$0xff]  }
 0x29b   :  { %3855 = vmatprep.subr.bf16.mxu1 %v7074_v43  ;;  %v7087_v43 = vld [vmem:[%s10520_s3 + $0x9c8] ss:$16 sps:$4 sm:$0xff]   ;;  %v7095_v20 = vld [vmem:[%s10520_s3 + $0x9ac] ss:$16 sps:$4 sm:$0xff]  }
 0x29d   :  { %2707 = vmatpush2.bf16.msra.mxu0 %v7069_v49  ;;  %3760 = vmatmul.mubr.bf16.gmra.mxu1 %v8198_v47  ;;  %v8757_v49 = vpop.f32.mrf.mxu0 }
 0x29e   :  { %3856 = vmatpush1.bf16.msra.mxu1 %v7072_v15  ;;  %2708 = vmatprep.subr.bf16.mxu0 %v7077_v11  ;;  %10550 = vst [vmem:[#allocation12_spill] sm:$0xff] %v8757_v49  ;;  %v8759_v15 = vpop.f32.mrf.mxu1 }
 0x29f   :  { %3857 = vmatprep.subr.bf16.mxu1 %v7080_v45  ;;  %3875 = vmatprep.mubr.bf16.mxu1 %v10549_v57  ;;  %v8775_v11 = vpop.f32.mrf.mxu0 }
 0x2a0   :  { %v8777_v45 = vpop.f32.mrf.mxu1 }
 0x2a1   :  { %2709 = vmatpush2.bf16.msra.mxu0 %v7075_v55  ;;  %v7101_v55 = vld [vmem:[%s10520_s3 + $0x98c] ss:$16 sps:$4 sm:$0xff]  }
 0x2a2   :  { %3858 = vmatpush1.bf16.msra.mxu1 %v7078_v33  ;;  %2824 = vmatprep.subr.bf16.mxu0 %v7083_v39  ;;  %v7096_v33 = vld [vmem:[%s10520_s3 + $0x2a8] ss:$16 sps:$4 sm:$0xff]   ;;  %v7104_v39 = vld [vmem:[%s10520_s3 + $0x28c] ss:$16 sps:$4 sm:$0xff]  }
 0x2a3   :  { %3989 = vmatprep.subr.bf16.mxu1 %v7086_v6  ;;  %v7099_v6 = vld [vmem:[%s10520_s3 + $0x988] ss:$16 sps:$4 sm:$0xff]  }
 0x2a4   :  { %2711 = vmatmul.mubr.bf16.vlgmr.msra.gmra.mxu0 %v8218_v0  ;;  %v7090_v0 = vld [vmem:[%s10520_s3 + $0x2c8] ss:$16 sps:$4 sm:$0xff]  }
 0x2a5   :  { %2720 = vmatprep.mubr.bf16.mxu0 %v8244_v25  ;;  %2825 = vmatpush1.bf16.msra.mxu0 %v7081_v4  ;;  %v7098_v25 = vld [vmem:[%s10520_s3 + $0x2ac] ss:$16 sps:$4 sm:$0xff]   ;;  %v8793_v4 = vpop.f32.mrf.mxu0 }
 0x2a6   :  { %3876 = vmatmul.mubr.bf16.vlgmr.msra.gmra.mxu1 %v8747_v10  ;;  %2826 = vmatprep.subr.bf16.mxu0 %v7089_v41  ;;  %10551 = vst [vmem:[#allocation13_spill] sm:$0xff] %v8793_v4  ;;  %v8795_v41 = vpop.f32.mrf.mxu1 }
 0x2a7   :  { %3990 = vmatpush1.bf16.msra.mxu1 %v7084_v29  ;;  %3885 = vmatprep.mubr.bf16.mxu1 %v10549_v57  ;;  %v7110_v29 = vld [vmem:[%s10520_s3 + $0x26c] ss:$16 sps:$4 sm:$0xff]  }
 0x2a8   :  { %3991 = vmatprep.subr.bf16.mxu1 %v7092_v42  ;;  %v7105_v42 = vld [vmem:[%s10520_s3 + $0x968] ss:$16 sps:$4 sm:$0xff]  }
 0x2a9   :  { %2827 = vmatpush1.bf16.msra.mxu0 %v7087_v43  ;;  %v8811_v43 = vpop.f32.mrf.mxu0 }
 0x2aa   :  { %2828 = vmatprep.subr.bf16.mxu0 %v7095_v20  ;;  %v8813_v20 = vpop.f32.mrf.mxu1 }
 0x2ab   :  { %3992 = vmatpush1.bf16.msra.mxu1 %v7090_v0  ;;  %v7113_v0 = vld [vmem:[%s10520_s3 + $0x94c] ss:$16 sps:$4 sm:$0xff]  }
 0x2ac   :  { %2721 = vmatmul.mubr.bf16.gmra.mxu0 %v8254_v35  ;;  %3993 = vmatprep.subr.bf16.mxu1 %v7098_v25  ;;  %v7107_v35 = vld [vmem:[%s10520_s3 + $0x96c] ss:$16 sps:$4 sm:$0xff]   ;;  %v7108_v25 = vld [vmem:[%s10520_s3 + $0x268] ss:$16 sps:$4 sm:$0xff]  }
 0x2ad   :  { %2730 = vmatprep.mubr.bf16.mxu0 %v8280_v1  ;;  %2829 = vmatpush1.bf16.msra.mxu0 %v7093_v21  ;;  %v7102_v1 = vld [vmem:[%s10520_s3 + $0x288] ss:$16 sps:$4 sm:$0xff]   ;;  %v8823_v21 = vpack.c.bf16 %v8488_v58, %v8477_v26  ;;  %v7122_v58 = vld [vmem:[%s10520_s3 + $0x22c] ss:$16 sps:$4 sm:$0xff]  }
 0x2ae   :  { %3886 = vmatmul.mubr.bf16.gmra.mxu1 %v8466_v56  ;;  %2830 = vmatprep.subr.bf16.mxu0 %v7101_v55  ;;  %v7116_v55 = vld [vmem:[%s10520_s3 + $0x24c] ss:$16 sps:$4 sm:$0xff]   ;;  %v7117_v26 = vld [vmem:[%s10520_s3 + $0x928] ss:$16 sps:$4 sm:$0xff]  }
 0x2af   :  { %3994 = vmatpush1.bf16.msra.mxu1 %v7096_v33  ;;  %3895 = vmatprep.mubr.bf16.mxu1 %v10549_v57  ;;  %10552 = vst [vmem:[#allocation14_spill] sm:$0xff] %v8823_v21  ;;  %v7111_v33 = vld [vmem:[%s10520_s3 + $0x948] ss:$16 sps:$4 sm:$0xff]  }
 0x2b0   :  { %3995 = vmatprep.subr.bf16.mxu1 %v7104_v39  ;;  %v8833_v39 = vpop.f32.mrf.mxu0 }
 0x2b1   :  { %2831 = vmatpush1.bf16.msra.mxu0 %v7099_v6  ;;  %10553 = vst [vmem:[#allocation15_spill] sm:$0xff] %v8833_v39  ;;  %v8835_v6 = vpop.f32.mrf.mxu1 }
 0x2b2   :  { %2832 = vmatprep.subr.bf16.mxu0 %v7107_v35  ;;  %v8851_v35 = vpop.f32.mrf.mxu0 }
 0x2b3   :  { %3996 = vmatpush1.bf16.msra.mxu1 %v7102_v1  ;;  %10554 = vst [vmem:[#allocation16_spill] sm:$0xff] %v8851_v35  ;;  %v8853_v1 = vpop.f32.mrf.mxu1 }
 0x2b4   :  { %2731 = vmatmul.mubr.bf16.gmra.mxu0 %v8290_v5  ;;  %3997 = vmatprep.subr.bf16.mxu1 %v7110_v29  ;;  %v7119_v5 = vld [vmem:[%s10520_s3 + $0x92c] ss:$16 sps:$4 sm:$0xff]  }
 0x2b5   :  { %2740 = vmatprep.mubr.bf16.mxu0 %v8316_v46  ;;  %2833 = vmatpush1.bf16.msra.mxu0 %v7105_v42  ;;  %v7114_v46 = vld [vmem:[%s10520_s3 + $0x248] ss:$16 sps:$4 sm:$0xff]   ;;  %v7125_v29 = vld [vmem:[%s10520_s3 + $0x90c] ss:$16 sps:$4 sm:$0xff]  }
 0x2b6   :  { %3896 = vmatmul.mubr.bf16.gmra.mxu1 %v8823_v21  ;;  %2834 = vmatprep.subr.bf16.mxu0 %v7113_v0  ;;  %v7120_v42 = vld [vmem:[%s10520_s3 + $0x228] ss:$16 sps:$4 sm:$0xff]   ;;  %v7128_v0 = vld [vmem:[%s10520_s3 + $0x20c] ss:$16 sps:$4 sm:$0xff]  }
 0x2b7   :  { %3998 = vmatpush1.bf16.msra.mxu1 %v7108_v25  ;;  %3905 = vmatprep.mubr.bf16.mxu1 %v10549_v57  ;;  %v8867_v25 = vpack.c.bf16 %v8168_v19, %v8160_v13  ;;  %v7126_v13 = vld [vmem:[%s10520_s3 + $0x208] ss:$16 sps:$4 sm:$0xff]   ;;  %v7134_v19 = vld [vmem:[%s10520_s3 + $0x3ec] ss:$16 sps:$4 sm:$0xff]  }
 0x2b8   :  { %3999 = vmatprep.subr.bf16.mxu1 %v7116_v55  ;;  %v7123_v55 = vld [vmem:[%s10520_s3 + $0x908] ss:$16 sps:$4 sm:$0xff]  }
 0x2b9   :  { %2835 = vmatpush1.bf16.msra.mxu0 %v7111_v33  ;;  %v8872_v33 = vpop.f32.mrf.mxu0 }
 0x2ba   :  { %2836 = vmatprep.subr.bf16.mxu0 %v7119_v5  ;;  %10555 = vst [vmem:[#allocation17_spill] sm:$0xff] %v8872_v33  ;;  %v8874_v5 = vpop.f32.mrf.mxu1 }
 0x2bb   :  { %4000 = vmatpush1.bf16.msra.mxu1 %v7114_v46  ;;  %v8888_v46 = vpop.f32.mrf.mxu0 }
 0x2bc   :  { %2741 = vmatmul.mubr.bf16.gmra.mxu0 %v8323_v53  ;;  %4001 = vmatprep.subr.bf16.mxu1 %v7122_v58  ;;  %v7131_v53 = vld [vmem:[%s10520_s3 + $0x2e4] ss:$16 sps:$4 sm:$0xff]   ;;  %10556 = vst [vmem:[#allocation18_spill] sm:$0xff] %v8888_v46  ;;  %v8890_v58 = vpop.f32.mrf.mxu1 }
 0x2bd   :  { %2837 = vmatpush1.bf16.msra.mxu0 %v7117_v26  ;;  %2856 = vmatprep.mubr.bf16.mxu0 %v10549_v57  ;;  %v7129_v26 = vld [vmem:[%s10520_s3 + $0x2e0] ss:$16 sps:$4 sm:$0xff]  }
 0x2be   :  { %3906 = vmatmul.mubr.bf16.gmra.mxu1 %v8486_v52  ;;  %2838 = vmatprep.subr.bf16.mxu0 %v7125_v29  ;;  %v7137_v29 = vld [vmem:[%s10520_s3 + $0x2c4] ss:$16 sps:$4 sm:$0xff]  }
 0x2bf   :  { %4002 = vmatpush1.bf16.msra.mxu1 %v7120_v42  ;;  %4021 = vmatprep.mubr.bf16.mxu1 %v8867_v25  ;;  %v7132_v42 = vld [vmem:[%s10520_s3 + $0x3e8] ss:$16 sps:$4 sm:$0xff]  }
 0x2c0   :  { %4003 = vmatprep.subr.bf16.mxu1 %v7128_v0  ;;  %v7140_v0 = vld [vmem:[%s10520_s3 + $0x3cc] ss:$16 sps:$4 sm:$0xff]  }
 0x2c1   :  { %2839 = vmatpush1.bf16.msra.mxu0 %v7123_v55 }
 0x2c2   :  { %3770 = vmatprep.subr.bf16.mxu0 %v7131_v53  ;;  %v7135_v53 = vld [vmem:[%s10520_s3 + $0x2c0] ss:$16 sps:$4 sm:$0xff]  }
 0x2c3   :  { %4004 = vmatpush1.bf16.msra.mxu1 %v7126_v13 }
 0x2c4   :  { %2857 = vmatmul.mubr.bf16.vlgmr.msra.gmra.mxu0 %v8511_v18  ;;  %4005 = vmatprep.subr.bf16.mxu1 %v7134_v19  ;;  %v7143_v18 = vld [vmem:[%s10520_s3 + $0x2a4] ss:$16 sps:$4 sm:$0xff]  }
 0x2c5   :  { %3771 = vmatpush1.bf16.msra.mxu0 %v7129_v26  ;;  %v2493_v55 = vpop.f32.mrf.mxu0  ;;  %v2566_v33 = vpop.f32.mrf.mxu1  ;;  %2866 = vmatprep.mubr.bf16.mxu0 %v10549_v57  ;;  %v7138_v26 = vld [vmem:[%s10520_s3 + $0x3c8] ss:$16 sps:$4 sm:$0xff]  }
 0x2c6   :  { %v8909_v13 = vadd.f32 %v2566_v33, %v2493_v55  ;;  %3772 = vmatprep.subr.bf16.mxu0 %v7137_v29  ;;  %v7146_v33 = vld [vmem:[%s10520_s3 + $0x3ac] ss:$16 sps:$4 sm:$0xff]  }
 0x2c7   :  { %4006 = vmatpush2.bf16.msra.mxu1 %v7132_v42  ;;  %v2495_v19 = vpop.f32.mrf.mxu0  ;;  %v2568_v39 = vpop.f32.mrf.mxu1  ;;  %v7141_v42 = vld [vmem:[%s10520_s3 + $0x2a0] ss:$16 sps:$4 sm:$0xff]  }
 0x2c8   :  { %v8917_v46 = vadd.f32 %v2568_v39, %v2495_v19  ;;  %4007 = vmatprep.subr.bf16.mxu1 %v7140_v0  ;;  %v7149_v39 = vld [vmem:[%s10520_s3 + $0x284] ss:$16 sps:$4 sm:$0xff]  }
 0x2c9   :  { %3773 = vmatpush1.bf16.msra.mxu0 %v7135_v53  ;;  %v2497_v29 = vpop.f32.mrf.mxu0  ;;  %v2570_v55 = vpop.f32.mrf.mxu1  ;;  %v7144_v53 = vld [vmem:[%s10520_s3 + $0x3a8] ss:$16 sps:$4 sm:$0xff]  }
 0x2ca   :  { %v8925_v35 = vadd.f32 %v2570_v55, %v2497_v29  ;;  %3774 = vmatprep.subr.bf16.mxu0 %v7143_v18  ;;  %v7152_v18 = vld [vmem:[%s10520_s3 + $0x38c] ss:$16 sps:$4 sm:$0xff]  }
 0x2cb   :  { %4008 = vmatpush2.bf16.msra.mxu1 %v7138_v26  ;;  %v8930_v0 = vpop.f32.mrf.mxu0  ;;  %v8932_v19 = vpop.f32.mrf.mxu1  ;;  %v7147_v26 = vld [vmem:[%s10520_s3 + $0x280] ss:$16 sps:$4 sm:$0xff]  }
 0x2cc   :  { %10557 = vst [vmem:[#allocation19_spill] sm:$0xff] %v8930_v0  ;;  %10558 = vst [vmem:[#allocation20_spill] sm:$0xff] %v8932_v19  ;;  %2867 = vmatmul.mubr.bf16.gmra.mxu0 %v8539_v59  ;;  %4009 = vmatprep.subr.bf16.mxu1 %v7146_v33  ;;  %v7155_v59 = vld [vmem:[%s10520_s3 + $0x264] ss:$16 sps:$4 sm:$0xff]  }
 0x2cd   :  { %3775 = vmatpush1.bf16.msra.mxu0 %v7141_v42  ;;  %v2503_v29 = vpop.f32.mrf.mxu0  ;;  %v2576_v55 = vpop.f32.mrf.mxu1  ;;  %2876 = vmatprep.mubr.bf16.mxu0 %v10549_v57  ;;  %v7150_v42 = vld [vmem:[%s10520_s3 + $0x388] ss:$16 sps:$4 sm:$0xff]  }
 0x2ce   :  { %v8945_v19 = vadd.f32 %v2576_v55, %v2503_v29  ;;  %3776 = vmatprep.subr.bf16.mxu0 %v7149_v39  ;;  %v7158_v29 = vld [vmem:[%s10520_s3 + $0x36c] ss:$16 sps:$4 sm:$0xff]  }
 0x2cf   :  { %4010 = vmatpush2.bf16.msra.mxu1 %v7144_v53  ;;  %v2505_v33 = vpop.f32.mrf.mxu0  ;;  %v2578_v0 = vpop.f32.mrf.mxu1  ;;  %v7153_v53 = vld [vmem:[%s10520_s3 + $0x260] ss:$16 sps:$4 sm:$0xff]  }
 0x2d0   :  { %v8953_v4 = vadd.f32 %v2578_v0, %v2505_v33  ;;  %4011 = vmatprep.subr.bf16.mxu1 %v7152_v18  ;;  %v7161_v0 = vld [vmem:[%s10520_s3 + $0x244] ss:$16 sps:$4 sm:$0xff]  }
 0x2d1   :  { %3777 = vmatpush1.bf16.msra.mxu0 %v7147_v26  ;;  %v2507_v39 = vpop.f32.mrf.mxu0  ;;  %v2580_v55 = vpop.f32.mrf.mxu1  ;;  %v7156_v26 = vld [vmem:[%s10520_s3 + $0x368] ss:$16 sps:$4 sm:$0xff]  }
 0x2d2   :  { %v8961_v49 = vadd.f32 %v2580_v55, %v2507_v39  ;;  %3778 = vmatprep.subr.bf16.mxu0 %v7155_v59  ;;  %v7164_v59 = vld [vmem:[%s10520_s3 + $0x34c] ss:$16 sps:$4 sm:$0xff]  }
 0x2d3   :  { %4012 = vmatpush2.bf16.msra.mxu1 %v7150_v42  ;;  %v8966_v18 = vpop.f32.mrf.mxu0  ;;  %v8968_v33 = vpop.f32.mrf.mxu1  ;;  %v7159_v42 = vld [vmem:[%s10520_s3 + $0x240] ss:$16 sps:$4 sm:$0xff]  }
 0x2d4   :  { %10559 = vst [vmem:[#allocation21_spill] sm:$0xff] %v8966_v18  ;;  %10560 = vst [vmem:[#allocation22_spill] sm:$0xff] %v8968_v33  ;;  %2877 = vmatmul.mubr.bf16.gmra.mxu0 %v8564_v12  ;;  %4013 = vmatprep.subr.bf16.mxu1 %v7158_v29  ;;  %v7167_v12 = vld [vmem:[%s10520_s3 + $0x224] ss:$16 sps:$4 sm:$0xff]  }
 0x2d5   :  { %3779 = vmatpush1.bf16.msra.mxu0 %v7153_v53  ;;  %v2513_v39 = vpop.f32.mrf.mxu0  ;;  %v2586_v55 = vpop.f32.mrf.mxu1  ;;  %2886 = vmatprep.mubr.bf16.mxu0 %v10549_v57  ;;  %v7162_v53 = vld [vmem:[%s10520_s3 + $0x348] ss:$16 sps:$4 sm:$0xff]  }
 0x2d6   :  { %v8981_v33 = vadd.f32 %v2586_v55, %v2513_v39  ;;  %3780 = vmatprep.subr.bf16.mxu0 %v7161_v0  ;;  %v7170_v39 = vld [vmem:[%s10520_s3 + $0x32c] ss:$16 sps:$4 sm:$0xff]  }
 0x2d7   :  { %4014 = vmatpush2.bf16.msra.mxu1 %v7156_v26  ;;  %v2515_v29 = vpop.f32.mrf.mxu0  ;;  %v2588_v18 = vpop.f32.mrf.mxu1  ;;  %v7165_v26 = vld [vmem:[%s10520_s3 + $0x220] ss:$16 sps:$4 sm:$0xff]  }
 0x2d8   :  { %v8989_v52 = vadd.f32 %v2588_v18, %v2515_v29  ;;  %4015 = vmatprep.subr.bf16.mxu1 %v7164_v59  ;;  %v7173_v18 = vld [vmem:[%s10520_s3 + $0x204] ss:$16 sps:$4 sm:$0xff]  }
 0x2d9   :  { %3781 = vmatpush1.bf16.msra.mxu0 %v7159_v42  ;;  %v2517_v0 = vpop.f32.mrf.mxu0  ;;  %v2590_v55 = vpop.f32.mrf.mxu1  ;;  %v7168_v42 = vld [vmem:[%s10520_s3 + $0x328] ss:$16 sps:$4 sm:$0xff]  }
 0x2da   :  { %v8997_v21 = vadd.f32 %v2590_v55, %v2517_v0  ;;  %3782 = vmatprep.subr.bf16.mxu0 %v7167_v12  ;;  %v7176_v12 = vld [vmem:[%s10520_s3 + $0x30c] ss:$16 sps:$4 sm:$0xff]   ;;  %v7171_v55 = vld [vmem:[%s10520_s3 + $0x200] ss:$16 sps:$4 sm:$0xff]  }
 0x2db   :  { %4016 = vmatpush2.bf16.msra.mxu1 %v7162_v53  ;;  %v9002_v59 = vpop.f32.mrf.mxu0  ;;  %v9004_v29 = vpop.f32.mrf.mxu1 }
 0x2dc   :  { %10561 = vst [vmem:[#allocation23_spill] sm:$0xff] %v9002_v59  ;;  %10562 = vst [vmem:[#allocation24_spill] sm:$0xff] %v9004_v29  ;;  %2887 = vmatmul.mubr.bf16.gmra.mxu0 %v8592_v61  ;;  %4017 = vmatprep.subr.bf16.mxu1 %v7170_v39  ;;  %v7179_v61 = vld [vmem:[%s10520_s3 + $0x3e4] ss:$16 sps:$4 sm:$0xff]  }
 0x2dd   :  { %3783 = vmatpush1.bf16.msra.mxu0 %v7165_v26  ;;  %3802 = vmatprep.mubr.bf16.mxu0 %v8867_v25  ;;  %v2523_v0 = vpop.f32.mrf.mxu0  ;;  %v2596_v53 = vpop.f32.mrf.mxu1  ;;  %v7174_v25 = vld [vmem:[%s10520_s3 + $0x308] ss:$16 sps:$4 sm:$0xff]  }
 0x2de   :  { %v9017_v29 = vadd.f32 %v2596_v53, %v2523_v0  ;;  %3784 = vmatprep.subr.bf16.mxu0 %v7173_v18  ;;  %v7182_v0 = vld [vmem:[%s10520_s3 + $0xae4] ss:$16 sps:$4 sm:$0xff]  }
 0x2df   :  { %4018 = vmatpush2.bf16.msra.mxu1 %v7168_v42  ;;  %v2525_v39 = vpop.f32.mrf.mxu0  ;;  %v2598_v59 = vpop.f32.mrf.mxu1  ;;  %v7177_v42 = vld [vmem:[%s10520_s3 + $0x3e0] ss:$16 sps:$4 sm:$0xff]  }
 0x2e0   :  { %v9025_v26 = vadd.f32 %v2598_v59, %v2525_v39  ;;  %4019 = vmatprep.subr.bf16.mxu1 %v7176_v12  ;;  %v7185_v59 = vld [vmem:[%s10520_s3 + $0x3c4] ss:$16 sps:$4 sm:$0xff]   ;;  %v7180_v12 = vld [vmem:[%s10520_s3 + $0xae0] ss:$16 sps:$4 sm:$0xff]   ;;  %v9046_v39 = vpack.c.bf16 %v8180_v30, %v8172_v24 }
 0x2e1   :  { %3785 = vmatpush1.bf16.msra.mxu0 %v7171_v55  ;;  %v2527_v18 = vpop.f32.mrf.mxu0  ;;  %v2600_v53 = vpop.f32.mrf.mxu1  ;;  %v7188_v55 = vld [vmem:[%s10520_s3 + $0xac4] ss:$16 sps:$4 sm:$0xff]   ;;  %v7186_v24 = vld [vmem:[%s10520_s3 + $0xac0] ss:$16 sps:$4 sm:$0xff]  }
 0x2e2   :  { %v9033_v56 = vadd.f32 %v2600_v53, %v2527_v18  ;;  %3786 = vmatprep.subr.bf16.mxu0 %v7179_v61  ;;  %v7183_v61 = vld [vmem:[%s10520_s3 + $0x3c0] ss:$16 sps:$4 sm:$0xff]   ;;  %v7194_v30 = vld [vmem:[%s10520_s3 + $0xaa4] ss:$16 sps:$4 sm:$0xff]  }
 0x2e3   :  { %4020 = vmatpush2.bf16.msra.mxu1 %v7174_v25  ;;  %v7191_v25 = vld [vmem:[%s10520_s3 + $0x3a4] ss:$16 sps:$4 sm:$0xff]   ;;  %v7192_v53 = vld [vmem:[%s10520_s3 + $0xaa0] ss:$16 sps:$4 sm:$0xff]  }
 0x2e4   :  { %5096 = vmatprep.subr.bf16.mxu1 %v7182_v0  ;;  %v7189_v0 = vld [vmem:[%s10520_s3 + $0x3a0] ss:$16 sps:$4 sm:$0xff]   ;;  %v7197_v18 = vld [vmem:[%s10520_s3 + $0x384] ss:$16 sps:$4 sm:$0xff]  }
 0x2e5   :  { %3787 = vmatpush2.bf16.msra.mxu0 %v7177_v42  ;;  %v7200_v42 = vld [vmem:[%s10520_s3 + $0xa84] ss:$16 sps:$4 sm:$0xff]  }
 0x2e6   :  { %4022 = vmatmul.mubr.bf16.vlgmr.msra.gmra.mxu1 %v8164_v17  ;;  %3788 = vmatprep.subr.bf16.mxu0 %v7185_v59  ;;  %v9076_v59 = vpack.c.bf16 %v8192_v40, %v8184_v34  ;;  %v7198_v34 = vld [vmem:[%s10520_s3 + $0xa80] ss:$16 sps:$4 sm:$0xff]   ;;  %v7206_v40 = vld [vmem:[%s10520_s3 + $0xa64] ss:$16 sps:$4 sm:$0xff]  }
 0x2e7   :  { %4031 = vmatprep.mubr.bf16.mxu1 %v9046_v39  ;;  %5097 = vmatpush1.bf16.msra.mxu1 %v7180_v12  ;;  %v7195_v12 = vld [vmem:[%s10520_s3 + $0x380] ss:$16 sps:$4 sm:$0xff]  }
 0x2e8   :  { %5098 = vmatprep.subr.bf16.mxu1 %v7188_v55  ;;  %v7203_v55 = vld [vmem:[%s10520_s3 + $0x364] ss:$16 sps:$4 sm:$0xff]  }
 0x2e9   :  { %3789 = vmatpush2.bf16.msra.mxu0 %v7183_v61  ;;  %v7201_v61 = vld [vmem:[%s10520_s3 + $0x360] ss:$16 sps:$4 sm:$0xff]  }
 0x2ea   :  { %3790 = vmatprep.subr.bf16.mxu0 %v7191_v25  ;;  %v7209_v25 = vld [vmem:[%s10520_s3 + $0x344] ss:$16 sps:$4 sm:$0xff]  }
 0x2eb   :  { %5099 = vmatpush1.bf16.msra.mxu1 %v7186_v24  ;;  %v7204_v24 = vld [vmem:[%s10520_s3 + $0xa60] ss:$16 sps:$4 sm:$0xff]  }
 0x2ec   :  { %5100 = vmatprep.subr.bf16.mxu1 %v7194_v30  ;;  %v7212_v30 = vld [vmem:[%s10520_s3 + $0xa44] ss:$16 sps:$4 sm:$0xff]  }
 0x2ed   :  { %3791 = vmatpush2.bf16.msra.mxu0 %v7189_v0  ;;  %v9106_v0 = vpack.c.bf16 %v8204_v50, %v8196_v44  ;;  %v7210_v44 = vld [vmem:[%s10520_s3 + $0xa40] ss:$16 sps:$4 sm:$0xff]   ;;  %v7218_v50 = vld [vmem:[%s10520_s3 + $0xa24] ss:$16 sps:$4 sm:$0xff]  }
 0x2ee   :  { %4032 = vmatmul.mubr.bf16.gmra.mxu1 %v8176_v28  ;;  %3792 = vmatprep.subr.bf16.mxu0 %v7197_v18  ;;  %v7207_v18 = vld [vmem:[%s10520_s3 + $0x340] ss:$16 sps:$4 sm:$0xff]  }
 0x2ef   :  { %4041 = vmatprep.mubr.bf16.mxu1 %v9076_v59  ;;  %5101 = vmatpush1.bf16.msra.mxu1 %v7192_v53  ;;  %v7215_v53 = vld [vmem:[%s10520_s3 + $0x324] ss:$16 sps:$4 sm:$0xff]  }
 0x2f0   :  { %5102 = vmatprep.subr.bf16.mxu1 %v7200_v42  ;;  %v7213_v42 = vld [vmem:[%s10520_s3 + $0x320] ss:$16 sps:$4 sm:$0xff]  }
 0x2f1   :  { %3793 = vmatpush2.bf16.msra.mxu0 %v7195_v12  ;;  %v7221_v12 = vld [vmem:[%s10520_s3 + $0x304] ss:$16 sps:$4 sm:$0xff]  }
 0x2f2   :  { %3794 = vmatprep.subr.bf16.mxu0 %v7203_v55  ;;  %v7216_v55 = vld [vmem:[%s10520_s3 + $0xa20] ss:$16 sps:$4 sm:$0xff]  }
 0x2f3   :  { %5103 = vmatpush1.bf16.msra.mxu1 %v7198_v34  ;;  %v7224_v34 = vld [vmem:[%s10520_s3 + $0xa04] ss:$16 sps:$4 sm:$0xff]  }
 0x2f4   :  { %5104 = vmatprep.subr.bf16.mxu1 %v7206_v40  ;;  %v9136_v40 = vpack.c.bf16 %v8356_v8, %v8336_v62  ;;  %v7222_v62 = vld [vmem:[%s10520_s3 + $0xa00] ss:$16 sps:$4 sm:$0xff]   ;;  %v7230_v8 = vld [vmem:[%s10520_s3 + $0xbe4] ss:$16 sps:$4 sm:$0xff]  }
 0x2f5   :  { %3795 = vmatpush2.bf16.msra.mxu0 %v7201_v61  ;;  %v7219_v61 = vld [vmem:[%s10520_s3 + $0x300] ss:$16 sps:$4 sm:$0xff]  }
 0x2f6   :  { %4042 = vmatmul.mubr.bf16.gmra.mxu1 %v8188_v38  ;;  %3796 = vmatprep.subr.bf16.mxu0 %v7209_v25  ;;  %v7227_v25 = vld [vmem:[%s10520_s3 + $0xec] ss:$16 sps:$4 sm:$0xff]  }
 0x2f7   :  { %4051 = vmatprep.mubr.bf16.mxu1 %v9106_v0  ;;  %5105 = vmatpush1.bf16.msra.mxu1 %v7204_v24  ;;  %v7225_v24 = vld [vmem:[%s10520_s3 + $0xe8] ss:$16 sps:$4 sm:$0xff]  }
 0x2f8   :  { %5106 = vmatprep.subr.bf16.mxu1 %v7212_v30  ;;  %v7233_v30 = vld [vmem:[%s10520_s3 + $0xcc] ss:$16 sps:$4 sm:$0xff]  }
 0x2f9   :  { %3797 = vmatpush2.bf16.msra.mxu0 %v7207_v18  ;;  %v9158_v18 = vpop.f32.mrf.mxu1 }
 0x2fa   :  { %3798 = vmatprep.subr.bf16.mxu0 %v7215_v53  ;;  %v7228_v53 = vld [vmem:[%s10520_s3 + $0xbe0] ss:$16 sps:$4 sm:$0xff]  }
 0x2fb   :  { %5107 = vmatpush1.bf16.msra.mxu1 %v7210_v44  ;;  %v7236_v44 = vld [vmem:[%s10520_s3 + $0xbc4] ss:$16 sps:$4 sm:$0xff]  }
 0x2fc   :  { %5108 = vmatprep.subr.bf16.mxu1 %v7218_v50  ;;  %v7231_v50 = vld [vmem:[%s10520_s3 + $0xc8] ss:$16 sps:$4 sm:$0xff]  }
 0x2fd   :  { %3799 = vmatpush2.bf16.msra.mxu0 %v7213_v42 }
 0x2fe   :  { %4052 = vmatmul.mubr.bf16.gmra.mxu1 %v8200_v48  ;;  %3800 = vmatprep.subr.bf16.mxu0 %v7221_v12  ;;  %v7239_v12 = vld [vmem:[%s10520_s3 + $0xac] ss:$16 sps:$4 sm:$0xff]  }
 0x2ff   :  { %5109 = vmatpush1.bf16.msra.mxu1 %v7216_v55  ;;  %5128 = vmatprep.mubr.bf16.mxu1 %v9136_v40  ;;  %v7237_v55 = vld [vmem:[%s10520_s3 + $0xa8] ss:$16 sps:$4 sm:$0xff]  }
 0x300   :  { %5110 = vmatprep.subr.bf16.mxu1 %v7224_v34 }
 0x301   :  { %3801 = vmatpush2.bf16.msra.mxu0 %v7219_v61  ;;  %v7245_v61 = vld [vmem:[%s10520_s3 + $0x8c] ss:$16 sps:$4 sm:$0xff]  }
 0x302   :  { %3916 = vmatprep.subr.bf16.mxu0 %v7227_v25  ;;  %v7240_v25 = vld [vmem:[%s10520_s3 + $0xba0] ss:$16 sps:$4 sm:$0xff]  }
 0x303   :  { %5111 = vmatpush1.bf16.msra.mxu1 %v7222_v62  ;;  %v7248_v62 = vld [vmem:[%s10520_s3 + $0xb84] ss:$16 sps:$4 sm:$0xff]  }
 0x304   :  { %3803 = vmatmul.mubr.bf16.vlgmr.msra.gmra.mxu0 %v8164_v17  ;;  %5112 = vmatprep.subr.bf16.mxu1 %v7230_v8  ;;  %v7234_v17 = vld [vmem:[%s10520_s3 + $0xbc0] ss:$16 sps:$4 sm:$0xff]   ;;  %v7243_v8 = vld [vmem:[%s10520_s3 + $0x88] ss:$16 sps:$4 sm:$0xff]  }
 0x305   :  { %3812 = vmatprep.mubr.bf16.mxu0 %v9046_v39  ;;  %3917 = vmatpush1.bf16.msra.mxu0 %v7225_v24  ;;  %v9171_v42 = vpop.f32.mrf.mxu1  ;;  %v7242_v39 = vld [vmem:[%s10520_s3 + $0xba4] ss:$16 sps:$4 sm:$0xff]  }
 0x306   :  { %3918 = vmatprep.subr.bf16.mxu0 %v7233_v30  ;;  %v7251_v30 = vld [vmem:[%s10520_s3 + $0x6c] ss:$16 sps:$4 sm:$0xff]  }
 0x307   :  { %5113 = vmatpush2.bf16.msra.mxu1 %v7228_v53  ;;  %v9185_v34 = vpop.f32.mrf.mxu1  ;;  %v7249_v53 = vld [vmem:[%s10520_s3 + $0x68] ss:$16 sps:$4 sm:$0xff]  }
 0x308   :  { %5114 = vmatprep.subr.bf16.mxu1 %v7236_v44 }
 0x309   :  { %3919 = vmatpush1.bf16.msra.mxu0 %v7231_v50  ;;  %v9201_v24 = vpop.f32.mrf.mxu1  ;;  %v7257_v50 = vld [vmem:[%s10520_s3 + $0x4c] ss:$16 sps:$4 sm:$0xff]  }
 0x30a   :  { %3920 = vmatprep.subr.bf16.mxu0 %v7239_v12  ;;  %v7252_v12 = vld [vmem:[%s10520_s3 + $0xb60] ss:$16 sps:$4 sm:$0xff]  }
 0x30b   :  { %5115 = vmatpush2.bf16.msra.mxu1 %v7234_v17  ;;  %v9215_v44 = vpop.f32.mrf.mxu1  ;;  %v7260_v17 = vld [vmem:[%s10520_s3 + $0xb44] ss:$16 sps:$4 sm:$0xff]  }
 0x30c   :  { %3813 = vmatmul.mubr.bf16.gmra.mxu0 %v8176_v28  ;;  %5116 = vmatprep.subr.bf16.mxu1 %v7242_v39  ;;  %v7246_v28 = vld [vmem:[%s10520_s3 + $0xb80] ss:$16 sps:$4 sm:$0xff]   ;;  %10563 = vst [vmem:[#allocation25_spill] sm:$0xff] %v9215_v44  ;;  %v7255_v39 = vld [vmem:[%s10520_s3 + $0x48] ss:$16 sps:$4 sm:$0xff]  }
 0x30d   :  { %3822 = vmatprep.mubr.bf16.mxu0 %v9076_v59  ;;  %3921 = vmatpush1.bf16.msra.mxu0 %v7237_v55  ;;  %v7254_v59 = vld [vmem:[%s10520_s3 + $0xb64] ss:$16 sps:$4 sm:$0xff]   ;;  %v9231_v55 = vpop.f32.mrf.mxu1  ;;  %v7311_v44 = vld [vmem:[%s10520_s3 + $0x12c] ss:$16 sps:$4 sm:$0xff]  }
 0x30e   :  { %3922 = vmatprep.subr.bf16.mxu0 %v7245_v61  ;;  %v7263_v61 = vld [vmem:[%s10520_s3 + $0x2c] ss:$16 sps:$4 sm:$0xff]  }
 0x30f   :  { %5117 = vmatpush2.bf16.msra.mxu1 %v7240_v25  ;;  %v7261_v25 = vld [vmem:[%s10520_s3 + $0x28] ss:$16 sps:$4 sm:$0xff]  }
 0x310   :  { %5118 = vmatprep.subr.bf16.mxu1 %v7248_v62  ;;  %v9245_v62 = vpop.f32.mrf.mxu1 }
 0x311   :  { %3923 = vmatpush1.bf16.msra.mxu0 %v7243_v8  ;;  %v7269_v8 = vld [vmem:[%s10520_s3 + $0xc] ss:$16 sps:$4 sm:$0xff]  }
 0x312   :  { %3924 = vmatprep.subr.bf16.mxu0 %v7251_v30  ;;  %v7264_v30 = vld [vmem:[%s10520_s3 + $0xb20] ss:$16 sps:$4 sm:$0xff]  }
 0x313   :  { %5119 = vmatpush2.bf16.msra.mxu1 %v7246_v28  ;;  %v7272_v28 = vld [vmem:[%s10520_s3 + $0xb04] ss:$16 sps:$4 sm:$0xff]  }
 0x314   :  { %3823 = vmatmul.mubr.bf16.gmra.mxu0 %v8188_v38  ;;  %5120 = vmatprep.subr.bf16.mxu1 %v7254_v59  ;;  %v7258_v38 = vld [vmem:[%s10520_s3 + $0xb40] ss:$16 sps:$4 sm:$0xff]   ;;  %v7267_v59 = vld [vmem:[%s10520_s3 + $0x8] ss:$16 sps:$4 sm:$0xff]  }
 0x315   :  { %3832 = vmatprep.mubr.bf16.mxu0 %v9106_v0  ;;  %3925 = vmatpush1.bf16.msra.mxu0 %v7249_v53  ;;  %v7266_v0 = vld [vmem:[%s10520_s3 + $0xb24] ss:$16 sps:$4 sm:$0xff]   ;;  %v9261_v53 = vpop.f32.mrf.mxu1 }
 0x316   :  { %3926 = vmatprep.subr.bf16.mxu0 %v7257_v50  ;;  %v7275_v50 = vld [vmem:[%s10520_s3 + $0x1ec] ss:$16 sps:$4 sm:$0xff]  }
 0x317   :  { %5121 = vmatpush2.bf16.msra.mxu1 %v7252_v12  ;;  %v7273_v12 = vld [vmem:[%s10520_s3 + $0x1e8] ss:$16 sps:$4 sm:$0xff]  }
 0x318   :  { %5122 = vmatprep.subr.bf16.mxu1 %v7260_v17  ;;  %v9275_v17 = vpop.f32.mrf.mxu1 }
 0x319   :  { %3927 = vmatpush1.bf16.msra.mxu0 %v7255_v39  ;;  %10564 = vst [vmem:[#allocation26_spill] sm:$0xff] %v9275_v17  ;;  %v9277_v39 = vpop.f32.mrf.mxu0  ;;  %v7299_v17 = vld [vmem:[%s10520_s3 + $0x16c] ss:$16 sps:$4 sm:$0xff]  }
 0x31a   :  { %3928 = vmatprep.subr.bf16.mxu0 %v7263_v61  ;;  %v7281_v61 = vld [vmem:[%s10520_s3 + $0x1cc] ss:$16 sps:$4 sm:$0xff]  }
 0x31b   :  { %5123 = vmatpush2.bf16.msra.mxu1 %v7258_v38  ;;  %v7276_v38 = vld [vmem:[%s10520_s3 + $0xee0] ss:$16 sps:$4 sm:$0xff]  }
 0x31c   :  { %3833 = vmatmul.mubr.bf16.gmra.mxu0 %v8200_v48  ;;  %5124 = vmatprep.subr.bf16.mxu1 %v7266_v0  ;;  %v7270_v48 = vld [vmem:[%s10520_s3 + $0xb00] ss:$16 sps:$4 sm:$0xff]  }
 0x31d   :  { %3929 = vmatpush1.bf16.msra.mxu0 %v7261_v25  ;;  %3948 = vmatprep.mubr.bf16.mxu0 %v8498_v2  ;;  %v7278_v2 = vld [vmem:[%s10520_s3 + $0xee4] ss:$16 sps:$4 sm:$0xff]  }
 0x31e   :  { %3930 = vmatprep.subr.bf16.mxu0 %v7269_v8  ;;  %v7284_v25 = vld [vmem:[%s10520_s3 + $0xec4] ss:$16 sps:$4 sm:$0xff]   ;;  %v9290_v8 = vpack.c.bf16 %v8374_v36, %v8364_v14  ;;  %v7282_v36 = vld [vmem:[%s10520_s3 + $0xec0] ss:$16 sps:$4 sm:$0xff]  }
 0x31f   :  { %5125 = vmatpush2.bf16.msra.mxu1 %v7264_v30 }
 0x320   :  { %5126 = vmatprep.subr.bf16.mxu1 %v7272_v28  ;;  %v7279_v28 = vld [vmem:[%s10520_s3 + $0x1c8] ss:$16 sps:$4 sm:$0xff]  }
 0x321   :  { %3931 = vmatpush1.bf16.msra.mxu0 %v7267_v59  ;;  %v9298_v59 = vpop.f32.mrf.mxu1 }
 0x322   :  { %3932 = vmatprep.subr.bf16.mxu0 %v7275_v50 }
 0x323   :  { %5127 = vmatpush2.bf16.msra.mxu1 %v7270_v48  ;;  %v7287_v48 = vld [vmem:[%s10520_s3 + $0x1ac] ss:$16 sps:$4 sm:$0xff]  }
 0x324   :  { %v2639_v0 = vpop.f32.mrf.mxu0  ;;  %5242 = vmatprep.subr.bf16.mxu1 %v7278_v2  ;;  %v7290_v2 = vld [vmem:[%s10520_s3 + $0xea4] ss:$16 sps:$4 sm:$0xff]  }
 0x325   :  { %v9293_v30 = vadd.f32 %v2639_v0, %v8909_v13  ;;  %3933 = vmatpush2.bf16.msra.mxu0 %v7273_v12  ;;  %v7293_v0 = vld [vmem:[%s10520_s3 + $0x18c] ss:$16 sps:$4 sm:$0xff]  }
 0x326   :  { %5129 = vmatmul.mubr.bf16.vlgmr.msra.gmra.mxu1 %v8350_v7  ;;  %v2641_v50 = vpop.f32.mrf.mxu0  ;;  %3934 = vmatprep.subr.bf16.mxu0 %v7281_v61  ;;  %v7285_v61 = vld [vmem:[%s10520_s3 + $0x1a8] ss:$16 sps:$4 sm:$0xff]  }
 0x327   :  { %5138 = vmatprep.mubr.bf16.mxu1 %v9290_v8  ;;  %5243 = vmatpush1.bf16.msra.mxu1 %v7276_v38  ;;  %v9306_v14 = vadd.f32 %v2641_v50, %v8917_v46  ;;  %v9320_v46 = vpop.f32.mrf.mxu1  ;;  %v9335_v50 = vpack.c.bf16 %v8392_v3, %v8382_v54  ;;  %v7294_v3 = vld [vmem:[%s10520_s3 + $0xe80] ss:$16 sps:$4 sm:$0xff]  }
 0x328   :  { %v2643_v13 = vpop.f32.mrf.mxu0  ;;  %5244 = vmatprep.subr.bf16.mxu1 %v7284_v25 }
 0x329   :  { %v9315_v12 = vadd.f32 %v2643_v13, %v8925_v35  ;;  %3935 = vmatpush2.bf16.msra.mxu0 %v7279_v28  ;;  %v7288_v35 = vld [vmem:[%s10520_s3 + $0xea0] ss:$16 sps:$4 sm:$0xff]   ;;  %v7296_v28 = vld [vmem:[%s10520_s3 + $0xe84] ss:$16 sps:$4 sm:$0xff]   ;;  %10565 = vst [vmem:[#allocation27_spill] sm:$0xff] %v9335_v50  ;;  %v9343_v13 = vpop.f32.mrf.mxu1 }
 0x32a   :  { %v9322_v38 = vpop.f32.mrf.mxu0  ;;  %3936 = vmatprep.subr.bf16.mxu0 %v7287_v48 }
 0x32b   :  { %5245 = vmatpush1.bf16.msra.mxu1 %v7282_v36  ;;  %v7291_v36 = vld [vmem:[%s10520_s3 + $0x188] ss:$16 sps:$4 sm:$0xff]  }
 0x32c   :  { %v2649_v25 = vpop.f32.mrf.mxu0  ;;  %5246 = vmatprep.subr.bf16.mxu1 %v7290_v2 }
 0x32d   :  { %v9338_v48 = vadd.f32 %v2649_v25, %v8945_v19  ;;  %3937 = vmatpush2.bf16.msra.mxu0 %v7285_v61  ;;  %v7302_v61 = vld [vmem:[%s10520_s3 + $0xe64] ss:$16 sps:$4 sm:$0xff]  }
 0x32e   :  { %5139 = vmatmul.mubr.bf16.gmra.mxu1 %v8372_v32  ;;  %v2651_v2 = vpop.f32.mrf.mxu0  ;;  %3938 = vmatprep.subr.bf16.mxu0 %v7293_v0 }
 0x32f   :  { %5148 = vmatprep.mubr.bf16.mxu1 %v9335_v50  ;;  %5247 = vmatpush1.bf16.msra.mxu1 %v7288_v35  ;;  %v9351_v54 = vadd.f32 %v2651_v2, %v8953_v4  ;;  %v7297_v35 = vld [vmem:[%s10520_s3 + $0x168] ss:$16 sps:$4 sm:$0xff]   ;;  %v9365_v4 = vpop.f32.mrf.mxu1 }
 0x330   :  { %v2653_v19 = vpop.f32.mrf.mxu0  ;;  %5248 = vmatprep.subr.bf16.mxu1 %v7296_v28  ;;  %10566 = vst [vmem:[#allocation28_spill] sm:$0xff] %v9365_v4  ;;  %v7305_v28 = vld [vmem:[%s10520_s3 + $0x14c] ss:$16 sps:$4 sm:$0xff]  }
 0x331   :  { %v9360_v0 = vadd.f32 %v2653_v19, %v8961_v49  ;;  %3939 = vmatpush2.bf16.msra.mxu0 %v7291_v36  ;;  %v7300_v49 = vld [vmem:[%s10520_s3 + $0xe60] ss:$16 sps:$4 sm:$0xff]   ;;  %v7308_v36 = vld [vmem:[%s10520_s3 + $0xe44] ss:$16 sps:$4 sm:$0xff]   ;;  %v9380_v19 = vpack.c.bf16 %v8410_v31, %v8400_v9  ;;  %v9388_v4 = vpop.f32.mrf.mxu1 }
 0x332   :  { %v9367_v25 = vpop.f32.mrf.mxu0  ;;  %3940 = vmatprep.subr.bf16.mxu0 %v7299_v17  ;;  %v7306_v31 = vld [vmem:[%s10520_s3 + $0xe40] ss:$16 sps:$4 sm:$0xff]  }
 0x333   :  { %5249 = vmatpush1.bf16.msra.mxu1 %v7294_v3  ;;  %10567 = vst [vmem:[#allocation29_spill] sm:$0xff] %v9380_v19  ;;  %v7303_v3 = vld [vmem:[%s10520_s3 + $0x148] ss:$16 sps:$4 sm:$0xff]  }
 0x334   :  { %v2659_v2 = vpop.f32.mrf.mxu0  ;;  %5250 = vmatprep.subr.bf16.mxu1 %v7302_v61 }
 0x335   :  { %v9383_v17 = vadd.f32 %v2659_v2, %v8981_v33  ;;  %3941 = vmatpush2.bf16.msra.mxu0 %v7297_v35  ;;  %v7314_v35 = vld [vmem:[%s10520_s3 + $0xe24] ss:$16 sps:$4 sm:$0xff]  }
 0x336   :  { %5149 = vmatmul.mubr.bf16.gmra.mxu1 %v8390_v63  ;;  %v2661_v61 = vpop.f32.mrf.mxu0  ;;  %3942 = vmatprep.subr.bf16.mxu0 %v7305_v28 }
 0x337   :  { %5158 = vmatprep.mubr.bf16.mxu1 %v9380_v19  ;;  %5251 = vmatpush1.bf16.msra.mxu1 %v7300_v49  ;;  %v9396_v9 = vadd.f32 %v2661_v61, %v8989_v52  ;;  %v7309_v49 = vld [vmem:[%s10520_s3 + $0x128] ss:$16 sps:$4 sm:$0xff]   ;;  %v9410_v52 = vpop.f32.mrf.mxu1 }
 0x338   :  { %v2663_v33 = vpop.f32.mrf.mxu0  ;;  %5252 = vmatprep.subr.bf16.mxu1 %v7308_v36  ;;  %v7317_v36 = vld [vmem:[%s10520_s3 + $0x10c] ss:$16 sps:$4 sm:$0xff]  }
 0x339   :  { %v9405_v28 = vadd.f32 %v2663_v33, %v8997_v21  ;;  %3943 = vmatpush2.bf16.msra.mxu0 %v7303_v3  ;;  %v7312_v21 = vld [vmem:[%s10520_s3 + $0xe20] ss:$16 sps:$4 sm:$0xff]   ;;  %v7320_v3 = vld [vmem:[%s10520_s3 + $0xe04] ss:$16 sps:$4 sm:$0xff]   ;;  %v9429_v19 = vpop.f32.mrf.mxu1 }
 0x33a   :  { %v9412_v2 = vpop.f32.mrf.mxu0  ;;  %3944 = vmatprep.subr.bf16.mxu0 %v7311_v44  ;;  %v7315_v44 = vld [vmem:[%s10520_s3 + $0x108] ss:$16 sps:$4 sm:$0xff]  }
 0x33b   :  { %5253 = vmatpush1.bf16.msra.mxu1 %v7306_v31 }
 0x33c   :  { %v2669_v61 = vpop.f32.mrf.mxu0  ;;  %5254 = vmatprep.subr.bf16.mxu1 %v7314_v35  ;;  %v7323_v35 = vld [vmem:[%s10520_s3 + $0x4ec] ss:$16 sps:$4 sm:$0xff]  }
 0x33d   :  { %v9424_v33 = vadd.f32 %v2669_v61, %v9017_v29  ;;  %3945 = vmatpush2.bf16.msra.mxu0 %v7309_v49  ;;  %v7318_v29 = vld [vmem:[%s10520_s3 + $0xe00] ss:$16 sps:$4 sm:$0xff]  }
 0x33e   :  { %5159 = vmatmul.mubr.bf16.gmra.mxu1 %v8408_v22  ;;  %v2671_v31 = vpop.f32.mrf.mxu0  ;;  %3946 = vmatprep.subr.bf16.mxu0 %v7317_v36  ;;  %v7326_v36 = vld [vmem:[%s10520_s3 + $0xcec] ss:$16 sps:$4 sm:$0xff]  }
 0x33f   :  { %5255 = vmatpush1.bf16.msra.mxu1 %v7312_v21  ;;  %v9436_v63 = vadd.f32 %v2671_v31, %v9025_v26  ;;  %5274 = vmatprep.mubr.bf16.mxu1 %v10549_v57  ;;  %v9448_v21 = vpop.f32.mrf.mxu1  ;;  %v7321_v26 = vld [vmem:[%s10520_s3 + $0x4e8] ss:$16 sps:$4 sm:$0xff]   ;;  %v7329_v31 = vld [vmem:[%s10520_s3 + $0x4cc] ss:$16 sps:$4 sm:$0xff]  }
 0x340   :  { %v2673_v49 = vpop.f32.mrf.mxu0  ;;  %5256 = vmatprep.subr.bf16.mxu1 %v7320_v3  ;;  %v7324_v3 = vld [vmem:[%s10520_s3 + $0xce8] ss:$16 sps:$4 sm:$0xff]  }
 0x341   :  { %v9446_v61 = vadd.f32 %v2673_v49, %v9033_v56  ;;  %3947 = vmatpush2.bf16.msra.mxu0 %v7315_v44  ;;  %v9461_v56 = vpack.c.bf16 %v8813_v20, %v8777_v45  ;;  %v7332_v44 = vld [vmem:[%s10520_s3 + $0xccc] ss:$16 sps:$4 sm:$0xff]  }
 0x342   :  { %4062 = vmatprep.subr.bf16.mxu0 %v7323_v35 }
 0x343   :  { %5257 = vmatpush1.bf16.msra.mxu1 %v7318_v29  ;;  %10568 = vst [vmem:[#allocation30_spill] sm:$0xff] %v9461_v56  ;;  %v7327_v29 = vld [vmem:[%s10520_s3 + $0x4c8] ss:$16 sps:$4 sm:$0xff]  }
 0x344   :  { %3949 = vmatmul.mubr.bf16.vlgmr.msra.gmra.mxu0 %v8162_v16  ;;  %5388 = vmatprep.subr.bf16.mxu1 %v7326_v36  ;;  %v7335_v16 = vld [vmem:[%s10520_s3 + $0x4ac] ss:$16 sps:$4 sm:$0xff]  }
 0x345   :  { %v3731_v35 = vpop.f32.mrf.mxu1  ;;  %3958 = vmatprep.mubr.bf16.mxu0 %v8634_v51  ;;  %4063 = vmatpush1.bf16.msra.mxu0 %v7321_v26  ;;  %v7330_v51 = vld [vmem:[%s10520_s3 + $0xcc8] ss:$16 sps:$4 sm:$0xff]  }
 0x346   :  { %v9472_v49 = vadd.f32 %v3731_v35, %v9293_v30  ;;  %5275 = vmatmul.mubr.bf16.vlgmr.msra.gmra.mxu1 %v9461_v56  ;;  %4064 = vmatprep.subr.bf16.mxu0 %v7329_v31  ;;  %v7338_v30 = vld [vmem:[%s10520_s3 + $0xcac] ss:$16 sps:$4 sm:$0xff]   ;;  %v7333_v26 = vld [vmem:[%s10520_s3 + $0x4a8] ss:$16 sps:$4 sm:$0xff]   ;;  %v9504_v35 = vpack.c.bf16 %v8795_v41, %v8759_v15 }
 0x347   :  { %5389 = vmatpush1.bf16.msra.mxu1 %v7324_v3  ;;  %v3733_v45 = vpop.f32.mrf.mxu1  ;;  %5284 = vmatprep.mubr.bf16.mxu1 %v10549_v57 }
 0x348   :  { %v9483_v20 = vadd.f32 %v3733_v45, %v9306_v14  ;;  %5390 = vmatprep.subr.bf16.mxu1 %v7332_v44  ;;  %v7341_v14 = vld [vmem:[%s10520_s3 + $0x48c] ss:$16 sps:$4 sm:$0xff]   ;;  %v7336_v44 = vld [vmem:[%s10520_s3 + $0xca8] ss:$16 sps:$4 sm:$0xff]   ;;  %10569 = vst [vmem:[#allocation31_spill] sm:$0xff] %v9504_v35 }
 0x349   :  { %v3735_v36 = vpop.f32.mrf.mxu1  ;;  %4065 = vmatpush1.bf16.msra.mxu0 %v7327_v29 }
 0x34a   :  { %v9492_v31 = vadd.f32 %v3735_v36, %v9315_v12  ;;  %4066 = vmatprep.subr.bf16.mxu0 %v7335_v16  ;;  %v7344_v12 = vld [vmem:[%s10520_s3 + $0xc8c] ss:$16 sps:$4 sm:$0xff]   ;;  %v7339_v16 = vld [vmem:[%s10520_s3 + $0x488] ss:$16 sps:$4 sm:$0xff]  }
 0x34b   :  { %5391 = vmatpush1.bf16.msra.mxu1 %v7330_v51  ;;  %v9497_v3 = vpop.f32.mrf.mxu1 }
 0x34c   :  { %3959 = vmatmul.mubr.bf16.gmra.mxu0 %v8174_v27  ;;  %5392 = vmatprep.subr.bf16.mxu1 %v7338_v30  ;;  %v7347_v27 = vld [vmem:[%s10520_s3 + $0x46c] ss:$16 sps:$4 sm:$0xff]   ;;  %v7345_v30 = vld [vmem:[%s10520_s3 + $0x468] ss:$16 sps:$4 sm:$0xff]  }
 0x34d   :  { %v3741_v29 = vpop.f32.mrf.mxu1  ;;  %3968 = vmatprep.mubr.bf16.mxu0 %v8664_v60  ;;  %4067 = vmatpush1.bf16.msra.mxu0 %v7333_v26  ;;  %v7342_v60 = vld [vmem:[%s10520_s3 + $0xc88] ss:$16 sps:$4 sm:$0xff]  }
 0x34e   :  { %v9515_v45 = vadd.f32 %v3741_v29, %v9338_v48  ;;  %5285 = vmatmul.mubr.bf16.gmra.mxu1 %v9504_v35  ;;  %4068 = vmatprep.subr.bf16.mxu0 %v7341_v14  ;;  %v7350_v48 = vld [vmem:[%s10520_s3 + $0xc6c] ss:$16 sps:$4 sm:$0xff]   ;;  %v7348_v14 = vld [vmem:[%s10520_s3 + $0xc68] ss:$16 sps:$4 sm:$0xff]   ;;  %v10578_v35 = vld [vmem:[#allocation12_spill] sm:$0xff] }
 0x34f   :  { %5393 = vmatpush1.bf16.msra.mxu1 %v7336_v44  ;;  %v3743_v15 = vpop.f32.mrf.mxu1  ;;  %5294 = vmatprep.mubr.bf16.mxu1 %v10549_v57  ;;  %v9547_v44 = vpack.c.bf16 %v8890_v58, %v8853_v1  ;;  %v7351_v29 = vld [vmem:[%s10520_s3 + $0x448] ss:$16 sps:$4 sm:$0xff]  }
 0x350   :  { %v9526_v41 = vadd.f32 %v3743_v15, %v9351_v54  ;;  %5394 = vmatprep.subr.bf16.mxu1 %v7344_v12  ;;  %v7353_v54 = vld [vmem:[%s10520_s3 + $0x44c] ss:$16 sps:$4 sm:$0xff]   ;;  %v7357_v15 = vld [vmem:[%s10520_s3 + $0x428] ss:$16 sps:$4 sm:$0xff]  }
 0x351   :  { %v3745_v51 = vpop.f32.mrf.mxu1  ;;  %4069 = vmatpush1.bf16.msra.mxu0 %v7339_v16  ;;  %10570 = vst [vmem:[#allocation32_spill] sm:$0xff] %v9547_v44 }
 0x352   :  { %v9535_v36 = vadd.f32 %v3745_v51, %v9360_v0  ;;  %4070 = vmatprep.subr.bf16.mxu0 %v7347_v27  ;;  %v7356_v0 = vld [vmem:[%s10520_s3 + $0xc4c] ss:$16 sps:$4 sm:$0xff]   ;;  %v7360_v51 = vld [vmem:[%s10520_s3 + $0xc28] ss:$16 sps:$4 sm:$0xff]  }
 0x353   :  { %5395 = vmatpush1.bf16.msra.mxu1 %v7342_v60  ;;  %v9540_v26 = vpop.f32.mrf.mxu1 }
 0x354   :  { %3969 = vmatmul.mubr.bf16.gmra.mxu0 %v8186_v37  ;;  %5396 = vmatprep.subr.bf16.mxu1 %v7350_v48  ;;  %v7359_v37 = vld [vmem:[%s10520_s3 + $0x42c] ss:$16 sps:$4 sm:$0xff]  }
 0x355   :  { %v3751_v12 = vpop.f32.mrf.mxu1  ;;  %3978 = vmatprep.mubr.bf16.mxu0 %v8694_v23  ;;  %4071 = vmatpush1.bf16.msra.mxu0 %v7345_v30  ;;  %v7354_v23 = vld [vmem:[%s10520_s3 + $0xc48] ss:$16 sps:$4 sm:$0xff]   ;;  %v9590_v30 = vpack.c.bf16 %v8874_v5, %v8835_v6 }
 0x356   :  { %v9558_v16 = vadd.f32 %v3751_v12, %v9383_v17  ;;  %5295 = vmatmul.mubr.bf16.gmra.mxu1 %v9547_v44  ;;  %4072 = vmatprep.subr.bf16.mxu0 %v7353_v54  ;;  %v7362_v17 = vld [vmem:[%s10520_s3 + $0xc2c] ss:$16 sps:$4 sm:$0xff]   ;;  %v9598_v54 = vpack.c.bf16 %v8811_v43, %v8775_v11  ;;  %v7366_v43 = vld [vmem:[%s10520_s3 + $0xc08] ss:$16 sps:$4 sm:$0xff]  }
 0x357   :  { %5397 = vmatpush1.bf16.msra.mxu1 %v7348_v14  ;;  %v3753_v1 = vpop.f32.mrf.mxu1  ;;  %5304 = vmatprep.mubr.bf16.mxu1 %v10549_v57  ;;  %10571 = vst [vmem:[#allocation33_spill] sm:$0xff] %v9590_v30 }
 0x358   :  { %v9569_v58 = vadd.f32 %v3753_v1, %v9396_v9  ;;  %5398 = vmatprep.subr.bf16.mxu1 %v7356_v0  ;;  %v7365_v9 = vld [vmem:[%s10520_s3 + $0x40c] ss:$16 sps:$4 sm:$0xff]   ;;  %v7363_v0 = vld [vmem:[%s10520_s3 + $0x408] ss:$16 sps:$4 sm:$0xff]  }
 0x359   :  { %v3755_v27 = vpop.f32.mrf.mxu1  ;;  %4073 = vmatpush1.bf16.msra.mxu0 %v7351_v29  ;;  %v7369_v29 = vld [vmem:[%s10520_s3 + $0xce0] ss:$16 sps:$4 sm:$0xff]  }
 0x35a   :  { %v9578_v60 = vadd.f32 %v3755_v27, %v9405_v28  ;;  %4074 = vmatprep.subr.bf16.mxu0 %v7359_v37  ;;  %v7368_v28 = vld [vmem:[%s10520_s3 + $0xc0c] ss:$16 sps:$4 sm:$0xff]   ;;  %v9624_v37 = vpop.f32.mrf.mxu0  ;;  %v7375_v27 = vld [vmem:[%s10520_s3 + $0xcc0] ss:$16 sps:$4 sm:$0xff]  }
 0x35b   :  { %5399 = vmatpush1.bf16.msra.mxu1 %v7354_v23  ;;  %v9583_v48 = vpop.f32.mrf.mxu1  ;;  %v7372_v23 = vld [vmem:[%s10520_s3 + $0xde8] ss:$16 sps:$4 sm:$0xff]  }
 0x35c   :  { %3979 = vmatmul.mubr.bf16.gmra.mxu0 %v8198_v47  ;;  %5400 = vmatprep.subr.bf16.mxu1 %v7362_v17  ;;  %v7371_v47 = vld [vmem:[%s10520_s3 + $0xce4] ss:$16 sps:$4 sm:$0xff]  }
 0x35d   :  { %v3761_v14 = vpop.f32.mrf.mxu1  ;;  %4075 = vmatpush1.bf16.msra.mxu0 %v7357_v15  ;;  %4094 = vmatprep.mubr.bf16.mxu0 %v10549_v57 }
 0x35e   :  { %v9605_v6 = vadd.f32 %v3761_v14, %v9424_v33  ;;  %5305 = vmatmul.mubr.bf16.gmra.mxu1 %v9590_v30  ;;  %4076 = vmatprep.subr.bf16.mxu0 %v7365_v9  ;;  %v7374_v33 = vld [vmem:[%s10520_s3 + $0xdec] ss:$16 sps:$4 sm:$0xff]   ;;  %v7383_v9 = vld [vmem:[%s10520_s3 + $0xca4] ss:$16 sps:$4 sm:$0xff]   ;;  %v7381_v14 = vld [vmem:[%s10520_s3 + $0xca0] ss:$16 sps:$4 sm:$0xff]  }
 0x35f   :  { %5401 = vmatpush1.bf16.msra.mxu1 %v7360_v51  ;;  %5420 = vmatprep.mubr.bf16.mxu1 %v9598_v54  ;;  %v3763_v11 = vpop.f32.mrf.mxu1 }
 0x360   :  { %v9616_v5 = vadd.f32 %v3763_v11, %v9436_v63  ;;  %5402 = vmatprep.subr.bf16.mxu1 %v7368_v28  ;;  %v7377_v63 = vld [vmem:[%s10520_s3 + $0xcc4] ss:$16 sps:$4 sm:$0xff]   ;;  %v7386_v28 = vld [vmem:[%s10520_s3 + $0xdac] ss:$16 sps:$4 sm:$0xff]   ;;  %v7384_v11 = vld [vmem:[%s10520_s3 + $0xda8] ss:$16 sps:$4 sm:$0xff]  }
 0x361   :  { %v3765_v12 = vpop.f32.mrf.mxu1  ;;  %4077 = vmatpush1.bf16.msra.mxu0 %v7363_v0 }
 0x362   :  { %v9627_v1 = vadd.f32 %v3765_v12, %v9446_v61  ;;  %5169 = vmatprep.subr.bf16.mxu0 %v7371_v47  ;;  %v7380_v61 = vld [vmem:[%s10520_s3 + $0xdcc] ss:$16 sps:$4 sm:$0xff]   ;;  %v7389_v47 = vld [vmem:[%s10520_s3 + $0xc84] ss:$16 sps:$4 sm:$0xff]  }
 0x363   :  { %5403 = vmatpush1.bf16.msra.mxu1 %v7366_v43  ;;  %v7392_v12 = vld [vmem:[%s10520_s3 + $0xd8c] ss:$16 sps:$4 sm:$0xff]  }
 0x364   :  { %v9635_v17 = vpop.f32.mrf.mxu0  ;;  %4095 = vmatmul.mubr.bf16.vlgmr.msra.gmra.mxu0 %v8747_v10  ;;  %5404 = vmatprep.subr.bf16.mxu1 %v7374_v33  ;;  %v7378_v10 = vld [vmem:[%s10520_s3 + $0xdc8] ss:$16 sps:$4 sm:$0xff]   ;;  %v10573_v33 = vld [vmem:[#allocation10_spill] sm:$0xff] }
 0x365   :  { %5170 = vmatpush1.bf16.msra.mxu0 %v7369_v29  ;;  %4104 = vmatprep.mubr.bf16.mxu0 %v10549_v57  ;;  %v7387_v29 = vld [vmem:[%s10520_s3 + $0xc80] ss:$16 sps:$4 sm:$0xff]  }
 0x366   :  { %v9645_v15 = vpop.f32.mrf.mxu0  ;;  %5171 = vmatprep.subr.bf16.mxu0 %v7377_v63 }
 0x367   :  { %5405 = vmatpush2.bf16.msra.mxu1 %v7372_v23  ;;  %v7395_v23 = vld [vmem:[%s10520_s3 + $0xc64] ss:$16 sps:$4 sm:$0xff]  }
 0x368   :  { %v9653_v51 = vpop.f32.mrf.mxu0  ;;  %5406 = vmatprep.subr.bf16.mxu1 %v7380_v61  ;;  %v7390_v61 = vld [vmem:[%s10520_s3 + $0xd88] ss:$16 sps:$4 sm:$0xff]  }
 0x369   :  { %5172 = vmatpush1.bf16.msra.mxu0 %v7375_v27 }
 0x36a   :  { %v9661_v0 = vpop.f32.mrf.mxu0  ;;  %5173 = vmatprep.subr.bf16.mxu0 %v7383_v9  ;;  %v7398_v9 = vld [vmem:[%s10520_s3 + $0xd6c] ss:$16 sps:$4 sm:$0xff]  }
 0x36b   :  { %10572 = vst [vmem:[#allocation34_spill] sm:$0xff] %v9661_v0  ;;  %5407 = vmatpush2.bf16.msra.mxu1 %v7378_v10  ;;  %v7393_v10 = vld [vmem:[%s10520_s3 + $0xc60] ss:$16 sps:$4 sm:$0xff]   ;;  %v10579_v0 = vld [vmem:[#allocation13_spill] sm:$0xff] }
 0x36c   :  { %v9669_v43 = vpop.f32.mrf.mxu0  ;;  %4105 = vmatmul.mubr.bf16.gmra.mxu0 %v10573_v33  ;;  %5408 = vmatprep.subr.bf16.mxu1 %v7386_v28  ;;  %v10575_v33 = vld [vmem:[#allocation14_spill] sm:$0xff]  ;;  %v9769_v56 = vpack.c.bf16 %v10579_v0, %v10578_v35 }
 0x36d   :  { %5174 = vmatpush1.bf16.msra.mxu0 %v7381_v14  ;;  %4114 = vmatprep.mubr.bf16.mxu0 %v10549_v57  ;;  %v7401_v14 = vld [vmem:[%s10520_s3 + $0xc44] ss:$16 sps:$4 sm:$0xff]  }
 0x36e   :  { %v9679_v63 = vpop.f32.mrf.mxu0  ;;  %5175 = vmatprep.subr.bf16.mxu0 %v7389_v47  ;;  %v7396_v47 = vld [vmem:[%s10520_s3 + $0xd68] ss:$16 sps:$4 sm:$0xff]   ;;  %v7425_v35 = vld [vmem:[%s10520_s3 + $0xda4] ss:$16 sps:$4 sm:$0xff]  }
 0x36f   :  { %5409 = vmatpush2.bf16.msra.mxu1 %v7384_v11 }
 0x370   :  { %v9687_v27 = vpop.f32.mrf.mxu0  ;;  %5410 = vmatprep.subr.bf16.mxu1 %v7392_v12  ;;  %v7404_v12 = vld [vmem:[%s10520_s3 + $0xd4c] ss:$16 sps:$4 sm:$0xff]  }
 0x371   :  { %5176 = vmatpush1.bf16.msra.mxu0 %v7387_v29  ;;  %v7399_v29 = vld [vmem:[%s10520_s3 + $0xc40] ss:$16 sps:$4 sm:$0xff]  }
 0x372   :  { %v9695_v28 = vpop.f32.mrf.mxu0  ;;  %5177 = vmatprep.subr.bf16.mxu0 %v7395_v23 }
 0x373   :  { %10574 = vst [vmem:[#allocation10_spill] sm:$0xff] %v9695_v28  ;;  %5411 = vmatpush2.bf16.msra.mxu1 %v7390_v61  ;;  %v7407_v61 = vld [vmem:[%s10520_s3 + $0xc24] ss:$16 sps:$4 sm:$0xff]   ;;  %v10577_v28 = vld [vmem:[#allocation11_spill] sm:$0xff] }
 0x374   :  { %v9703_v11 = vpop.f32.mrf.mxu0  ;;  %4115 = vmatmul.mubr.bf16.gmra.mxu0 %v10575_v33  ;;  %5412 = vmatprep.subr.bf16.mxu1 %v7398_v9  ;;  %v7402_v9 = vld [vmem:[%s10520_s3 + $0xd48] ss:$16 sps:$4 sm:$0xff]  }
 0x375   :  { %5178 = vmatpush1.bf16.msra.mxu0 %v7393_v10  ;;  %4124 = vmatprep.mubr.bf16.mxu0 %v10549_v57  ;;  %v7410_v10 = vld [vmem:[%s10520_s3 + $0xd2c] ss:$16 sps:$4 sm:$0xff]   ;;  %v10581_v57 = vld [vmem:[#allocation18_spill] sm:$0xff] }
 0x376   :  { %v9713_v23 = vpop.f32.mrf.mxu0  ;;  %5179 = vmatprep.subr.bf16.mxu0 %v7401_v14  ;;  %v7405_v14 = vld [vmem:[%s10520_s3 + $0xc20] ss:$16 sps:$4 sm:$0xff]  }
 0x377   :  { %5413 = vmatpush2.bf16.msra.mxu1 %v7396_v47  ;;  %v7413_v47 = vld [vmem:[%s10520_s3 + $0xc04] ss:$16 sps:$4 sm:$0xff]  }
 0x378   :  { %v9721_v33 = vpop.f32.mrf.mxu0  ;;  %5414 = vmatprep.subr.bf16.mxu1 %v7404_v12  ;;  %v7408_v12 = vld [vmem:[%s10520_s3 + $0xd28] ss:$16 sps:$4 sm:$0xff]  }
 0x379   :  { %5180 = vmatpush1.bf16.msra.mxu0 %v7399_v29  ;;  %v7416_v29 = vld [vmem:[%s10520_s3 + $0xd0c] ss:$16 sps:$4 sm:$0xff]  }
 0x37a   :  { %v9729_v30 = vpop.f32.mrf.mxu0  ;;  %5181 = vmatprep.subr.bf16.mxu0 %v7407_v61  ;;  %v7411_v61 = vld [vmem:[%s10520_s3 + $0xc00] ss:$16 sps:$4 sm:$0xff]  }
 0x37b   :  { %10576 = vst [vmem:[#allocation14_spill] sm:$0xff] %v9729_v30  ;;  %5415 = vmatpush2.bf16.msra.mxu1 %v7402_v9  ;;  %v7419_v30 = vld [vmem:[%s10520_s3 + $0xde4] ss:$16 sps:$4 sm:$0xff]  }
 0x37c   :  { %v9737_v44 = vpop.f32.mrf.mxu0  ;;  %4125 = vmatmul.mubr.bf16.gmra.mxu0 %v10577_v28  ;;  %5416 = vmatprep.subr.bf16.mxu1 %v7410_v10  ;;  %v7414_v28 = vld [vmem:[%s10520_s3 + $0xd08] ss:$16 sps:$4 sm:$0xff]  }
 0x37d   :  { %5182 = vmatpush1.bf16.msra.mxu0 %v7405_v14  ;;  %5201 = vmatprep.mubr.bf16.mxu0 %v9598_v54  ;;  %v7417_v54 = vld [vmem:[%s10520_s3 + $0xde0] ss:$16 sps:$4 sm:$0xff]  }
 0x37e   :  { %v9747_v9 = vpop.f32.mrf.mxu0  ;;  %5183 = vmatprep.subr.bf16.mxu0 %v7413_v47  ;;  %v7422_v47 = vld [vmem:[%s10520_s3 + $0xdc4] ss:$16 sps:$4 sm:$0xff]  }
 0x37f   :  { %5417 = vmatpush2.bf16.msra.mxu1 %v7408_v12  ;;  %v2786_v12 = vadd.f32 %v9171_v42, %v9635_v17  ;;  %v7420_v42 = vld [vmem:[%s10520_s3 + $0xdc0] ss:$16 sps:$4 sm:$0xff]  }
 0x380   :  { %v9755_v10 = vpop.f32.mrf.mxu0  ;;  %5418 = vmatprep.subr.bf16.mxu1 %v7416_v29 }
 0x381   :  { %5184 = vmatpush1.bf16.msra.mxu0 %v7411_v61  ;;  %v10580_v61 = vld [vmem:[#allocation16_spill] sm:$0xff] }
 0x382   :  { %v9760_v14 = vpop.f32.mrf.mxu0  ;;  %5185 = vmatprep.subr.bf16.mxu0 %v7419_v30  ;;  %v9773_v22 = vpack.c.bf16 %v10581_v57, %v10580_v61  ;;  %v2788_v30 = vadd.f32 %v9185_v34, %v9645_v15  ;;  %v2790_v57 = vadd.f32 %v9201_v24, %v9653_v51  ;;  %v9791_v34 = vpop.f32.mrf.mxu1  ;;  %v7428_v24 = vld [vmem:[%s10520_s3 + $0xd84] ss:$16 sps:$4 sm:$0xff]   ;;  %v2796_v51 = vadd.f32 %v9231_v55, %v9669_v43  ;;  %v7426_v55 = vld [vmem:[%s10520_s3 + $0xd80] ss:$16 sps:$4 sm:$0xff]  }
 0x383   :  { %5419 = vmatpush2.bf16.msra.mxu1 %v7414_v28 }
 0x384   :  { %v2858_v29 = vpop.f32.mrf.mxu0 }
 0x385   :  { %v9777_v50 = vadd.f32 %v2858_v29, %v2786_v12  ;;  %5186 = vmatpush2.bf16.msra.mxu0 %v7417_v54  ;;  %v7423_v54 = vld [vmem:[%s10520_s3 + $0xda0] ss:$16 sps:$4 sm:$0xff]   ;;  %v10583_v12 = vld [vmem:[#allocation15_spill] sm:$0xff]  ;;  %v10584_v29 = vld [vmem:[#allocation17_spill] sm:$0xff] }
 0x386   :  { %5421 = vmatmul.mubr.bf16.vlgmr.msra.gmra.mxu1 %v9769_v56  ;;  %v2860_v17 = vpop.f32.mrf.mxu0  ;;  %5187 = vmatprep.subr.bf16.mxu0 %v7422_v47  ;;  %v9807_v61 = vpack.c.bf16 %v10584_v29, %v10583_v12  ;;  %v7431_v12 = vld [vmem:[%s10520_s3 + $0xd64] ss:$16 sps:$4 sm:$0xff]   ;;  %v2800_v29 = vadd.f32 %v9261_v53, %v9687_v27  ;;  %v2806_v27 = vadd.f32 %v9298_v59, %v9703_v11 }
 0x387   :  { %v9788_v0 = vadd.f32 %v2860_v17, %v2788_v30  ;;  %5430 = vmatprep.mubr.bf16.mxu1 %v9773_v22  ;;  %v9809_v30 = vpop.f32.mrf.mxu1  ;;  %v10585_v17 = vld [vmem:[#allocation4_spill] sm:$0xff] }
 0x388   :  { %v2862_v15 = vpop.f32.mrf.mxu0  ;;  %v7434_v53 = vld [vmem:[%s10520_s3 + $0xd44] ss:$16 sps:$4 sm:$0xff]  }
 0x389   :  { %v9793_v28 = vadd.f32 %v2862_v15, %v2790_v57  ;;  %5188 = vmatpush2.bf16.msra.mxu0 %v7420_v42  ;;  %v10586_v57 = vld [vmem:[#allocation6_spill] sm:$0xff] }
 0x38a   :  { %v9798_v47 = vpop.f32.mrf.mxu0  ;;  %5189 = vmatprep.subr.bf16.mxu0 %v7425_v35  ;;  %v9813_v15 = vpack.c.bf16 %v10586_v57, %v10585_v17  ;;  %v2798_v35 = vadd.f32 %v9245_v62, %v9679_v63  ;;  %v9831_v62 = vpop.f32.mrf.mxu1  ;;  %v7437_v11 = vld [vmem:[%s10520_s3 + $0xd24] ss:$16 sps:$4 sm:$0xff]  }
 0x38b   :  { %10582 = vst [vmem:[#allocation11_spill] sm:$0xff] %v9793_v28  ;;  %10587 = vst [vmem:[#allocation12_spill] sm:$0xff] %v9831_v62  ;;  %v10590_v62 = vld [vmem:[#allocation5_spill] sm:$0xff] }
 0x38c   :  { %v2868_v42 = vpop.f32.mrf.mxu0 }
 0x38d   :  { %v9817_v28 = vadd.f32 %v2868_v42, %v2796_v51  ;;  %5190 = vmatpush2.bf16.msra.mxu0 %v7423_v54  ;;  %v9845_v42 = vpop.f32.mrf.mxu1 }
 0x38e   :  { %5431 = vmatmul.mubr.bf16.gmra.mxu1 %v9807_v61  ;;  %v2870_v43 = vpop.f32.mrf.mxu0  ;;  %5191 = vmatprep.subr.bf16.mxu0 %v7428_v24  ;;  %v7429_v24 = vld [vmem:[%s10520_s3 + $0xd60] ss:$16 sps:$4 sm:$0xff]  }
 0x38f   :  { %v9828_v17 = vadd.f32 %v2870_v43, %v2798_v35  ;;  %5440 = vmatprep.mubr.bf16.mxu1 %v9813_v15  ;;  %v10588_v35 = vld [vmem:[#allocation7_spill] sm:$0xff]  ;;  %v10589_v43 = vld [vmem:[#allocation9_spill] sm:$0xff] }
 0x390   :  { %v2872_v63 = vpop.f32.mrf.mxu0 }
 0x391   :  { %v9833_v54 = vadd.f32 %v2872_v63, %v2800_v29  ;;  %5192 = vmatpush2.bf16.msra.mxu0 %v7426_v55  ;;  %v9849_v55 = vpack.c.bf16 %v10589_v43, %v10588_v35  ;;  %v2808_v29 = vadd.f32 %v9320_v46, %v9713_v23  ;;  %v2810_v35 = vadd.f32 %v9343_v13, %v9721_v33  ;;  %v9867_v46 = vpop.f32.mrf.mxu1  ;;  %v7440_v13 = vld [vmem:[%s10520_s3 + $0xd04] ss:$16 sps:$4 sm:$0xff]  }
 0x392   :  { %v9838_v51 = vpop.f32.mrf.mxu0  ;;  %5193 = vmatprep.subr.bf16.mxu0 %v7431_v12  ;;  %v7432_v12 = vld [vmem:[%s10520_s3 + $0xd40] ss:$16 sps:$4 sm:$0xff]   ;;  %v2816_v33 = vadd.f32 %v9388_v4, %v9737_v44  ;;  %v7443_v4 = vld [vmem:[%s10520_s3 + $0xaec] ss:$16 sps:$4 sm:$0xff]   ;;  %v2820_v44 = vadd.f32 %v9429_v19, %v9755_v10 }
 0x393   :  { %v7446_v19 = vld [vmem:[%s10520_s3 + $0xacc] ss:$16 sps:$4 sm:$0xff]  }
 0x394   :  { %v2878_v57 = vpop.f32.mrf.mxu0 }
 0x395   :  { %v9853_v63 = vadd.f32 %v2878_v57, %v2806_v27  ;;  %5194 = vmatpush2.bf16.msra.mxu0 %v7429_v24  ;;  %v9881_v57 = vpop.f32.mrf.mxu1 }
 0x396   :  { %5441 = vmatmul.mubr.bf16.gmra.mxu1 %v10590_v62  ;;  %v2880_v59 = vpop.f32.mrf.mxu0  ;;  %5195 = vmatprep.subr.bf16.mxu0 %v7434_v53  ;;  %v7435_v53 = vld [vmem:[%s10520_s3 + $0xd20] ss:$16 sps:$4 sm:$0xff]   ;;  %10591 = vst [vmem:[#allocation13_spill] sm:$0xff] %v9881_v57 }
 0x397   :  { %v9864_v43 = vadd.f32 %v2880_v59, %v2808_v29  ;;  %5450 = vmatprep.mubr.bf16.mxu1 %v9849_v55 }
 0x398   :  { %v2882_v23 = vpop.f32.mrf.mxu0 }
 0x399   :  { %v9869_v24 = vadd.f32 %v2882_v23, %v2810_v35  ;;  %5196 = vmatpush2.bf16.msra.mxu0 %v7432_v12  ;;  %v2818_v12 = vadd.f32 %v9410_v52, %v9747_v9  ;;  %v10592_v35 = vld [vmem:[#allocation8_spill] sm:$0xff]  ;;  %v9898_v52 = vpop.f32.mrf.mxu1 }
 0x39a   :  { %v9874_v27 = vpop.f32.mrf.mxu0  ;;  %5197 = vmatprep.subr.bf16.mxu0 %v7437_v11  ;;  %v7438_v11 = vld [vmem:[%s10520_s3 + $0xd00] ss:$16 sps:$4 sm:$0xff]  }
 0x39c   :  { %v2888_v29 = vpop.f32.mrf.mxu0 }
 0x39d   :  { %v9885_v59 = vadd.f32 %v2888_v29, %v2816_v33  ;;  %5198 = vmatpush2.bf16.msra.mxu0 %v7435_v53  ;;  %v2822_v53 = vadd.f32 %v9448_v21, %v9760_v14  ;;  %v7444_v21 = vld [vmem:[%s10520_s3 + $0xac8] ss:$16 sps:$4 sm:$0xff]   ;;  %v7449_v14 = vld [vmem:[%s10520_s3 + $0xaac] ss:$16 sps:$4 sm:$0xff]  }
 0x39e   :  { %5451 = vmatmul.mubr.bf16.gmra.mxu1 %v10592_v35  ;;  %v2890_v23 = vpop.f32.mrf.mxu0  ;;  %5199 = vmatprep.subr.bf16.mxu0 %v7440_v13  ;;  %v7441_v13 = vld [vmem:[%s10520_s3 + $0xae8] ss:$16 sps:$4 sm:$0xff]  }
 0x39f   :  { %v9896_v57 = vadd.f32 %v2890_v23, %v2818_v12  ;;  %v9912_v12 = vpop.f32.mrf.mxu1  ;;  %v7447_v23 = vld [vmem:[%s10520_s3 + $0xaa8] ss:$16 sps:$4 sm:$0xff]  }
 0x3a0   :  { %v2892_v9 = vpop.f32.mrf.mxu0  ;;  %10593 = vst [vmem:[#allocation16_spill] sm:$0xff] %v9912_v12 }
 0x3a1   :  { %v9902_v33 = vadd.f32 %v2892_v9, %v2820_v44  ;;  %5200 = vmatpush2.bf16.msra.mxu0 %v7438_v11  ;;  %v9922_v11 = vpop.f32.mrf.mxu1  ;;  %v7455_v44 = vld [vmem:[%s10520_s3 + $0xa6c] ss:$16 sps:$4 sm:$0xff]  }
 0x3a2   :  { %v2894_v29 = vpop.f32.mrf.mxu0  ;;  %5315 = vmatprep.subr.bf16.mxu0 %v7443_v4  ;;  %10594 = vst [vmem:[#allocation18_spill] sm:$0xff] %v9922_v11  ;;  %v7450_v4 = vld [vmem:[%s10520_s3 + $0xa88] ss:$16 sps:$4 sm:$0xff]  }
 0x3a3   :  { %v9910_v10 = vadd.f32 %v2894_v29, %v2822_v53  ;;  %v7453_v53 = vld [vmem:[%s10520_s3 + $0xa68] ss:$16 sps:$4 sm:$0xff]   ;;  %v7461_v29 = vld [vmem:[%s10520_s3 + $0xa2c] ss:$16 sps:$4 sm:$0xff]  }
 0x3a4   :  { %5202 = vmatmul.mubr.bf16.vlgmr.msra.gmra.mxu0 %v9769_v56  ;;  %v9930_v56 = vpop.f32.mrf.mxu1 }
 0x3a5   :  { %5211 = vmatprep.mubr.bf16.mxu0 %v9773_v22  ;;  %5316 = vmatpush1.bf16.msra.mxu0 %v7441_v13  ;;  %v7452_v22 = vld [vmem:[%s10520_s3 + $0xa8c] ss:$16 sps:$4 sm:$0xff]   ;;  %10595 = vst [vmem:[#allocation15_spill] sm:$0xff] %v9930_v56  ;;  %v7456_v13 = vld [vmem:[%s10520_s3 + $0xa48] ss:$16 sps:$4 sm:$0xff]  }
 0x3a6   :  { %5317 = vmatprep.subr.bf16.mxu0 %v7446_v19  ;;  %v9940_v9 = vpop.f32.mrf.mxu1 }
 0x3a7   :  { %10596 = vst [vmem:[#allocation17_spill] sm:$0xff] %v9940_v9 }
 0x3a9   :  { %5318 = vmatpush1.bf16.msra.mxu0 %v7444_v21  ;;  %v7459_v21 = vld [vmem:[%s10520_s3 + $0xa28] ss:$16 sps:$4 sm:$0xff]  }
 0x3aa   :  { %5319 = vmatprep.subr.bf16.mxu0 %v7449_v14  ;;  %v7462_v14 = vld [vmem:[%s10520_s3 + $0xa08] ss:$16 sps:$4 sm:$0xff]  }
 0x3ac   :  { %5212 = vmatmul.mubr.bf16.gmra.mxu0 %v9807_v61  ;;  %v7458_v61 = vld [vmem:[%s10520_s3 + $0xa4c] ss:$16 sps:$4 sm:$0xff]  }
 0x3ad   :  { %5221 = vmatprep.mubr.bf16.mxu0 %v9813_v15  ;;  %5320 = vmatpush1.bf16.msra.mxu0 %v7447_v23  ;;  %v9948_v15 = vpop.f32.mrf.mxu1  ;;  %v7467_v23 = vld [vmem:[%s10520_s3 + $0xbec] ss:$16 sps:$4 sm:$0xff]  }
 0x3ae   :  { %5321 = vmatprep.subr.bf16.mxu0 %v7452_v22  ;;  %10597 = vst [vmem:[#allocation4_spill] sm:$0xff] %v9948_v15 }
 0x3af   :  { %v9958_v19 = vpop.f32.mrf.mxu1 }
 0x3b0   :  { %10598 = vst [vmem:[#allocation6_spill] sm:$0xff] %v9958_v19 }
 0x3b1   :  { %5322 = vmatpush1.bf16.msra.mxu0 %v7450_v4  ;;  %v7465_v4 = vld [vmem:[%s10520_s3 + $0xbe8] ss:$16 sps:$4 sm:$0xff]  }
 0x3b2   :  { %5323 = vmatprep.subr.bf16.mxu0 %v7455_v44 }
 0x3b4   :  { %5222 = vmatmul.mubr.bf16.gmra.mxu0 %v10590_v62  ;;  %v7464_v62 = vld [vmem:[%s10520_s3 + $0xa0c] ss:$16 sps:$4 sm:$0xff]  }
 0x3b5   :  { %5231 = vmatprep.mubr.bf16.mxu0 %v9849_v55  ;;  %5324 = vmatpush1.bf16.msra.mxu0 %v7453_v53  ;;  %v9966_v55 = vpop.f32.mrf.mxu1  ;;  %v10602_v53 = vld [vmem:[#allocation19_spill] sm:$0xff] }
 0x3b6   :  { %5325 = vmatprep.subr.bf16.mxu0 %v7458_v61  ;;  %10599 = vst [vmem:[#allocation7_spill] sm:$0xff] %v9966_v55  ;;  %v10603_v61 = vld [vmem:[#allocation20_spill] sm:$0xff] }
 0x3b7   :  { %v9976_v22 = vpop.f32.mrf.mxu1 }
 0x3b8   :  { %10600 = vst [vmem:[#allocation9_spill] sm:$0xff] %v9976_v22 }
 0x3b9   :  { %5326 = vmatpush1.bf16.msra.mxu0 %v7456_v13  ;;  %v2573_v13 = vadd.f32 %v10603_v61, %v10602_v53 }
 0x3ba   :  { %5327 = vmatprep.subr.bf16.mxu0 %v7461_v29 }
 0x3bc   :  { %5232 = vmatmul.mubr.bf16.gmra.mxu0 %v10592_v35  ;;  %v9984_v35 = vpop.f32.mrf.mxu1 }
 0x3bd   :  { %5328 = vmatpush1.bf16.msra.mxu0 %v7459_v21  ;;  %5347 = vmatprep.mubr.bf16.mxu0 %v9136_v40  ;;  %v7470_v40 = vld [vmem:[%s10520_s3 + $0xbcc] ss:$16 sps:$4 sm:$0xff]   ;;  %10601 = vst [vmem:[#allocation5_spill] sm:$0xff] %v9984_v35  ;;  %v7468_v21 = vld [vmem:[%s10520_s3 + $0xbc8] ss:$16 sps:$4 sm:$0xff]  }
 0x3be   :  { %5329 = vmatprep.subr.bf16.mxu0 %v7464_v62  ;;  %v10001_v53 = vpop.f32.mrf.mxu1 }
 0x3c0   :  { %v10010_v61 = vpop.f32.mrf.mxu1 }
 0x3c1   :  { %5330 = vmatpush1.bf16.msra.mxu0 %v7462_v14  ;;  %v7473_v14 = vld [vmem:[%s10520_s3 + $0xbac] ss:$16 sps:$4 sm:$0xff]  }
 0x3c2   :  { %5331 = vmatprep.subr.bf16.mxu0 %v7467_v23  ;;  %v2646_v23 = vadd.f32 %v9322_v38, %v2573_v13  ;;  %v7476_v38 = vld [vmem:[%s10520_s3 + $0xb8c] ss:$16 sps:$4 sm:$0xff]  }
 0x3c4   :  { %v3804_v44 = vpop.f32.mrf.mxu0 }
 0x3c5   :  { %v9989_v29 = vadd.f32 %v3804_v44, %v9472_v49  ;;  %5332 = vmatpush2.bf16.msra.mxu0 %v7465_v4  ;;  %v3738_v4 = vadd.f32 %v9497_v3, %v2646_v23  ;;  %v10604_v3 = vld [vmem:[#allocation21_spill] sm:$0xff] }
 0x3c6   :  { %v3806_v62 = vpop.f32.mrf.mxu0  ;;  %5333 = vmatprep.subr.bf16.mxu0 %v7470_v40  ;;  %v7471_v40 = vld [vmem:[%s10520_s3 + $0xba8] ss:$16 sps:$4 sm:$0xff]  }
 0x3c7   :  { %v9999_v35 = vadd.f32 %v3806_v62, %v9483_v20  ;;  %v10605_v62 = vld [vmem:[#allocation22_spill] sm:$0xff]  ;;  %v7474_v23 = vld [vmem:[%s10520_s3 + $0xb88] ss:$16 sps:$4 sm:$0xff]  }
 0x3c8   :  { %v3808_v49 = vpop.f32.mrf.mxu0 }
 0x3c9   :  { %v10005_v44 = vadd.f32 %v3808_v49, %v9492_v31  ;;  %5334 = vmatpush2.bf16.msra.mxu0 %v7468_v21  ;;  %v2583_v31 = vadd.f32 %v10605_v62, %v10604_v3  ;;  %v10025_v49 = vpop.f32.mrf.mxu1 }
 0x3ca   :  { %v3810_v22 = vpop.f32.mrf.mxu0  ;;  %5335 = vmatprep.subr.bf16.mxu0 %v7473_v14 }
 0x3cb   :  { %v10015_v20 = vadd.f32 %v3810_v22, %v3738_v4  ;;  %v7479_v22 = vld [vmem:[%s10520_s3 + $0xb6c] ss:$16 sps:$4 sm:$0xff]   ;;  %v2656_v4 = vadd.f32 %v9367_v25, %v2583_v31  ;;  %v10041_v62 = vpop.f32.mrf.mxu1 }
 0x3cc   :  { %v3814_v13 = vpop.f32.mrf.mxu0  ;;  %v7482_v25 = vld [vmem:[%s10520_s3 + $0xb4c] ss:$16 sps:$4 sm:$0xff]  }
 0x3cd   :  { %v10020_v21 = vadd.f32 %v3814_v13, %v9515_v45  ;;  %5336 = vmatpush2.bf16.msra.mxu0 %v7471_v40  ;;  %v3748_v40 = vadd.f32 %v9540_v26, %v2656_v4  ;;  %v10607_v26 = vld [vmem:[#allocation23_spill] sm:$0xff] }
 0x3ce   :  { %v3816_v14 = vpop.f32.mrf.mxu0  ;;  %5337 = vmatprep.subr.bf16.mxu0 %v7476_v38  ;;  %v7477_v38 = vld [vmem:[%s10520_s3 + $0xb68] ss:$16 sps:$4 sm:$0xff]  }
 0x3cf   :  { %v10032_v3 = vadd.f32 %v3816_v14, %v9526_v41  ;;  %v10608_v14 = vld [vmem:[#allocation24_spill] sm:$0xff]  ;;  %v7480_v4 = vld [vmem:[%s10520_s3 + $0xb48] ss:$16 sps:$4 sm:$0xff]  }
 0x3d0   :  { %v3818_v45 = vpop.f32.mrf.mxu0 }
 0x3d1   :  { %v10036_v13 = vadd.f32 %v3818_v45, %v9535_v36  ;;  %5338 = vmatpush2.bf16.msra.mxu0 %v7474_v23  ;;  %v2593_v36 = vadd.f32 %v10608_v14, %v10607_v26  ;;  %v10056_v45 = vpop.f32.mrf.mxu1 }
 0x3d2   :  { %v3820_v55 = vpop.f32.mrf.mxu0  ;;  %5339 = vmatprep.subr.bf16.mxu0 %v7479_v22 }
 0x3d3   :  { %v10046_v41 = vadd.f32 %v3820_v55, %v3748_v40  ;;  %v7485_v55 = vld [vmem:[%s10520_s3 + $0xb2c] ss:$16 sps:$4 sm:$0xff]   ;;  %v2666_v40 = vadd.f32 %v9412_v2, %v2593_v36  ;;  %v10072_v14 = vpop.f32.mrf.mxu1 }
 0x3d4   :  { %v3824_v31 = vpop.f32.mrf.mxu0  ;;  %v7488_v2 = vld [vmem:[%s10520_s3 + $0xb0c] ss:$16 sps:$4 sm:$0xff]  }
 0x3d5   :  { %10606 = vst [vmem:[#allocation8_spill] sm:$0xff] %v10046_v41  ;;  %v10051_v23 = vadd.f32 %v3824_v31, %v9558_v16  ;;  %5340 = vmatpush2.bf16.msra.mxu0 %v7477_v38  ;;  %v3758_v38 = vadd.f32 %v9583_v48, %v2666_v40 }
 0x3d6   :  { %v3826_v22 = vpop.f32.mrf.mxu0  ;;  %5341 = vmatprep.subr.bf16.mxu0 %v7482_v25  ;;  %v7483_v25 = vld [vmem:[%s10520_s3 + $0xb28] ss:$16 sps:$4 sm:$0xff]  }
 0x3d7   :  { %10609 = vst [vmem:[#allocation19_spill] sm:$0xff] %v10051_v23  ;;  %v10063_v26 = vadd.f32 %v3826_v22, %v9569_v58  ;;  %v10087_v22 = vpop.f32.mrf.mxu1 }
 0x3d8   :  { %v3828_v16 = vpop.f32.mrf.mxu0 }
 0x3d9   :  { %10610 = vst [vmem:[#allocation20_spill] sm:$0xff] %v10063_v26  ;;  %v10067_v31 = vadd.f32 %v3828_v16, %v9578_v60  ;;  %5342 = vmatpush2.bf16.msra.mxu0 %v7480_v4  ;;  %v2603_v60 = vadd.f32 %v9158_v18, %v9277_v39  ;;  %v7486_v4 = vld [vmem:[%s10520_s3 + $0xb08] ss:$16 sps:$4 sm:$0xff]  }
 0x3da   :  { %v3830_v19 = vpop.f32.mrf.mxu0  ;;  %5343 = vmatprep.subr.bf16.mxu0 %v7485_v55 }
 0x3db   :  { %10611 = vst [vmem:[#allocation21_spill] sm:$0xff] %v10067_v31  ;;  %v10077_v58 = vadd.f32 %v3830_v19, %v3758_v38  ;;  %v7491_v19 = vld [vmem:[%s10520_s3 + $0xeec] ss:$16 sps:$4 sm:$0xff]   ;;  %v2676_v40 = vadd.f32 %v9624_v37, %v2603_v60  ;;  %v7489_v38 = vld [vmem:[%s10520_s3 + $0xee8] ss:$16 sps:$4 sm:$0xff]  }
 0x3dc   :  { %v3834_v36 = vpop.f32.mrf.mxu0  ;;  %v7497_v60 = vld [vmem:[%s10520_s3 + $0xeac] ss:$16 sps:$4 sm:$0xff]  }
 0x3dd   :  { %10612 = vst [vmem:[#allocation22_spill] sm:$0xff] %v10077_v58  ;;  %v10082_v48 = vadd.f32 %v3834_v36, %v9605_v6  ;;  %5344 = vmatpush2.bf16.msra.mxu0 %v7483_v25  ;;  %v3768_v6 = vadd.f32 %v9791_v34, %v2676_v40  ;;  %v10103_v25 = vpop.f32.mrf.mxu1  ;;  %v7503_v40 = vld [vmem:[%s10520_s3 + $0xe6c] ss:$16 sps:$4 sm:$0xff]  }
 0x3de   :  { %v3836_v55 = vpop.f32.mrf.mxu0  ;;  %5345 = vmatprep.subr.bf16.mxu0 %v7488_v2  ;;  %v10625_v58 = vld [vmem:[#allocation11_spill] sm:$0xff] }
 0x3df   :  { %10613 = vst [vmem:[#allocation23_spill] sm:$0xff] %v10082_v48  ;;  %v10094_v18 = vadd.f32 %v3836_v55, %v9616_v5  ;;  %v7494_v5 = vld [vmem:[%s10520_s3 + $0xecc] ss:$16 sps:$4 sm:$0xff]   ;;  %v10116_v36 = vpop.f32.mrf.mxu1  ;;  %v7498_v55 = vld [vmem:[%s10520_s3 + $0xe88] ss:$16 sps:$4 sm:$0xff]  }
 0x3e0   :  { %v3838_v39 = vpop.f32.mrf.mxu0 }
 0x3e1   :  { %10614 = vst [vmem:[#allocation24_spill] sm:$0xff] %v10094_v18  ;;  %v10098_v16 = vadd.f32 %v3838_v39, %v9627_v1  ;;  %5346 = vmatpush2.bf16.msra.mxu0 %v7486_v4  ;;  %v7492_v1 = vld [vmem:[%s10520_s3 + $0xec8] ss:$16 sps:$4 sm:$0xff]  }
 0x3e2   :  { %v3840_v2 = vpop.f32.mrf.mxu0  ;;  %5461 = vmatprep.subr.bf16.mxu0 %v7491_v19  ;;  %v10617_v4 = vld [vmem:[#allocation27_spill] sm:$0xff] }
 0x3e3   :  { %10615 = vst [vmem:[#allocation35_spill] sm:$0xff] %v10098_v16  ;;  %v3841_v37 = vadd.f32 %v3840_v2, %v3768_v6  ;;  %v7501_v39 = vld [vmem:[%s10520_s3 + $0xe68] ss:$16 sps:$4 sm:$0xff]   ;;  %v7506_v6 = vld [vmem:[%s10520_s3 + $0xe4c] ss:$16 sps:$4 sm:$0xff]  }
 0x3e4   :  { %5348 = vmatmul.mubr.bf16.vlgmr.msra.gmra.mxu0 %v8350_v7  ;;  %v7495_v7 = vld [vmem:[%s10520_s3 + $0xea8] ss:$16 sps:$4 sm:$0xff]  }
 0x3e5   :  { %v10110_v34 = vadd.f32 %v10001_v53, %v3841_v37  ;;  %5357 = vmatprep.mubr.bf16.mxu0 %v9290_v8  ;;  %5462 = vmatpush1.bf16.msra.mxu0 %v7489_v38  ;;  %v10124_v53 = vpop.f32.mrf.mxu1  ;;  %v7500_v8 = vld [vmem:[%s10520_s3 + $0xe8c] ss:$16 sps:$4 sm:$0xff]   ;;  %v10618_v38 = vld [vmem:[#allocation2_spill] sm:$0xff] }
 0x3e6   :  { %5463 = vmatprep.subr.bf16.mxu0 %v7494_v5  ;;  %v10619_v2 = vld [vmem:[#allocation29_spill] sm:$0xff] }
 0x3e7   :  { %10616 = vst [vmem:[#allocation36_spill] sm:$0xff] %v10110_v34  ;;  %v10134_v19 = vpop.f32.mrf.mxu1  ;;  %v7504_v5 = vld [vmem:[%s10520_s3 + $0xe48] ss:$16 sps:$4 sm:$0xff]  }
 0x3e8   :  { %v10624_v34 = vld [vmem:[#allocation25_spill] sm:$0xff] }
 0x3e9   :  { %5464 = vmatpush1.bf16.msra.mxu0 %v7492_v1  ;;  %v7509_v1 = vld [vmem:[%s10520_s3 + $0xe2c] ss:$16 sps:$4 sm:$0xff]  }
 0x3ea   :  { %5465 = vmatprep.subr.bf16.mxu0 %v7497_v60  ;;  %v7507_v60 = vld [vmem:[%s10520_s3 + $0xe28] ss:$16 sps:$4 sm:$0xff]  }
 0x3ec   :  { %5358 = vmatmul.mubr.bf16.gmra.mxu0 %v8372_v32  ;;  %v10142_v32 = vpop.f32.mrf.mxu1 }
 0x3ed   :  { %5367 = vmatprep.mubr.bf16.mxu0 %v10617_v4  ;;  %5466 = vmatpush1.bf16.msra.mxu0 %v7495_v7  ;;  %v10620_v4 = vld [vmem:[#allocation3_spill] sm:$0xff] }
 0x3ee   :  { %5467 = vmatprep.subr.bf16.mxu0 %v7500_v8  ;;  %v10152_v37 = vpop.f32.mrf.mxu1  ;;  %v7512_v8 = vld [vmem:[%s10520_s3 + $0xe0c] ss:$16 sps:$4 sm:$0xff]  }
 0x3f0   :  { %v10160_v7 = vpop.f32.mrf.mxu1 }
 0x3f1   :  { %5468 = vmatpush1.bf16.msra.mxu0 %v7498_v55  ;;  %v7510_v55 = vld [vmem:[%s10520_s3 + $0xe08] ss:$16 sps:$4 sm:$0xff]  }
 0x3f2   :  { %5469 = vmatprep.subr.bf16.mxu0 %v7503_v40  ;;  %v10621_v40 = vmov 0  }
 0x3f4   :  { %5368 = vmatmul.mubr.bf16.gmra.mxu0 %v10618_v38 }
 0x3f5   :  { %5377 = vmatprep.mubr.bf16.mxu0 %v10619_v2  ;;  %5470 = vmatpush1.bf16.msra.mxu0 %v7501_v39  ;;  %v10170_v39 = vpop.f32.mrf.mxu1  ;;  %v10622_v2 = vld [vmem:[#allocation30_spill] sm:$0xff] }
 0x3f6   :  { %5471 = vmatprep.subr.bf16.mxu0 %v7506_v6 }
 0x3f7   :  { %v10172_v6 = vpop.f32.mrf.mxu1 }
 0x3f9   :  { %5472 = vmatpush1.bf16.msra.mxu0 %v7504_v5 }
 0x3fa   :  { %5473 = vmatprep.subr.bf16.mxu0 %v7509_v1  ;;  %v4059_v1 = vpop.f32.mrf.mxu1 }
 0x3fc   :  { %5378 = vmatmul.mubr.bf16.gmra.mxu0 %v10620_v4  ;;  %v10623_v4 = vld [vmem:[#allocation34_spill] sm:$0xff]  ;;  %v10180_v48 = vpop.f32.mrf.mxu1 }
 0x3fd   :  { %5474 = vmatpush1.bf16.msra.mxu0 %v7507_v60  ;;  %5493 = vmatprep.mubr.bf16.mxu0 %v10621_v40  ;;  %v2792_v16 = vadd.f32 %v10624_v34, %v10623_v4 }
 0x3fe   :  { %5475 = vmatprep.subr.bf16.mxu0 %v7512_v8  ;;  %v10184_v9 = vpop.f32.mrf.mxu1 }
 0x401   :  { %5476 = vmatpush1.bf16.msra.mxu0 %v7510_v55  ;;  %v2865_v55 = vadd.f32 %v9798_v47, %v2792_v16  ;;  %v10192_v47 = vpop.f32.mrf.mxu1 }
 0x404   :  { %v3950_v38 = vpop.f32.mrf.mxu0  ;;  %5494 = vmatmul.mubr.bf16.vlgmr.msra.gmra.mxu0 %v10622_v2 }
 0x405   :  { %v3951_v5 = vadd.f32 %v3950_v38, %v9777_v50  ;;  %5503 = vmatprep.mubr.bf16.mxu0 %v10621_v40  ;;  %v10626_v38 = vld [vmem:[#allocation31_spill] sm:$0xff] }
 0x406   :  { %v3952_v60 = vpop.f32.mrf.mxu0 }
 0x407   :  { %v3953_v18 = vadd.f32 %v3952_v60, %v9788_v0  ;;  %v10627_v0 = vld [vmem:[#allocation10_spill] sm:$0xff] }
 0x408   :  { %v3954_v8 = vpop.f32.mrf.mxu0  ;;  %v10628_v60 = vld [vmem:[#allocation26_spill] sm:$0xff] }
 0x409   :  { %v3955_v15 = vadd.f32 %v3954_v8, %v10625_v58  ;;  %v2802_v4 = vadd.f32 %v10628_v60, %v10627_v0 }
 0x40a   :  { %v3956_v31 = vpop.f32.mrf.mxu0 }
 0x40b   :  { %v3957_v2 = vadd.f32 %v3956_v31, %v2865_v55  ;;  %v2875_v31 = vadd.f32 %v9838_v51, %v2802_v4 }
 0x40c   :  { %v3960_v50 = vpop.f32.mrf.mxu0  ;;  %5504 = vmatmul.mubr.bf16.gmra.mxu0 %v10626_v38  ;;  %v10196_v38 = vpop.f32.mrf.mxu1 }
 0x40d   :  { %v3961_v26 = vadd.f32 %v3960_v50, %v9817_v28  ;;  %5513 = vmatprep.mubr.bf16.mxu0 %v10621_v40  ;;  %v10629_v50 = vld [vmem:[#allocation32_spill] sm:$0xff] }
 0x40e   :  { %v3962_v34 = vpop.f32.mrf.mxu0  ;;  %v10204_v51 = vpop.f32.mrf.mxu1 }
 0x40f   :  { %v3963_v56 = vadd.f32 %v3962_v34, %v9828_v17  ;;  %v10630_v17 = vld [vmem:[#allocation14_spill] sm:$0xff]  ;;  %v10631_v34 = vld [vmem:[#allocation28_spill] sm:$0xff] }
 0x410   :  { %v3964_v58 = vpop.f32.mrf.mxu0  ;;  %v2812_v60 = vadd.f32 %v10631_v34, %v10630_v17 }
 0x411   :  { %v3965_v16 = vadd.f32 %v3964_v58, %v9833_v54 }
 0x412   :  { %v3966_v8 = vpop.f32.mrf.mxu0  ;;  %v2885_v4 = vadd.f32 %v9874_v27, %v2812_v60  ;;  %v4024_v60 = vadd.f32 %v10010_v61, %v3951_v5 }
 0x413   :  { %v3967_v55 = vadd.f32 %v3966_v8, %v2875_v31 }
 0x414   :  { %v3970_v28 = vpop.f32.mrf.mxu0  ;;  %5514 = vmatmul.mubr.bf16.gmra.mxu0 %v10629_v50  ;;  %v10208_v50 = vpop.f32.mrf.mxu1 }
 0x415   :  { %v3971_v23 = vadd.f32 %v3970_v28, %v9853_v63  ;;  %5523 = vmatprep.mubr.bf16.mxu0 %v10621_v40  ;;  %v10632_v28 = vld [vmem:[#allocation33_spill] sm:$0xff] }
 0x416   :  { %v3972_v0 = vpop.f32.mrf.mxu0 }
 0x417   :  { %v3973_v11 = vadd.f32 %v3972_v0, %v9864_v43  ;;  %v10213_v43 = vpop.f32.mrf.mxu1 }
 0x418   :  { %v3974_v54 = vpop.f32.mrf.mxu0 }
 0x419   :  { %v3975_v58 = vadd.f32 %v3974_v54, %v9869_v24  ;;  %v10218_v54 = vpop.f32.mrf.mxu1 }
 0x41a   :  { %v3976_v31 = vpop.f32.mrf.mxu0 }
 0x41b   :  { %v3977_v8 = vadd.f32 %v3976_v31, %v2885_v4  ;;  %v10226_v12 = vpop.f32.mrf.mxu1 }
 0x41c   :  { %v3980_v63 = vpop.f32.mrf.mxu0  ;;  %5524 = vmatmul.mubr.bf16.gmra.mxu0 %v10632_v28 }
 0x41d   :  { %v3981_v40 = vadd.f32 %v3980_v63, %v9885_v59  ;;  %v4026_v59 = vadd.f32 %v10025_v49, %v3953_v18 }
 0x41e   :  { %v3982_v41 = vpop.f32.mrf.mxu0 }
 0x41f   :  { %v3983_v17 = vadd.f32 %v3982_v41, %v9896_v57  ;;  %v4028_v41 = vadd.f32 %v10041_v62, %v3955_v15 }
 0x420   :  { %v3984_v0 = vpop.f32.mrf.mxu0 }
 0x421   :  { %v3985_v34 = vadd.f32 %v3984_v0, %v9902_v33 }
 0x422   :  { %v3986_v27 = vpop.f32.mrf.mxu0 }
 0x423   :  { %v3987_v24 = vadd.f32 %v3986_v27, %v9910_v10  ;;  %v4030_v10 = vadd.f32 %v10056_v45, %v3957_v2  ;;  %v4034_v27 = vadd.f32 %v10072_v14, %v3961_v26 }
 0x424   :  { %v4096_v4 = vpop.f32.mrf.mxu0 }
 0x425   :  { %v10220_v31 = vadd.f32 %v4096_v4, %v4024_v60  ;;  %v4060_v63 = vadd.f32 %v4059_v1, %v3987_v24  ;;  %v10234_v60 = vpop.f32.mrf.mxu1  ;;  %v4036_v1 = vadd.f32 %v10087_v22, %v3963_v56  ;;  %v4038_v24 = vadd.f32 %v10103_v25, %v3965_v16 }
 0x426   :  { %v4098_v28 = vpop.f32.mrf.mxu0 }
 0x427   :  { %v10223_v57 = vadd.f32 %v4098_v28, %v4026_v59  ;;  %v10242_v4 = vpop.f32.mrf.mxu1  ;;  %v4040_v59 = vadd.f32 %v10116_v36, %v3967_v55  ;;  %v4044_v28 = vadd.f32 %v10124_v53, %v3971_v23 }
 0x428   :  { %v4100_v33 = vpop.f32.mrf.mxu0 }
 0x429   :  { %v10228_v0 = vadd.f32 %v4100_v33, %v4028_v41  ;;  %v10250_v41 = vpop.f32.mrf.mxu1  ;;  %v4046_v33 = vadd.f32 %v10134_v19, %v3973_v11 }
 0x42a   :  { %v4102_v61 = vpop.f32.mrf.mxu0 }
 0x42b   :  { %v10231_v5 = vadd.f32 %v4102_v61, %v4030_v10  ;;  %v4048_v10 = vadd.f32 %v10142_v32, %v3975_v58  ;;  %v10258_v61 = vpop.f32.mrf.mxu1 }
 0x42c   :  { %v4106_v49 = vpop.f32.mrf.mxu0 }
 0x42d   :  { %v10236_v18 = vadd.f32 %v4106_v49, %v4034_v27  ;;  %v4050_v27 = vadd.f32 %v10152_v37, %v3977_v8  ;;  %v4054_v49 = vadd.f32 %v10160_v7, %v3981_v40 }
 0x42e   :  { %v4108_v15 = vpop.f32.mrf.mxu0 }
 0x42f   :  { %v10239_v62 = vadd.f32 %v4108_v15, %v4036_v1  ;;  %v10266_v1 = vpop.f32.mrf.mxu1  ;;  %v4056_v15 = vadd.f32 %v10170_v39, %v3983_v17  ;;  %v5568_v17 = vlaneseq }
 0x430   :  { %v4110_v45 = vpop.f32.mrf.mxu0 }
 0x431   :  { %v10244_v2 = vadd.f32 %v4110_v45, %v4038_v24  ;;  %v4058_v24 = vadd.f32 %v10172_v6, %v3985_v34  ;;  %v10274_v45 = vpop.f32.mrf.mxu1 }
 0x432   :  { %v4112_v26 = vpop.f32.mrf.mxu0 }
 0x433   :  { %v10247_v14 = vadd.f32 %v4112_v26, %v4040_v59  ;;  %v10280_v7 = vpop.f32.mrf.mxu1 }
 0x434   :  { %v4116_v56 = vpop.f32.mrf.mxu0 }
 0x435   :  { %v10252_v22 = vadd.f32 %v4116_v56, %v4044_v28  ;;  %v5276_v40 = vpop.f32.mrf.mxu1 }
 0x436   :  { %v4118_v25 = vpop.f32.mrf.mxu0 }
 0x437   :  { %v10255_v16 = vadd.f32 %v4118_v25, %v4046_v33  ;;  %v5278_v28 = vpop.f32.mrf.mxu1 }
 0x438   :  { %v4120_v36 = vpop.f32.mrf.mxu0 }
 0x439   :  { %v10260_v55 = vadd.f32 %v4120_v36, %v4048_v10  ;;  %v5280_v56 = vpop.f32.mrf.mxu1  ;;  %v10282_v10 = vshrl.u32 %v5568_v17, 7 }
 0x43a   :  { %v4122_v23 = vpop.f32.mrf.mxu0 }
 0x43b   :  { %v10263_v53 = vadd.f32 %v4122_v23, %v4050_v27  ;;  %v5282_v33 = vpop.f32.mrf.mxu1  ;;  %v5570_v34 = vsub.s32 0, %v10282_v10 }
 0x43c   :  { %v4126_v11 = vpop.f32.mrf.mxu0 }
 0x43d   :  { %v10268_v19 = vadd.f32 %v4126_v11, %v4054_v49  ;;  %v5286_v39 = vpop.f32.mrf.mxu1  ;;  %v5574_v49 = vsub.s32 1, %v10282_v10 }
 0x43e   :  { %v4128_v32 = vpop.f32.mrf.mxu0 }
 0x43f   :  { %10633 = vst [vmem:[#allocation27_spill] sm:$0xff] %v10268_v19  ;;  %v10271_v58 = vadd.f32 %v4128_v32, %v4056_v15  ;;  %v5288_v25 = vpop.f32.mrf.mxu1  ;;  %v3878_v15 = vadd.f32 %v9809_v30, %v9989_v29  ;;  %v3882_v30 = vadd.f32 %v9845_v42, %v10005_v44 }
 0x440   :  { %v4130_v37 = vpop.f32.mrf.mxu0 }
 0x441   :  { %10634 = vst [vmem:[#allocation2_spill] sm:$0xff] %v10271_v58  ;;  %v10276_v8 = vadd.f32 %v4130_v37, %v4058_v24  ;;  %v5290_v6 = vpop.f32.mrf.mxu1 }
 0x442   :  { %v4132_v59 = vpop.f32.mrf.mxu0 }
 0x443   :  { %10635 = vst [vmem:[#allocation29_spill] sm:$0xff] %v10276_v8  ;;  %v10278_v26 = vadd.f32 %v4132_v59, %v4060_v63  ;;  %v5292_v36 = vpop.f32.mrf.mxu1  ;;  %v10288_v63 = vld [vmem:[%s10521_s4] sm:$0xf]  ;;  %v10637_v59 = vld [vmem:[#allocation12_spill] sm:$0xff] }
 0x444   :  { %v10295_v24 = vrot.slane %v10288_v63, %v5570_v34  ;;  %v3880_v17 = vadd.f32 %v10637_v59, %v9999_v35  ;;  %v3884_v35 = vadd.f32 %v9867_v46, %v10015_v20 }
 0x445   :  { %10636 = vst [vmem:[#allocation3_spill] sm:$0xff] %v10278_v26  ;;  %v5296_v26 = vpop.f32.mrf.mxu1 }
 0x464   :  { %v5203_v27 = vpop.f32.mrf.mxu0 }
 0x465   :  { %v5204_v23 = vadd.f32 %v5203_v27, %v10180_v48  ;;  %v10301_v48 = vrot.slane %v10288_v63, %v5574_v49 }
 0x466   :  { %v5205_v11 = vpop.f32.mrf.mxu0 }
 0x467   :  { %v5277_v32 = vadd.f32 %v5276_v40, %v5204_v23  ;;  %v5206_v37 = vadd.f32 %v5205_v11, %v10184_v9  ;;  %v5298_v11 = vpop.f32.mrf.mxu1 }
 0x468   :  { %v5207_v8 = vpop.f32.mrf.mxu0 }
 0x469   :  { %v5534_v58 = vadd.f32 %v5277_v32, %v3878_v15  ;;  %v5279_v19 = vadd.f32 %v5278_v28, %v5206_v37  ;;  %v5208_v27 = vadd.f32 %v5207_v8, %v10192_v47  ;;  %v3890_v15 = vadd.f32 %v9898_v52, %v10032_v3 }
 0x46a   :  { %v5209_v29 = vpop.f32.mrf.mxu0 }
 0x46b   :  { %v5588_v40 = vadd.f32 %v10295_v24, %v5534_v58  ;;  %v5535_v34 = vadd.f32 %v5279_v19, %v3880_v17  ;;  %v5281_v9 = vadd.f32 %v5280_v56, %v5208_v27  ;;  %v5210_v23 = vadd.f32 %v5209_v29, %v10196_v38  ;;  %v10638_v19 = vld [vmem:[#allocation13_spill] sm:$0xff]  ;;  %v10639_v17 = vld [vmem:[#allocation16_spill] sm:$0xff] }
 0x46c   :  { %v5213_v28 = vpop.f32.mrf.mxu0  ;;  %v3888_v58 = vadd.f32 %v10638_v19, %v10020_v21  ;;  %v10640_v29 = vld [vmem:[#allocation8_spill] sm:$0xff] }
 0x46d   :  { %5620 = vst [vmem:[%s10522_s5] sm:$0xff] %v5588_v40  ;;  %v5589_v47 = vadd.f32 %v10301_v48, %v5535_v34  ;;  %v5538_v8 = vadd.f32 %v5281_v9, %v3882_v30  ;;  %v5283_v42 = vadd.f32 %v5282_v33, %v5210_v23  ;;  %v5214_v44 = vadd.f32 %v5213_v28, %v10204_v51  ;;  %v5300_v33 = vpop.f32.mrf.mxu1  ;;  %v10641_v40 = vld [vmem:[#allocation18_spill] sm:$0xff]  ;;  %v10642_v28 = vld [vmem:[#allocation19_spill] sm:$0xff] }
 0x46e   :  { %v5215_v56 = vpop.f32.mrf.mxu0  ;;  %v3894_v34 = vadd.f32 %v10641_v40, %v10640_v29  ;;  %v10650_v40 = vld [vmem:[#allocation23_spill] sm:$0xff] }
 0x46f   :  { %5621 = vst [vmem:[%s10522_s5 + $0x8] sm:$0xff] %v5589_v47  ;;  %v5592_v46 = vadd.f32 %v10295_v24, %v5538_v8  ;;  %v5539_v20 = vadd.f32 %v5283_v42, %v3884_v35  ;;  %v5287_v38 = vadd.f32 %v5286_v39, %v5214_v44  ;;  %v5216_v49 = vadd.f32 %v5215_v56, %v10208_v50  ;;  %v10643_v47 = vld [vmem:[#allocation15_spill] sm:$0xff]  ;;  %v10645_v56 = vld [vmem:[#allocation17_spill] sm:$0xff] }
 0x470   :  { %v5217_v32 = vpop.f32.mrf.mxu0  ;;  %v3892_v39 = vadd.f32 %v10639_v17, %v10036_v13 }
 0x471   :  { %5624 = vst [vmem:[%s10522_s5 + $0x20] sm:$0xff] %v5592_v46  ;;  %v5593_v21 = vadd.f32 %v10301_v48, %v5539_v20  ;;  %v5542_v51 = vadd.f32 %v5287_v38, %v3888_v58  ;;  %v5289_v37 = vadd.f32 %v5288_v25, %v5216_v49  ;;  %v5218_v59 = vadd.f32 %v5217_v32, %v10213_v43  ;;  %v5302_v25 = vpop.f32.mrf.mxu1  ;;  %v10644_v58 = vld [vmem:[#allocation20_spill] sm:$0xff]  ;;  %v10646_v32 = vld [vmem:[#allocation21_spill] sm:$0xff] }
 0x472   :  { %v5219_v27 = vpop.f32.mrf.mxu0  ;;  %v3900_v46 = vadd.f32 %v10645_v56, %v10644_v58 }
 0x473   :  { %5625 = vst [vmem:[%s10522_s5 + $0x28] sm:$0xff] %v5593_v21  ;;  %v5596_v52 = vadd.f32 %v10295_v24, %v5542_v51  ;;  %v5543_v3 = vadd.f32 %v5289_v37, %v3890_v15  ;;  %v5291_v50 = vadd.f32 %v5290_v6, %v5218_v59  ;;  %v5220_v30 = vadd.f32 %v5219_v27, %v10218_v54  ;;  %v10647_v21 = vld [vmem:[#allocation4_spill] sm:$0xff]  ;;  %v10649_v27 = vld [vmem:[#allocation6_spill] sm:$0xff] }
 0x474   :  { %v5223_v9 = vpop.f32.mrf.mxu0  ;;  %v3898_v6 = vadd.f32 %v10643_v47, %v10642_v28  ;;  %v10653_v28 = vld [vmem:[#allocation9_spill] sm:$0xff] }
 0x475   :  { %5628 = vst [vmem:[%s10522_s5 + $0x40] sm:$0xff] %v5596_v52  ;;  %v5597_v13 = vadd.f32 %v10301_v48, %v5543_v3  ;;  %v5546_v43 = vadd.f32 %v5291_v50, %v3892_v39  ;;  %v5293_v23 = vadd.f32 %v5292_v36, %v5220_v30  ;;  %v5224_v35 = vadd.f32 %v5223_v9, %v10226_v12  ;;  %v5306_v36 = vpop.f32.mrf.mxu1  ;;  %v10648_v39 = vld [vmem:[#allocation22_spill] sm:$0xff] }
 0x476   :  { %v5225_v8 = vpop.f32.mrf.mxu0  ;;  %v3904_v52 = vadd.f32 %v10649_v27, %v10648_v39 }
 0x477   :  { %5629 = vst [vmem:[%s10522_s5 + $0x48] sm:$0xff] %v5597_v13  ;;  %v5600_v54 = vadd.f32 %v10295_v24, %v5546_v43  ;;  %v5547_v42 = vadd.f32 %v5293_v23, %v3894_v34  ;;  %v5297_v44 = vadd.f32 %v5296_v26, %v5224_v35  ;;  %v5226_v19 = vadd.f32 %v5225_v8, %v10234_v60  ;;  %v10651_v34 = vld [vmem:[#allocation7_spill] sm:$0xff]  ;;  %v10652_v35 = vld [vmem:[#allocation24_spill] sm:$0xff] }
 0x478   :  { %v5227_v20 = vpop.f32.mrf.mxu0  ;;  %v3902_v26 = vadd.f32 %v10647_v21, %v10646_v32  ;;  %v3910_v47 = vadd.f32 %v10653_v28, %v10652_v35  ;;  %v10656_v32 = vld [vmem:[#allocation36_spill] sm:$0xff]  ;;  %v5582_v28 = vsub.s32 3, %v10282_v10 }
 0x479   :  { %5632 = vst [vmem:[%s10522_s5 + $0x60] sm:$0xff] %v5600_v54  ;;  %v5601_v12 = vadd.f32 %v10301_v48, %v5547_v42  ;;  %v5550_v38 = vadd.f32 %v5297_v44, %v3898_v6  ;;  %v5299_v49 = vadd.f32 %v5298_v11, %v5226_v19  ;;  %v5228_v15 = vadd.f32 %v5227_v20, %v10242_v4  ;;  %v5308_v11 = vpop.f32.mrf.mxu1  ;;  %v10654_v44 = vld [vmem:[#allocation35_spill] sm:$0xff]  ;;  %v10655_v19 = vld [vmem:[#allocation5_spill] sm:$0xff] }
 0x47a   :  { %v5229_v51 = vpop.f32.mrf.mxu0  ;;  %v3912_v58 = vadd.f32 %v10655_v19, %v10654_v44 }
 0x47b   :  { %5633 = vst [vmem:[%s10522_s5 + $0x68] sm:$0xff] %v5601_v12  ;;  %v5604_v60 = vadd.f32 %v10295_v24, %v5550_v38  ;;  %v5551_v37 = vadd.f32 %v5299_v49, %v3900_v46  ;;  %v5301_v59 = vadd.f32 %v5300_v33, %v5228_v15  ;;  %v5230_v17 = vadd.f32 %v5229_v51, %v10250_v41 }
 0x47c   :  { %v5233_v3 = vpop.f32.mrf.mxu0  ;;  %v3908_v33 = vadd.f32 %v10651_v34, %v10650_v40 }
 0x47d   :  { %5636 = vst [vmem:[%s10522_s5 + $0x80] sm:$0xff] %v5604_v60  ;;  %v5605_v4 = vadd.f32 %v10301_v48, %v5551_v37  ;;  %v5554_v50 = vadd.f32 %v5301_v59, %v3902_v26  ;;  %v5303_v30 = vadd.f32 %v5302_v25, %v5230_v17  ;;  %v5234_v29 = vadd.f32 %v5233_v3, %v10258_v61  ;;  %v5310_v25 = vpop.f32.mrf.mxu1 }
 0x47e   :  { %v5235_v9 = vpop.f32.mrf.mxu0 }
 0x47f   :  { %5637 = vst [vmem:[%s10522_s5 + $0x88] sm:$0xff] %v5605_v4  ;;  %v5608_v41 = vadd.f32 %v10295_v24, %v5554_v50  ;;  %v5555_v13 = vadd.f32 %v5303_v30, %v3904_v52  ;;  %v5307_v43 = vadd.f32 %v5306_v36, %v5234_v29  ;;  %v5236_v23 = vadd.f32 %v5235_v9, %v10266_v1  ;;  %v5312_v12 = vpop.f32.mrf.mxu1 }
 0x480   :  { %v5237_v6 = vpop.f32.mrf.mxu0 }
 0x481   :  { %5640 = vst [vmem:[%s10522_s5 + $0xa0] sm:$0xff] %v5608_v41  ;;  %v5609_v61 = vadd.f32 %v10301_v48, %v5555_v13  ;;  %v5558_v8 = vadd.f32 %v5307_v43, %v3908_v33  ;;  %v5309_v54 = vadd.f32 %v5308_v11, %v5236_v23  ;;  %v5238_v42 = vadd.f32 %v5237_v6, %v10274_v45  ;;  %v5422_v26 = vpop.f32.mrf.mxu1 }
 0x482   :  { %v5239_v56 = vpop.f32.mrf.mxu0  ;;  %v5578_v43 = vsub.s32 2, %v10282_v10 }
 0x483   :  { %5641 = vst [vmem:[%s10522_s5 + $0xa8] sm:$0xff] %v5609_v61  ;;  %v5612_v1 = vadd.f32 %v10295_v24, %v5558_v8  ;;  %v5559_v46 = vadd.f32 %v5309_v54, %v3910_v47  ;;  %v5311_v36 = vadd.f32 %v5310_v25, %v5238_v42  ;;  %v5240_v20 = vadd.f32 %v5239_v56, %v10280_v7  ;;  %v5424_v37 = vpop.f32.mrf.mxu1 }
 0x484   :  { %v10425_v8 = vrot.slane %v10288_v63, %v5578_v43 }
 0x485   :  { %5644 = vst [vmem:[%s10522_s5 + $0xc0] sm:$0xff] %v5612_v1  ;;  %v5613_v45 = vadd.f32 %v10301_v48, %v5559_v46  ;;  %v5562_v38 = vadd.f32 %v5311_v36, %v3912_v58  ;;  %v5313_v49 = vadd.f32 %v5312_v12, %v5240_v20  ;;  %v5426_v39 = vpop.f32.mrf.mxu1  ;;  %v10429_v58 = vrot.slane %v10288_v63, %v5582_v28 }
 0x487   :  { %5645 = vst [vmem:[%s10522_s5 + $0xc8] sm:$0xff] %v5613_v45  ;;  %v5616_v15 = vadd.f32 %v10295_v24, %v5562_v38  ;;  %v5563_v21 = vadd.f32 %v5313_v49, %v10656_v32  ;;  %v5428_v52 = vpop.f32.mrf.mxu1 }
 0x489   :  { %5648 = vst [vmem:[%s10522_s5 + $0xe0] sm:$0xff] %v5616_v15  ;;  %v5617_v7 = vadd.f32 %v10301_v48, %v5563_v21  ;;  %v5432_v4 = vpop.f32.mrf.mxu1 }
 0x48b   :  { %5649 = vst [vmem:[%s10522_s5 + $0xe8] sm:$0xff] %v5617_v7  ;;  %v5434_v48 = vpop.f32.mrf.mxu1 }
 0x48d   :  { %v5436_v34 = vpop.f32.mrf.mxu1 }
 0x48f   :  { %v5438_v41 = vpop.f32.mrf.mxu1 }
 0x491   :  { %v5442_v47 = vpop.f32.mrf.mxu1 }
 0x493   :  { %v5444_v56 = vpop.f32.mrf.mxu1 }
 0x495   :  { %v5446_v49 = vpop.f32.mrf.mxu1 }
 0x4a4   :  { %v5349_v51 = vpop.f32.mrf.mxu0 }
 0x4a5   :  { %v5423_v35 = vadd.f32 %v5422_v26, %v5349_v51 }
 0x4a6   :  { %v5351_v60 = vpop.f32.mrf.mxu0 }
 0x4a7   :  { %v5425_v6 = vadd.f32 %v5424_v37, %v5351_v60 }
 0x4a8   :  { %v5353_v59 = vpop.f32.mrf.mxu0 }
 0x4a9   :  { %v5427_v42 = vadd.f32 %v5426_v39, %v5353_v59  ;;  %v5448_v59 = vpop.f32.mrf.mxu1 }
 0x4aa   :  { %v5355_v17 = vpop.f32.mrf.mxu0 }
 0x4ab   :  { %v5429_v46 = vadd.f32 %v5428_v52, %v5355_v17 }
 0x4ac   :  { %v5359_v24 = vpop.f32.mrf.mxu0 }
 0x4ad   :  { %v5433_v45 = vadd.f32 %v5432_v4, %v5359_v24 }
 0x4ae   :  { %v5361_v27 = vpop.f32.mrf.mxu0 }
 0x4af   :  { %v5435_v32 = vadd.f32 %v5434_v48, %v5361_v27  ;;  %v5452_v48 = vpop.f32.mrf.mxu1 }
 0x4b0   :  { %v5363_v11 = vpop.f32.mrf.mxu0 }
 0x4b1   :  { %v5437_v51 = vadd.f32 %v5436_v34, %v5363_v11 }
 0x4b2   :  { %v5365_v3 = vpop.f32.mrf.mxu0 }
 0x4b3   :  { %v5439_v39 = vadd.f32 %v5438_v41, %v5365_v3 }
 0x4b4   :  { %v5369_v50 = vpop.f32.mrf.mxu0 }
 0x4b5   :  { %v5443_v11 = vadd.f32 %v5442_v47, %v5369_v50 }
 0x4b6   :  { %v10408_v30 = vpop.f32.mrf.mxu0 }
 0x4b7   :  { %v5445_v41 = vadd.f32 %v5444_v56, %v10408_v30 }
 0x4b8   :  { %v10410_v29 = vpop.f32.mrf.mxu0 }
 0x4b9   :  { %v5447_v28 = vadd.f32 %v5446_v49, %v10410_v29 }
 0x4ba   :  { %v10412_v40 = vpop.f32.mrf.mxu0 }
 0x4bc   :  { %v10414_v33 = vpop.f32.mrf.mxu0 }
 0x4be   :  { %v10416_v9 = vpop.f32.mrf.mxu0 }
 0x4c0   :  { %v10418_v13 = vpop.f32.mrf.mxu0 }
 0x4c2   :  { %v10421_v23 = vpop.f32.mrf.mxu0 }
 0x4c4   :  { %v5495_v25 = vpop.f32.mrf.mxu0 }
 0x4c5   :  { %v5496_v61 = vadd.f32 %v5495_v25, %v5423_v35  ;;  %v5454_v25 = vpop.f32.mrf.mxu1 }
 0x4c6   :  { %v5497_v54 = vpop.f32.mrf.mxu0 }
 0x4c7   :  { %v5536_v44 = vadd.f32 %v5496_v61, %v10220_v31  ;;  %v5498_v19 = vadd.f32 %v5497_v54, %v5425_v6  ;;  %v5449_v61 = vadd.f32 %v5448_v59, %v10412_v40  ;;  %v5456_v56 = vpop.f32.mrf.mxu1 }
 0x4c8   :  { %v5499_v1 = vpop.f32.mrf.mxu0 }
 0x4c9   :  { %v5590_v10 = vadd.f32 %v10425_v8, %v5536_v44  ;;  %v5537_v36 = vadd.f32 %v5498_v19, %v10223_v57  ;;  %v5500_v20 = vadd.f32 %v5499_v1, %v5427_v42  ;;  %v5453_v44 = vadd.f32 %v5452_v48, %v10414_v33 }
 0x4ca   :  { %v5501_v12 = vpop.f32.mrf.mxu0 }
 0x4cb   :  { %5622 = vst [vmem:[%s10522_s5 + $0x10] sm:$0xff] %v5590_v10  ;;  %v5591_v31 = vadd.f32 %v10429_v58, %v5537_v36  ;;  %v5540_v38 = vadd.f32 %v5500_v20, %v10228_v0  ;;  %v5502_v63 = vadd.f32 %v5501_v12, %v5429_v46  ;;  %v5455_v46 = vadd.f32 %v5454_v25, %v10416_v9  ;;  %v10657_v12 = vld [vmem:[#allocation27_spill] sm:$0xff] }
 0x4cc   :  { %v5505_v15 = vpop.f32.mrf.mxu0  ;;  %v5457_v20 = vadd.f32 %v5456_v56, %v10418_v13  ;;  %v10658_v13 = vld [vmem:[#allocation2_spill] sm:$0xff] }
 0x4cd   :  { %5623 = vst [vmem:[%s10522_s5 + $0x18] sm:$0xff] %v5591_v31  ;;  %v5594_v57 = vadd.f32 %v10425_v8, %v5540_v38  ;;  %v5541_v21 = vadd.f32 %v5502_v63, %v10231_v5  ;;  %v5506_v7 = vadd.f32 %v5505_v15, %v5433_v45  ;;  %v5458_v31 = vpop.f32.mrf.mxu1 }
 0x4ce   :  { %v5507_v26 = vpop.f32.mrf.mxu0  ;;  %v5459_v63 = vadd.f32 %v5458_v31, %v10421_v23 }
 0x4cf   :  { %5626 = vst [vmem:[%s10522_s5 + $0x30] sm:$0xff] %v5594_v57  ;;  %v5595_v0 = vadd.f32 %v10429_v58, %v5541_v21  ;;  %v5544_v60 = vadd.f32 %v5506_v7, %v10236_v18  ;;  %v5508_v37 = vadd.f32 %v5507_v26, %v5435_v32  ;;  %v10659_v21 = vld [vmem:[#allocation29_spill] sm:$0xff] }
 0x4d0   :  { %v5509_v17 = vpop.f32.mrf.mxu0 }
 0x4d1   :  { %5627 = vst [vmem:[%s10522_s5 + $0x38] sm:$0xff] %v5595_v0  ;;  %v5598_v5 = vadd.f32 %v10425_v8, %v5544_v60  ;;  %v5545_v24 = vadd.f32 %v5508_v37, %v10239_v62  ;;  %v5510_v27 = vadd.f32 %v5509_v17, %v5437_v51  ;;  %v10660_v51 = vld [vmem:[#allocation3_spill] sm:$0xff] }
 0x4d2   :  { %v5511_v52 = vpop.f32.mrf.mxu0 }
 0x4d3   :  { %5630 = vst [vmem:[%s10522_s5 + $0x50] sm:$0xff] %v5598_v5  ;;  %v5599_v18 = vadd.f32 %v10429_v58, %v5545_v24  ;;  %v5548_v4 = vadd.f32 %v5510_v27, %v10244_v2  ;;  %v5512_v3 = vadd.f32 %v5511_v52, %v5439_v39 }
 0x4d4   :  { %v5515_v34 = vpop.f32.mrf.mxu0 }
 0x4d5   :  { %5631 = vst [vmem:[%s10522_s5 + $0x58] sm:$0xff] %v5599_v18  ;;  %v5602_v62 = vadd.f32 %v10425_v8, %v5548_v4  ;;  %v5549_v50 = vadd.f32 %v5512_v3, %v10247_v14  ;;  %v5516_v43 = vadd.f32 %v5515_v34, %v5443_v11 }
 0x4d6   :  { %v5517_v35 = vpop.f32.mrf.mxu0 }
 0x4d7   :  { %5634 = vst [vmem:[%s10522_s5 + $0x70] sm:$0xff] %v5602_v62  ;;  %v5603_v2 = vadd.f32 %v10429_v58, %v5549_v50  ;;  %v5552_v30 = vadd.f32 %v5516_v43, %v10252_v22  ;;  %v5518_v47 = vadd.f32 %v5517_v35, %v5445_v41 }
 0x4d8   :  { %v5519_v6 = vpop.f32.mrf.mxu0 }
 0x4d9   :  { %5635 = vst [vmem:[%s10522_s5 + $0x78] sm:$0xff] %v5603_v2  ;;  %v5606_v14 = vadd.f32 %v10425_v8, %v5552_v30  ;;  %v5553_v29 = vadd.f32 %v5518_v47, %v10255_v16  ;;  %v5520_v54 = vadd.f32 %v5519_v6, %v5447_v28 }
 0x4da   :  { %v5521_v42 = vpop.f32.mrf.mxu0 }
 0x4db   :  { %5638 = vst [vmem:[%s10522_s5 + $0x90] sm:$0xff] %v5606_v14  ;;  %v5607_v22 = vadd.f32 %v10429_v58, %v5553_v29  ;;  %v5556_v40 = vadd.f32 %v5520_v54, %v10260_v55  ;;  %v5522_v19 = vadd.f32 %v5521_v42, %v5449_v61 }
 0x4dc   :  { %v5525_v1 = vpop.f32.mrf.mxu0 }
 0x4dd   :  { %5639 = vst [vmem:[%s10522_s5 + $0x98] sm:$0xff] %v5607_v22  ;;  %v5610_v16 = vadd.f32 %v10425_v8, %v5556_v40  ;;  %v5557_v33 = vadd.f32 %v5522_v19, %v10263_v53  ;;  %v5526_v10 = vadd.f32 %v5525_v1, %v5453_v44 }
 0x4de   :  { %v5527_v36 = vpop.f32.mrf.mxu0 }
 0x4df   :  { %5642 = vst [vmem:[%s10522_s5 + $0xb0] sm:$0xff] %v5610_v16  ;;  %v5611_v55 = vadd.f32 %v10429_v58, %v5557_v33  ;;  %v5560_v9 = vadd.f32 %v5526_v10, %v10657_v12  ;;  %v5528_v45 = vadd.f32 %v5527_v36, %v5455_v46 }
 0x4e0   :  { %v5529_v38 = vpop.f32.mrf.mxu0 }
 0x4e1   :  { %5643 = vst [vmem:[%s10522_s5 + $0xb8] sm:$0xff] %v5611_v55  ;;  %v5614_v53 = vadd.f32 %v10425_v8, %v5560_v9  ;;  %v5561_v49 = vadd.f32 %v5528_v45, %v10658_v13  ;;  %v5530_v15 = vadd.f32 %v5529_v38, %v5457_v20 }
 0x4e2   :  { %v5531_v32 = vpop.f32.mrf.mxu0 }
 0x4e3   :  { %5646 = vst [vmem:[%s10522_s5 + $0xd0] sm:$0xff] %v5614_v53  ;;  %v5615_v57 = vadd.f32 %v10429_v58, %v5561_v49  ;;  %v5564_v7 = vadd.f32 %v5530_v15, %v10659_v21  ;;  %v5532_v26 = vadd.f32 %v5531_v32, %v5459_v63 }
 0x4e5   :  { %5647 = vst [vmem:[%s10522_s5 + $0xd8] sm:$0xff] %v5615_v57  ;;  %v5618_v23 = vadd.f32 %v10425_v8, %v5564_v7  ;;  %v5565_v0 = vadd.f32 %v5532_v26, %v10660_v51 }
 0x4e7   :  { %5650 = vst [vmem:[%s10522_s5 + $0xf0] sm:$0xff] %v5618_v23  ;;  %v5619_v60 = vadd.f32 %v10429_v58, %v5565_v0 }
 0x4e9   :  { %5651 = vst [vmem:[%s10522_s5 + $0xf8] sm:$0xff] %v5619_v60 }

</bundles_post_ra>
